<compile_context>
chip_gen: v6e
topology: v6e:2x2x1
jax: 0.10.0
libtpu: 0.0.40
codegen_flags: <defaults>
</compile_context>

<pallas_src>
import jax
import jax.numpy as jnp
from jax.experimental import pallas as pl
from jax.experimental.pallas import tpu as pltpu


def fasttext_kernel(ew_ref, eb_ref, et_ref,
                    w1a_ref, w1b_ref, w1c_ref, b1_ref,
                    w2_ref, b2_ref, out_ref):
    # ew/eb/et: (tm, P, E) bf16      w1a/b/c: (E, HP) f32   b1: (1, HP) f32
    # w2: (HP, LP) f32               b2: (1, LP) f32        out: (tm, LP) f32
    #
    # Sum over the pad axis in f32 (the 1/P mean factor is folded into w1).
    sw = jnp.sum(ew_ref[...].astype(jnp.float32), axis=1)   # (tm, E)
    sb = jnp.sum(eb_ref[...].astype(jnp.float32), axis=1)   # (tm, E)
    st = jnp.sum(et_ref[...].astype(jnp.float32), axis=1)   # (tm, E)

    # hidden = mean_cat @ W1 + b1  ==  sum_w @ (W1a/P) + sum_b @ (W1b/P) + sum_t @ (W1c/P) + b1
    h = (jnp.dot(sw, w1a_ref[...], preferred_element_type=jnp.float32)
         + jnp.dot(sb, w1b_ref[...], preferred_element_type=jnp.float32)
         + jnp.dot(st, w1c_ref[...], preferred_element_type=jnp.float32)
         + b1_ref[...])                                      # (tm, HP)
    # TODO(synk): training-mode dropout (stochastic masking) not implemented; eval-mode identity.
    h = jnp.maximum(h, 0.0)                                  # ReLU

    out_ref[...] = (jnp.dot(h, w2_ref[...], preferred_element_type=jnp.float32)
                    + b2_ref[...])                           # (tm, LP)


def fasttext_forward(ev_words, ev_bigram, ev_trigram, w1, b1, w2, b2, *, tm=128):
    """ev_*: (N, P, E) gathered embeddings (bf16 preferred).  w1: (3E, H),
    b1: (H,), w2: (H, L), b2: (L,).  Returns (N, L) f32 logits."""
    N, P, E = ev_words.shape
    H = w1.shape[1]
    L = w2.shape[1]

    # Pad hidden / label dims to full lane width (exact: padded cols/rows are zero).
    HP = max(128, ((H + 127) // 128) * 128)
    LP = max(128, ((L + 127) // 128) * 128)

    # Batch tiling: tm rows per grid step (multiple of 8 for the output block).
    tm = min(tm, ((N + 7) // 8) * 8)
    n_blocks = pl.cdiv(N, tm)
    Npad = n_blocks * tm
    if Npad != N:
        pad_rows = ((0, Npad - N), (0, 0), (0, 0))
        ev_words = jnp.pad(ev_words, pad_rows)
        ev_bigram = jnp.pad(ev_bigram, pad_rows)
        ev_trigram = jnp.pad(ev_trigram, pad_rows)

    # Fold the 1/P mean into w1, split it per embedding source, pad to HP/LP.
    w1s = w1.astype(jnp.float32) * (1.0 / P)                 # (3E, H)
    w1a = jnp.pad(w1s[0 * E:1 * E], ((0, 0), (0, HP - H)))   # (E, HP)
    w1b = jnp.pad(w1s[1 * E:2 * E], ((0, 0), (0, HP - H)))   # (E, HP)
    w1c = jnp.pad(w1s[2 * E:3 * E], ((0, 0), (0, HP - H)))   # (E, HP)
    b1p = jnp.pad(b1.astype(jnp.float32), (0, HP - H)).reshape(1, HP)
    w2p = jnp.pad(w2.astype(jnp.float32), ((0, HP - H), (0, LP - L)))  # (HP, LP)
    b2p = jnp.pad(b2.astype(jnp.float32), (0, LP - L)).reshape(1, LP)

    out = pl.pallas_call(
        fasttext_kernel,
        out_shape=jax.ShapeDtypeStruct((Npad, LP), jnp.float32),
        grid=(n_blocks,),
        in_specs=[
            pl.BlockSpec((tm, P, E), lambda i: (i, 0, 0)),   # ev_words
            pl.BlockSpec((tm, P, E), lambda i: (i, 0, 0)),   # ev_bigram
            pl.BlockSpec((tm, P, E), lambda i: (i, 0, 0)),   # ev_trigram
            pl.BlockSpec((E, HP), lambda i: (0, 0)),         # w1a
            pl.BlockSpec((E, HP), lambda i: (0, 0)),         # w1b
            pl.BlockSpec((E, HP), lambda i: (0, 0)),         # w1c
            pl.BlockSpec((1, HP), lambda i: (0, 0)),         # b1
            pl.BlockSpec((HP, LP), lambda i: (0, 0)),        # w2
            pl.BlockSpec((1, LP), lambda i: (0, 0)),         # b2
        ],
        out_specs=pl.BlockSpec((tm, LP), lambda i: (i, 0)),
        compiler_params=pltpu.CompilerParams(
            dimension_semantics=("parallel",)),               # megacore-shardable on v7x
    )(ev_words, ev_bigram, ev_trigram, w1a, w1b, w1c, b1p, w2p, b2p)

    return out[:N, :L]


def reference_forward(ev_words, ev_bigram, ev_trigram, w1, b1, w2, b2):
    cat = jnp.concatenate([ev_words.astype(jnp.float32),
                           ev_bigram.astype(jnp.float32),
                           ev_trigram.astype(jnp.float32)], axis=-1)
    mean = jnp.mean(cat, axis=1)
    h = jnp.maximum(mean @ w1 + b1, 0.0)
    return h @ w2 + b2


if __name__ == "__main__":
    # ---- config (small, consistent with the module's forward) ----
    N = 128          # batch
    P = 16           # pad size (sequence length)
    E = 32           # pretrained_embedding_dim
    H = 64           # hidden_size
    L = 10           # labels_num
    VOCAB = 100      # vocab_num
    VOCAB_GRAM = 200  # vocab_gram_num
    TM = 64          # batch tile per grid step -> grid=(2,)

    key = jax.random.PRNGKey(0)
    (k_embw, k_emb2, k_emb3, k_w1, k_b1, k_w2, k_b2,
     k_idx_w, k_idx_2, k_idx_3) = jax.random.split(key, 10)

    # ---- deterministic parameters (embedding tables stored bf16) ----
    emb_words = jax.random.normal(k_embw, (VOCAB, E), jnp.float32) * 0.1
    # padding_idx = VOCAB - 1 -> zero embedding row (nn.Embedding padding_idx semantics)
    emb_words = emb_words.at[VOCAB - 1].set(0.0)
    emb_bigram = jax.random.normal(k_emb2, (VOCAB_GRAM, E), jnp.float32) * 0.1
    emb_trigram = jax.random.normal(k_emb3, (VOCAB_GRAM, E), jnp.float32) * 0.1
    emb_words = emb_words.astype(jnp.bfloat16)
    emb_bigram = emb_bigram.astype(jnp.bfloat16)
    emb_trigram = emb_trigram.astype(jnp.bfloat16)

    # Linear layers (stored directly as (in, out); equivalent to PyTorch W^T)
    w1 = jax.random.normal(k_w1, (3 * E, H), jnp.float32) * 0.05
    b1 = jax.random.normal(k_b1, (H,), jnp.float32) * 0.05
    w2 = jax.random.normal(k_w2, (H, L), jnp.float32) * 0.05
    b2 = jax.random.normal(k_b2, (L,), jnp.float32) * 0.05

    # ---- deterministic example inputs: X = (words_idx, num_valid_words, bigram, trigram) ----
    words_idx = jax.random.randint(k_idx_w, (N, P), 0, VOCAB, jnp.int32)
    num_valid = jnp.full((N,), P, jnp.int32)   # unused by forward (as in the PyTorch module)
    bigram = jax.random.randint(k_idx_2, (N, P), 0, VOCAB_GRAM, jnp.int32)
    trigram = jax.random.randint(k_idx_3, (N, P), 0, VOCAB_GRAM, jnp.int32)

    # ---- glue: embedding lookups (plain JAX); no concat is materialized ----
    ev_words = jnp.take(emb_words, words_idx, axis=0)      # (N, P, E) bf16
    ev_bigram = jnp.take(emb_bigram, bigram, axis=0)       # (N, P, E) bf16
    ev_trigram = jnp.take(emb_trigram, trigram, axis=0)    # (N, P, E) bf16

    # ---- Pallas kernel ----
    out = fasttext_forward(ev_words, ev_bigram, ev_trigram, w1, b1, w2, b2, tm=TM)
    out = jax.block_until_ready(out)

    # correctness check against pure-JAX reference (same bf16 inputs, f32 math)
    ref = reference_forward(ev_words, ev_bigram, ev_trigram, w1, b1, w2, b2)
    assert out.shape == (N, L)
    assert jnp.allclose(out, ref, atol=1e-3, rtol=1e-3), "mismatch vs reference"

    print("KERNEL_OK")
</pallas_src>

<mosaic_0001>
module attributes {stable_mosaic.version = 11 : i64} {
  func.func @fasttext_kernel(%arg0: i32, %arg1: memref<64x16x32xbf16, #tpu.memory_space<vmem>>, %arg2: memref<64x16x32xbf16, #tpu.memory_space<vmem>>, %arg3: memref<64x16x32xbf16, #tpu.memory_space<vmem>>, %arg4: memref<32x128xf32, #tpu.memory_space<vmem>>, %arg5: memref<32x128xf32, #tpu.memory_space<vmem>>, %arg6: memref<32x128xf32, #tpu.memory_space<vmem>>, %arg7: memref<1x128xf32, #tpu.memory_space<vmem>>, %arg8: memref<128x128xf32, #tpu.memory_space<vmem>>, %arg9: memref<1x128xf32, #tpu.memory_space<vmem>>, %arg10: memref<64x128xf32, #tpu.memory_space<vmem>>) attributes {dimension_semantics = [#tpu.dimension_semantics<parallel>], iteration_bounds = array<i64: 2>, scalar_prefetch = 0 : i64, scratch_operands = 0 : i64, tpu.core_type = #tpu.core_type<tc>, window_params = [{transform_indices = @transform_0, window_bounds = array<i64: 64, 16, 32>}, {transform_indices = @transform_1, window_bounds = array<i64: 64, 16, 32>}, {transform_indices = @transform_2, window_bounds = array<i64: 64, 16, 32>}, {pipeline_mode = #tpu.pipeline_mode<synchronous>, transform_indices = @transform_3, window_bounds = array<i64: 32, 128>}, {pipeline_mode = #tpu.pipeline_mode<synchronous>, transform_indices = @transform_4, window_bounds = array<i64: 32, 128>}, {pipeline_mode = #tpu.pipeline_mode<synchronous>, transform_indices = @transform_5, window_bounds = array<i64: 32, 128>}, {pipeline_mode = #tpu.pipeline_mode<synchronous>, transform_indices = @transform_6, window_bounds = array<i64: 1, 128>}, {pipeline_mode = #tpu.pipeline_mode<synchronous>, transform_indices = @transform_7, window_bounds = array<i64: 128, 128>}, {pipeline_mode = #tpu.pipeline_mode<synchronous>, transform_indices = @transform_8, window_bounds = array<i64: 1, 128>}, {transform_indices = @transform_9, window_bounds = array<i64: 64, 128>}]} {
    %c0 = arith.constant 0 : index
    %c0_0 = arith.constant 0 : index
    %c0_1 = arith.constant 0 : index
    %0 = vector.load %arg1[%c0, %c0_0, %c0_1] : memref<64x16x32xbf16, #tpu.memory_space<vmem>>, vector<64x16x32xbf16>
    %1 = arith.extf %0 : vector<64x16x32xbf16> to vector<64x16x32xf32>
    %cst = arith.constant dense<0.000000e+00> : vector<64x32xf32>
    %2 = vector.multi_reduction <add>, %1, %cst [1] : vector<64x16x32xf32> to vector<64x32xf32>
    %c0_2 = arith.constant 0 : index
    %c0_3 = arith.constant 0 : index
    %c0_4 = arith.constant 0 : index
    %3 = vector.load %arg2[%c0_2, %c0_3, %c0_4] : memref<64x16x32xbf16, #tpu.memory_space<vmem>>, vector<64x16x32xbf16>
    %4 = arith.extf %3 : vector<64x16x32xbf16> to vector<64x16x32xf32>
    %cst_5 = arith.constant dense<0.000000e+00> : vector<64x32xf32>
    %5 = vector.multi_reduction <add>, %4, %cst_5 [1] : vector<64x16x32xf32> to vector<64x32xf32>
    %c0_6 = arith.constant 0 : index
    %c0_7 = arith.constant 0 : index
    %c0_8 = arith.constant 0 : index
    %6 = vector.load %arg3[%c0_6, %c0_7, %c0_8] : memref<64x16x32xbf16, #tpu.memory_space<vmem>>, vector<64x16x32xbf16>
    %7 = arith.extf %6 : vector<64x16x32xbf16> to vector<64x16x32xf32>
    %cst_9 = arith.constant dense<0.000000e+00> : vector<64x32xf32>
    %8 = vector.multi_reduction <add>, %7, %cst_9 [1] : vector<64x16x32xf32> to vector<64x32xf32>
    %c0_10 = arith.constant 0 : index
    %c0_11 = arith.constant 0 : index
    %9 = vector.load %arg4[%c0_10, %c0_11] : memref<32x128xf32, #tpu.memory_space<vmem>>, vector<32x128xf32>
    %cst_12 = arith.constant dense<0.000000e+00> : vector<64x128xf32>
    %10 = tpu.matmul %2, %9, %cst_12 {dimension_numbers = #tpu.dot_dimension_numbers<[1], [0], [0], [1], [0, 0, 1, 1], [], []>} : vector<64x32xf32>, vector<32x128xf32>, vector<64x128xf32> -> vector<64x128xf32>
    %c0_13 = arith.constant 0 : index
    %c0_14 = arith.constant 0 : index
    %11 = vector.load %arg5[%c0_13, %c0_14] : memref<32x128xf32, #tpu.memory_space<vmem>>, vector<32x128xf32>
    %cst_15 = arith.constant dense<0.000000e+00> : vector<64x128xf32>
    %12 = tpu.matmul %5, %11, %cst_15 {dimension_numbers = #tpu.dot_dimension_numbers<[1], [0], [0], [1], [0, 0, 1, 1], [], []>} : vector<64x32xf32>, vector<32x128xf32>, vector<64x128xf32> -> vector<64x128xf32>
    %13 = arith.addf %10, %12 : vector<64x128xf32>
    %c0_16 = arith.constant 0 : index
    %c0_17 = arith.constant 0 : index
    %14 = vector.load %arg6[%c0_16, %c0_17] : memref<32x128xf32, #tpu.memory_space<vmem>>, vector<32x128xf32>
    %cst_18 = arith.constant dense<0.000000e+00> : vector<64x128xf32>
    %15 = tpu.matmul %8, %14, %cst_18 {dimension_numbers = #tpu.dot_dimension_numbers<[1], [0], [0], [1], [0, 0, 1, 1], [], []>} : vector<64x32xf32>, vector<32x128xf32>, vector<64x128xf32> -> vector<64x128xf32>
    %16 = arith.addf %13, %15 : vector<64x128xf32>
    %c0_19 = arith.constant 0 : index
    %c0_20 = arith.constant 0 : index
    %17 = vector.load %arg7[%c0_19, %c0_20] : memref<1x128xf32, #tpu.memory_space<vmem>>, vector<1x128xf32>
    %18 = vector.broadcast %17 : vector<1x128xf32> to vector<64x128xf32>
    %19 = arith.addf %16, %18 : vector<64x128xf32>
    %cst_21 = arith.constant 0.000000e+00 : f32
    %20 = vector.broadcast %cst_21 : f32 to vector<64x128xf32>
    %21 = arith.maximumf %19, %20 : vector<64x128xf32>
    %c0_22 = arith.constant 0 : index
    %c0_23 = arith.constant 0 : index
    %22 = vector.load %arg8[%c0_22, %c0_23] : memref<128x128xf32, #tpu.memory_space<vmem>>, vector<128x128xf32>
    %cst_24 = arith.constant dense<0.000000e+00> : vector<64x128xf32>
    %23 = tpu.matmul %21, %22, %cst_24 {dimension_numbers = #tpu.dot_dimension_numbers<[1], [0], [0], [1], [0, 0, 1, 1], [], []>} : vector<64x128xf32>, vector<128x128xf32>, vector<64x128xf32> -> vector<64x128xf32>
    %c0_25 = arith.constant 0 : index
    %c0_26 = arith.constant 0 : index
    %24 = vector.load %arg9[%c0_25, %c0_26] : memref<1x128xf32, #tpu.memory_space<vmem>>, vector<1x128xf32>
    %25 = vector.broadcast %24 : vector<1x128xf32> to vector<64x128xf32>
    %26 = arith.addf %23, %25 : vector<64x128xf32>
    %c0_27 = arith.constant 0 : index
    %c0_28 = arith.constant 0 : index
    %27 = vector.load %arg10[%c0_27, %c0_28] : memref<64x128xf32, #tpu.memory_space<vmem>>, vector<64x128xf32>
    tpu.vector_store %arg10[%c0_27, %c0_28], %26 {strides = array<i32>} : memref<64x128xf32, #tpu.memory_space<vmem>>, vector<64x128xf32>,
    return
  }
  func.func @transform_0(%arg0: i32) -> (i32, i32, i32) {
    %c0_i32 = arith.constant 0 : i32
    %c0_i32_0 = arith.constant 0 : i32
    %c0_i32_1 = arith.constant 0 : i32
    return %arg0, %c0_i32, %c0_i32_0 : i32, i32, i32
  }
  func.func @transform_1(%arg0: i32) -> (i32, i32, i32) {
    %c0_i32 = arith.constant 0 : i32
    %c0_i32_0 = arith.constant 0 : i32
    %c0_i32_1 = arith.constant 0 : i32
    return %arg0, %c0_i32, %c0_i32_0 : i32, i32, i32
  }
  func.func @transform_2(%arg0: i32) -> (i32, i32, i32) {
    %c0_i32 = arith.constant 0 : i32
    %c0_i32_0 = arith.constant 0 : i32
    %c0_i32_1 = arith.constant 0 : i32
    return %arg0, %c0_i32, %c0_i32_0 : i32, i32, i32
  }
  func.func @transform_3(%arg0: i32) -> (i32, i32) {
    %c0_i32 = arith.constant 0 : i32
    %c0_i32_0 = arith.constant 0 : i32
    %c0_i32_1 = arith.constant 0 : i32
    return %c0_i32, %c0_i32_0 : i32, i32
  }
  func.func @transform_4(%arg0: i32) -> (i32, i32) {
    %c0_i32 = arith.constant 0 : i32
    %c0_i32_0 = arith.constant 0 : i32
    %c0_i32_1 = arith.constant 0 : i32
    return %c0_i32, %c0_i32_0 : i32, i32
  }
  func.func @transform_5(%arg0: i32) -> (i32, i32) {
    %c0_i32 = arith.constant 0 : i32
    %c0_i32_0 = arith.constant 0 : i32
    %c0_i32_1 = arith.constant 0 : i32
    return %c0_i32, %c0_i32_0 : i32, i32
  }
  func.func @transform_6(%arg0: i32) -> (i32, i32) {
    %c0_i32 = arith.constant 0 : i32
    %c0_i32_0 = arith.constant 0 : i32
    %c0_i32_1 = arith.constant 0 : i32
    return %c0_i32, %c0_i32_0 : i32, i32
  }
  func.func @transform_7(%arg0: i32) -> (i32, i32) {
    %c0_i32 = arith.constant 0 : i32
    %c0_i32_0 = arith.constant 0 : i32
    %c0_i32_1 = arith.constant 0 : i32
    return %c0_i32, %c0_i32_0 : i32, i32
  }
  func.func @transform_8(%arg0: i32) -> (i32, i32) {
    %c0_i32 = arith.constant 0 : i32
    %c0_i32_0 = arith.constant 0 : i32
    %c0_i32_1 = arith.constant 0 : i32
    return %c0_i32, %c0_i32_0 : i32, i32
  }
  func.func @transform_9(%arg0: i32) -> (i32, i32) {
    %c0_i32 = arith.constant 0 : i32
    %c0_i32_0 = arith.constant 0 : i32
    return %arg0, %c0_i32 : i32, i32
  }
}

</mosaic_0001>

<bundles_post_ra>
// kernel: tpu_custom_call.1
= control target key start
LH: loop header
LB: loop body
LE: loop exit
PB: predicated region body
PF: predicated region fallthrough
CT: control target
= control target key end

     0   :  { %14 = vsyncpa [#allocation3], 0  ;;  %s6219_s0 = inlined_call_operand.vmem [shape: bf16[128,16,32], index: 0, kind: input, shape index: {}]   ;;  %s6220_s1 = inlined_call_operand.vmem [shape: bf16[128,16,32], index: 1, kind: input, shape index: {}]   ;;  %s6221_s2 = inlined_call_operand.vmem [shape: bf16[128,16,32], index: 2, kind: input, shape index: {}]   ;;  %s6222_s3 = inlined_call_operand.vmem [shape: f32[32,128], index: 3, kind: input, shape index: {}]   ;;  %s6223_s4 = inlined_call_operand.vmem [shape: f32[32,128], index: 4, kind: input, shape index: {}]   ;;  %s6224_s5 = inlined_call_operand.vmem [shape: f32[32,128], index: 5, kind: input, shape index: {}]   ;;  %s6225_s6 = inlined_call_operand.vmem [shape: f32[1,128], index: 6, kind: input, shape index: {}]   ;;  %s6226_s7 = inlined_call_operand.vmem [shape: f32[128,128], index: 7, kind: input, shape index: {}]   ;;  %s6227_s8 = inlined_call_operand.vmem [shape: f32[1,128], index: 8, kind: input, shape index: {}]   ;;  %s6228_s9 = inlined_call_operand.hbm [shape: f32[128,128], index: 9, kind: output, shape index: {}]  }
   0x1   :  { %16 = vsyncpa [#allocation3 + $0x1], 0  ;;  %s5219_s30 = smov 0   ;;  %s5221_s10 = smov 0  }
   0x2   :  { %s5223_s11 = smov 0   ;;  %s5225_s12 = smov 0  }
   0x3 LB: > { %s5240_s13 = sadd.s32 4294967295, %s5164_s12   ;;  %s3893_s14 = sadd.s32 4294967294, %s5164_s12   ;;  %s5164_s12 = sphi %s5225_s12, %s6234_s12   ;;  %s5160_s11 = sphi %s5223_s11, %s6233_s11   ;;  %s5156_s10 = sphi %s5221_s10, %s6232_s10   ;;  %s5152_s30 = sphi %s5219_s30, %s6231_s30  }
   0x4   : > { %s5244_s15 = sadd.s32 1, %s5164_s12   ;;  %s233_s16 = sadd.s32 1, %s5160_s11 }
   0x5   : > { %s230_s17 = ssub.s32 %s5164_s12, %s5244_s15  ;;  %p243_p0 = scmp.ne.s32.totalorder %s5160_s11, %s5156_s10 }
   0x6   : > { %p231_p1 = scmp.eq.s32.totalorder %s230_s17, 0  ;;  %p244_p2 = scmp.eq.s32.totalorder %s5240_s13, 1 }
   0x7   : > { %p249_p3 = scmp.ne.s32.totalorder %s5156_s10, %s5152_s30  ;;  %p250_p4 = scmp.eq.s32.totalorder %s3893_s14, 1 }
   0x8   : > { %s5255_s18 = scalar_select %p231_p1, %s5160_s11, %s233_s16  }
   0x9   : > { %p5257_p5 = por %p244_p2, %p243_p0  ;;  %p5261_p6 = por %p250_p4, %p249_p3 }
   0xa   : > { %p3896_p7 = scmp.ge.s32.totalorder %s5164_s12, 1  ;;  %p316_p8 = scmp.lt.s32.totalorder %s5164_s12, 3 }
   0xc   : > { %p317_p9 = pnand %p3896_p7, %p316_p8 }
   0xd   : > { %s3898_s27 = sshll.u32 (!%p317_p9), %s5240_s13, 6  ;;  %s3941_s25 = sshll.u32 (!%p317_p9), %s5240_s13, 10 }
   0xe   : > { %320 = sbr.rel (%p317_p9) target bundleno = 1011 (0x3f3), region = 56  ;;  %p366_p10 = scmp.lt.s32.totalorder (!%p317_p9), %s3898_s27, 127 }
   0xf   : > { %s6173_s16 = scalar_lea.hbm (!%p317_p9), %s6228_s9, %s3941_s25  ;;  %s5166_s17 = smov (!%p317_p9), [#allocation2]  }
  0x13   : > { %v2891_v0 = vld [vmem:[%s6223_s4 + $0x18] sm:$0xff]  ;;  %v2890_v2 = vld [vmem:[%s6223_s4 + $0x10] sm:$0xff]  ;;  %v2889_v4 = vld [vmem:[%s6223_s4 + $0x8] sm:$0xff]  ;;  %s6236_s27 = smov (!%p366_p10, %s3898_s27), 127  ;;  %vm643_vm0 = vcmask 261120   ;;  %vm2956_vm1 = vcmask 1041409  }
  0x14   : > { %v2887_v1 = vld [vmem:[%s6222_s3 + $0x18] sm:$0xff]  ;;  %4959 = vmatprep.subr.mxu0 %v2891_v0  ;;  %v2886_v3 = vld [vmem:[%s6222_s3 + $0x10] sm:$0xff]  ;;  %v2885_v5 = vld [vmem:[%s6222_s3 + $0x8] sm:$0xff]  ;;  %s5292_s26 = sshll.u32 %s6236_s27, 3  ;;  %vm2958_vm2 = vcmask 1042434   ;;  %vm2960_vm3 = vcmask 1043459  }
  0x15   : > { %4979 = vmatprep.subr.mxu1 %v2887_v1  ;;  %4960 = vmatpush3.msra.mxu0 %v2891_v0  ;;  %v2888_v6 = vld [vmem:[%s6223_s4] sm:$0xff]  ;;  %s5298_s14 = scalar_lea.vmem %s6220_s1, %s5292_s26  ;;  %v5303_v8 = vld [vmem:[%s6224_s5 + $0x18] sm:$0xff]  ;;  %vm2962_vm4 = vcmask 1044484   ;;  %vm2964_vm5 = vcmask 1045509   ;;  %s5333_s22 = scalar_lea.vmem %s6219_s0, %s5292_s26  ;;  %vm2966_vm6 = vcmask 1046534   ;;  %vm2968_vm7 = vcmask 1047559  }
  0x16   : > { %4980 = vmatpush3.msra.mxu1 %v2887_v1  ;;  %4961 = vmatprep.subr.mxu0 %v2890_v2  ;;  %v2884_v7 = vld [vmem:[%s6222_s3] sm:$0xff]  ;;  %v4773_v10 = vld [vmem:[%s5298_s14 + $0x8] sm:$0xff]   ;;  %v4774_v11 = vld [vmem:[%s5298_s14 + $0x10] sm:$0xff]   ;;  %s5830_s27 = scalar_lea.vmem %s6221_s2, %s5292_s26  ;;  %s362_s26 = sand.u32 1, %s5156_s10  }
  0x17   : > { %4981 = vmatprep.subr.mxu1 %v2886_v3  ;;  %4962 = vmatpush3.msra.mxu0 %v2890_v2  ;;  %v4199_v9 = vld [vmem:[%s5298_s14] sm:$0xff]   ;;  %v4204_v14 = vunpack.c.l.bf16 %v4773_v10  ;;  %v4205_v15 = vunpack.c.h.bf16 %v4773_v10  ;;  %v4775_v16 = vld [vmem:[%s5298_s14 + $0x18] sm:$0xff]   ;;  %v4777_v18 = vld [vmem:[%s5298_s14 + $0x28] sm:$0xff]   ;;  %v4208_v19 = vunpack.c.l.bf16 %v4774_v11  ;;  %v4209_v20 = vunpack.c.h.bf16 %v4774_v11  ;;  %s3897_s21 = sshll.u32 %s362_s26, 6 }
  0x18   : > { %4982 = vmatpush3.msra.mxu1 %v2886_v3  ;;  %4963 = vmatprep.subr.mxu0 %v2889_v4  ;;  %v4200_v12 = vunpack.c.l.bf16 %v4199_v9  ;;  %v4201_v13 = vunpack.c.h.bf16 %v4199_v9  ;;  %v4776_v17 = vld [vmem:[%s5298_s14 + $0x20] sm:$0xff]   ;;  %v4212_v21 = vunpack.c.l.bf16 %v4775_v16  ;;  %v4213_v22 = vunpack.c.h.bf16 %v4775_v16  ;;  %v4778_v23 = vld [vmem:[%s5298_s14 + $0x30] sm:$0xff]   ;;  %v4779_v24 = vld [vmem:[%s5298_s14 + $0x38] sm:$0xff]   ;;  %s364_s24 = scalar_lea.vmem [#allocation2], %s3897_s21  ;;  %s5108_s21 = sshll.u32 %s5166_s17, 4  ;;  %s5109_s21 = int_to_ptr.vmem [resolvable:$false] %s5108_s21 }
  0x19   : > { %4983 = vmatprep.subr.mxu1 %v2885_v5  ;;  %4964 = vmatpush3.msra.mxu0 %v2889_v4  ;;  %v4216_v25 = vunpack.c.l.bf16 %v4776_v17  ;;  %v4217_v26 = vunpack.c.h.bf16 %v4776_v17  ;;  %v4220_v27 = vunpack.c.l.bf16 %v4777_v18  ;;  %v4221_v28 = vunpack.c.h.bf16 %v4777_v18 }
  0x1a   : > { %4984 = vmatpush3.msra.mxu1 %v2885_v5  ;;  %4965 = vmatprep.subr.mxu0 %v2888_v6  ;;  %v4224_v29 = vunpack.c.l.bf16 %v4778_v23  ;;  %v4225_v30 = vunpack.c.h.bf16 %v4778_v23  ;;  %v4228_v31 = vunpack.c.l.bf16 %v4779_v24  ;;  %v4229_v32 = vunpack.c.h.bf16 %v4779_v24 }
  0x1b   : > { %4985 = vmatprep.subr.mxu1 %v2884_v7  ;;  %4966 = vmatpush3.msra.mxu0 %v2888_v6  ;;  %v1476_v33 = vsel %vm643_vm0, %v4200_v12, 0.0  ;;  %v1477_v34 = vsel %vm643_vm0, %v4201_v13, 0.0  ;;  %v1485_v35 = vsel %vm643_vm0, %v4204_v14, 0.0  ;;  %v1486_v36 = vsel %vm643_vm0, %v4205_v15, 0.0 }
  0x1c   : > { %4986 = vmatpush3.msra.mxu1 %v2884_v7  ;;  %4999 = vmatprep.subr.mxu0 %v5303_v8  ;;  %v1478_v37 = vadd.f32 %v1477_v34, %v1476_v33  ;;  %v1487_v38 = vadd.f32 %v1486_v36, %v1485_v35  ;;  %v1494_v39 = vsel %vm643_vm0, %v4208_v19, 0.0  ;;  %v1495_v40 = vsel %vm643_vm0, %v4209_v20, 0.0 }
  0x1d   : > { %v1496_v41 = vadd.f32 %v1495_v40, %v1494_v39  ;;  %v1503_v42 = vsel %vm643_vm0, %v4212_v21, 0.0  ;;  %v1504_v43 = vsel %vm643_vm0, %v4213_v22, 0.0  ;;  %v1512_v44 = vsel %vm643_vm0, %v4216_v25, 0.0  ;;  %v3943_v22 = vld [vmem:[%s5333_s22] sm:$0xff]   ;;  %v4711_v40 = vld [vmem:[%s5333_s22 + $0x10] sm:$0xff]  }
  0x1e   : > { %v1479_v45 = vrot.slane %v1478_v37, 4  ;;  %v1488_v46 = vrot.slane %v1487_v38, 4  ;;  %v1505_v47 = vadd.f32 %v1504_v43, %v1503_v42  ;;  %v1513_v48 = vsel %vm643_vm0, %v4217_v26, 0.0 }
  0x1f   : > { %v1497_v49 = vrot.slane %v1496_v41, 4  ;;  %v1514_v50 = vadd.f32 %v1513_v48, %v1512_v44  ;;  %v1521_v51 = vsel %vm643_vm0, %v4220_v27, 0.0  ;;  %v1522_v52 = vsel %vm643_vm0, %v4221_v28, 0.0 }
  0x20   : > { %v1480_v53 = vadd.f32 %v1479_v45, %v1478_v37  ;;  %v1489_v54 = vadd.f32 %v1488_v46, %v1487_v38  ;;  %v1506_v55 = vrot.slane %v1505_v47, 4  ;;  %v1523_v56 = vadd.f32 %v1522_v52, %v1521_v51  ;;  %v4713_v46 = vld [vmem:[%s5333_s22 + $0x20] sm:$0xff]   ;;  %v4714_v51 = vld [vmem:[%s5333_s22 + $0x28] sm:$0xff]   ;;  %v4715_v52 = vld [vmem:[%s5333_s22 + $0x30] sm:$0xff]  }
  0x21   : > { %v1498_v57 = vadd.f32 %v1497_v49, %v1496_v41  ;;  %v1515_v58 = vrot.slane %v1514_v50, 4  ;;  %v1530_v59 = vsel %vm643_vm0, %v4224_v29, 0.0  ;;  %v1531_v60 = vsel %vm643_vm0, %v4225_v30, 0.0  ;;  %v4712_v41 = vld [vmem:[%s5333_s22 + $0x18] sm:$0xff]  }
  0x22   : > { %v1481_v61 = vrot.slane %v1480_v53, 2  ;;  %v1490_v62 = vrot.slane %v1489_v54, 2  ;;  %v1507_v63 = vadd.f32 %v1506_v55, %v1505_v47  ;;  %v1524_v0 = vrot.slane %v1523_v56, 4 }
  0x23   : > { %v1499_v1 = vrot.slane %v1498_v57, 2  ;;  %v1516_v2 = vadd.f32 %v1515_v58, %v1514_v50  ;;  %v1532_v3 = vadd.f32 %v1531_v60, %v1530_v59  ;;  %v1539_v4 = vsel %vm643_vm0, %v4228_v31, 0.0  ;;  %v4710_v31 = vld [vmem:[%s5333_s22 + $0x8] sm:$0xff]  }
  0x24   : > { %v1482_v5 = vadd.f32 %v1481_v61, %v1480_v53  ;;  %v1491_v6 = vadd.f32 %v1490_v62, %v1489_v54  ;;  %v1508_v7 = vrot.slane %v1507_v63, 2  ;;  %v1525_v9 = vadd.f32 %v1524_v0, %v1523_v56 }
  0x25   : > { %v1500_v10 = vadd.f32 %v1499_v1, %v1498_v57  ;;  %v1517_v11 = vrot.slane %v1516_v2, 2  ;;  %v1533_v12 = vrot.slane %v1532_v3, 4  ;;  %v1540_v13 = vsel %vm643_vm0, %v4229_v32, 0.0  ;;  %v4716_v57 = vld [vmem:[%s5333_s22 + $0x38] sm:$0xff]  }
  0x26   : > { %v1483_v14 = vrot.slane %v1482_v5, 1  ;;  %v1492_v15 = vrot.slane %v1491_v6, 1  ;;  %v1509_v16 = vadd.f32 %v1508_v7, %v1507_v63  ;;  %v1526_v17 = vrot.slane %v1525_v9, 2 }
  0x27   : > { %v1501_v18 = vrot.slane %v1500_v10, 1  ;;  %v1518_v19 = vadd.f32 %v1517_v11, %v1516_v2  ;;  %v1534_v20 = vadd.f32 %v1533_v12, %v1532_v3  ;;  %v1541_v21 = vadd.f32 %v1540_v13, %v1539_v4 }
  0x28   : > { %v1484_v23 = vadd.f32 %v1483_v14, %v1482_v5  ;;  %v1493_v24 = vadd.f32 %v1492_v15, %v1491_v6  ;;  %v1510_v25 = vrot.slane %v1509_v16, 1  ;;  %v1527_v26 = vadd.f32 %v1526_v17, %v1525_v9 }
  0x29   : > { %v1502_v27 = vadd.f32 %v1501_v18, %v1500_v10  ;;  %v1519_v28 = vrot.slane %v1518_v19, 1  ;;  %v1535_v29 = vrot.slane %v1534_v20, 2  ;;  %v1542_v30 = vrot.slane %v1541_v21, 4 }
  0x2a   : > { %v1511_v32 = vadd.f32 %v1510_v25, %v1509_v16  ;;  %v1528_v33 = vrot.slane %v1527_v26, 1  ;;  %v2957_v34 = vsel %vm2956_vm1, %v1493_v24, %v1484_v23  ;;  %v3944_v35 = vunpack.c.l.bf16 %v3943_v22 }
  0x2b   : > { %v1520_v36 = vadd.f32 %v1519_v28, %v1518_v19  ;;  %v1536_v37 = vadd.f32 %v1535_v29, %v1534_v20  ;;  %v1543_v38 = vadd.f32 %v1542_v30, %v1541_v21  ;;  %v2959_v39 = vsel %vm2958_vm2, %v1502_v27, %v2957_v34 }
  0x2c   : > { %v1529_v42 = vadd.f32 %v1528_v33, %v1527_v26  ;;  %v2961_v43 = vsel %vm2960_vm3, %v1511_v32, %v2959_v39  ;;  %v3945_v44 = vunpack.c.h.bf16 %v3943_v22  ;;  %v3948_v45 = vunpack.c.l.bf16 %v4710_v31 }
  0x2d   : > { %v1537_v47 = vrot.slane %v1536_v37, 1  ;;  %v1544_v48 = vrot.slane %v1543_v38, 2  ;;  %v2963_v49 = vsel %vm2962_vm4, %v1520_v36, %v2961_v43  ;;  %v3949_v50 = vunpack.c.h.bf16 %v4710_v31 }
  0x2e   : > { %v2965_v53 = vsel %vm2964_vm5, %v1529_v42, %v2963_v49  ;;  %v3952_v54 = vunpack.c.l.bf16 %v4711_v40  ;;  %v3953_v55 = vunpack.c.h.bf16 %v4711_v40  ;;  %v3956_v56 = vunpack.c.l.bf16 %v4712_v41 }
  0x2f   : > { %v1538_v58 = vadd.f32 %v1537_v47, %v1536_v37  ;;  %v1545_v59 = vadd.f32 %v1544_v48, %v1543_v38  ;;  %v3957_v60 = vunpack.c.h.bf16 %v4712_v41  ;;  %v3960_v61 = vunpack.c.l.bf16 %v4713_v46 }
  0x30   : > { %v3961_v62 = vunpack.c.h.bf16 %v4713_v46  ;;  %v3964_v63 = vunpack.c.l.bf16 %v4714_v51  ;;  %v3965_v0 = vunpack.c.h.bf16 %v4714_v51  ;;  %v3968_v1 = vunpack.c.l.bf16 %v4715_v52 }
  0x31   : > { %v1546_v2 = vrot.slane %v1545_v59, 1  ;;  %v2967_v3 = vsel %vm2966_vm6, %v1538_v58, %v2965_v53  ;;  %v3969_v4 = vunpack.c.h.bf16 %v4715_v52  ;;  %v3972_v5 = vunpack.c.l.bf16 %v4716_v57 }
  0x32   : > { %v3973_v6 = vunpack.c.h.bf16 %v4716_v57  ;;  %v644_v7 = vsel %vm643_vm0, %v3944_v35, 0.0  ;;  %v645_v9 = vsel %vm643_vm0, %v3945_v44, 0.0  ;;  %v653_v10 = vsel %vm643_vm0, %v3948_v45, 0.0 }
  0x33   : > { %v1547_v11 = vadd.f32 %v1546_v2, %v1545_v59  ;;  %v646_v12 = vadd.f32 %v645_v9, %v644_v7  ;;  %v654_v13 = vsel %vm643_vm0, %v3949_v50, 0.0  ;;  %v662_v14 = vsel %vm643_vm0, %v3952_v54, 0.0  ;;  %v4780_v59 = vld [vmem:[%s5298_s14 + $0x40] sm:$0xff]  }
  0x34   : > { %v655_v15 = vadd.f32 %v654_v13, %v653_v10  ;;  %v663_v16 = vsel %vm643_vm0, %v3953_v55, 0.0  ;;  %v671_v17 = vsel %vm643_vm0, %v3956_v56, 0.0  ;;  %v672_v18 = vsel %vm643_vm0, %v3957_v60, 0.0 }
  0x35   : > { %v2969_v19 = vsel %vm2968_vm7, %v1547_v11, %v2967_v3  ;;  %v647_v20 = vrot.slane %v646_v12, 4  ;;  %v664_v21 = vadd.f32 %v663_v16, %v662_v14  ;;  %v673_v22 = vadd.f32 %v672_v18, %v671_v17  ;;  %v4782_v14 = vld [vmem:[%s5298_s14 + $0x50] sm:$0xff]  }
  0x36   : > { %4967 = vmatprep.mubr.msk.f32.mxu0 %vm643_vm0, %v2969_v19  ;;  %v656_v23 = vrot.slane %v655_v15, 4  ;;  %v680_v24 = vsel %vm643_vm0, %v3960_v61, 0.0  ;;  %v681_v25 = vsel %vm643_vm0, %v3961_v62, 0.0  ;;  %v689_v26 = vsel %vm643_vm0, %v3964_v63, 0.0  ;;  %v4783_v19 = vld [vmem:[%s5298_s14 + $0x58] sm:$0xff]  }
  0x37   : > { %v648_v27 = vadd.f32 %v647_v20, %v646_v12  ;;  %v665_v28 = vrot.slane %v664_v21, 4  ;;  %v674_v29 = vrot.slane %v673_v22, 4  ;;  %v682_v30 = vadd.f32 %v681_v25, %v680_v24  ;;  %v4784_v24 = vld [vmem:[%s5298_s14 + $0x60] sm:$0xff]   ;;  %v4785_v25 = vld [vmem:[%s5298_s14 + $0x68] sm:$0xff]  }
  0x38   : > { %v657_v31 = vadd.f32 %v656_v23, %v655_v15  ;;  %v690_v32 = vsel %vm643_vm0, %v3965_v0, 0.0  ;;  %v698_v33 = vsel %vm643_vm0, %v3968_v1, 0.0  ;;  %v699_v34 = vsel %vm643_vm0, %v3969_v4, 0.0  ;;  %v4781_v4 = vld [vmem:[%s5298_s14 + $0x48] sm:$0xff]  }
  0x39   : > { %v649_v35 = vrot.slane %v648_v27, 2  ;;  %v666_v36 = vadd.f32 %v665_v28, %v664_v21  ;;  %v675_v37 = vadd.f32 %v674_v29, %v673_v22  ;;  %v683_v38 = vrot.slane %v682_v30, 4 }
  0x3a   : > { %v658_v39 = vrot.slane %v657_v31, 2  ;;  %v691_v40 = vadd.f32 %v690_v32, %v689_v26  ;;  %v700_v41 = vadd.f32 %v699_v34, %v698_v33  ;;  %v707_v42 = vsel %vm643_vm0, %v3972_v5, 0.0 }
  0x3b   : > { %v650_v43 = vadd.f32 %v649_v35, %v648_v27  ;;  %v667_v44 = vrot.slane %v666_v36, 2  ;;  %v676_v45 = vrot.slane %v675_v37, 2  ;;  %v684_v46 = vadd.f32 %v683_v38, %v682_v30  ;;  %v4786_v30 = vld [vmem:[%s5298_s14 + $0x70] sm:$0xff]   ;;  %v4787_v35 = vld [vmem:[%s5298_s14 + $0x78] sm:$0xff]  }
  0x3c   : > { %v659_v47 = vadd.f32 %v658_v39, %v657_v31  ;;  %v692_v48 = vrot.slane %v691_v40, 4  ;;  %v701_v49 = vrot.slane %v700_v41, 4  ;;  %v708_v50 = vsel %vm643_vm0, %v3973_v6, 0.0 }
  0x3d   : > { %v651_v51 = vrot.slane %v650_v43, 1  ;;  %v668_v52 = vadd.f32 %v667_v44, %v666_v36  ;;  %v677_v53 = vadd.f32 %v676_v45, %v675_v37  ;;  %v685_v54 = vrot.slane %v684_v46, 2 }
  0x3e   : > { %v660_v55 = vrot.slane %v659_v47, 1  ;;  %v693_v56 = vadd.f32 %v692_v48, %v691_v40  ;;  %v702_v57 = vadd.f32 %v701_v49, %v700_v41  ;;  %v709_v58 = vadd.f32 %v708_v50, %v707_v42 }
  0x3f   : > { %v652_v60 = vadd.f32 %v651_v51, %v650_v43  ;;  %v669_v61 = vrot.slane %v668_v52, 1  ;;  %v678_v62 = vrot.slane %v677_v53, 1  ;;  %v686_v63 = vadd.f32 %v685_v54, %v684_v46 }
  0x40   : > { %v661_v0 = vadd.f32 %v660_v55, %v659_v47  ;;  %v694_v1 = vrot.slane %v693_v56, 2  ;;  %v703_v2 = vrot.slane %v702_v57, 2  ;;  %v710_v3 = vrot.slane %v709_v58, 4 }
  0x41   : > { %v670_v5 = vadd.f32 %v669_v61, %v668_v52  ;;  %v679_v6 = vadd.f32 %v678_v62, %v677_v53  ;;  %v687_v7 = vrot.slane %v686_v63, 1  ;;  %v4232_v9 = vunpack.c.l.bf16 %v4780_v59 }
  0x42   : > { %v695_v10 = vadd.f32 %v694_v1, %v693_v56  ;;  %v704_v11 = vadd.f32 %v703_v2, %v702_v57  ;;  %v711_v12 = vadd.f32 %v710_v3, %v709_v58  ;;  %v3204_v13 = vsel %vm2956_vm1, %v661_v0, %v652_v60 }
  0x43   : > { %v688_v15 = vadd.f32 %v687_v7, %v686_v63  ;;  %v3205_v16 = vsel %vm2958_vm2, %v670_v5, %v3204_v13  ;;  %v4233_v17 = vunpack.c.h.bf16 %v4780_v59  ;;  %v4236_v18 = vunpack.c.l.bf16 %v4781_v4 }
  0x44   : > { %v696_v20 = vrot.slane %v695_v10, 1  ;;  %v705_v21 = vrot.slane %v704_v11, 1  ;;  %v712_v22 = vrot.slane %v711_v12, 2  ;;  %v3206_v23 = vsel %vm2960_vm3, %v679_v6, %v3205_v16 }
  0x45   : > { %v3207_v26 = vsel %vm2962_vm4, %v688_v15, %v3206_v23  ;;  %v4237_v27 = vunpack.c.h.bf16 %v4781_v4  ;;  %v4240_v28 = vunpack.c.l.bf16 %v4782_v14  ;;  %v4241_v29 = vunpack.c.h.bf16 %v4782_v14 }
  0x46   : > { %v697_v31 = vadd.f32 %v696_v20, %v695_v10  ;;  %v706_v32 = vadd.f32 %v705_v21, %v704_v11  ;;  %v713_v33 = vadd.f32 %v712_v22, %v711_v12  ;;  %v4244_v34 = vunpack.c.l.bf16 %v4783_v19 }
  0x47   : > { %v4245_v36 = vunpack.c.h.bf16 %v4783_v19  ;;  %v4248_v37 = vunpack.c.l.bf16 %v4784_v24  ;;  %v4249_v38 = vunpack.c.h.bf16 %v4784_v24  ;;  %v4252_v39 = vunpack.c.l.bf16 %v4785_v25 }
  0x48   : > { %v714_v40 = vrot.slane %v713_v33, 1  ;;  %v3208_v41 = vsel %vm2964_vm5, %v697_v31, %v3207_v26  ;;  %v4253_v42 = vunpack.c.h.bf16 %v4785_v25  ;;  %v4256_v43 = vunpack.c.l.bf16 %v4786_v30 }
  0x49   : > { %v3209_v44 = vsel %vm2966_vm6, %v706_v32, %v3208_v41  ;;  %v4257_v45 = vunpack.c.h.bf16 %v4786_v30  ;;  %v4260_v46 = vunpack.c.l.bf16 %v4787_v35  ;;  %v4261_v47 = vunpack.c.h.bf16 %v4787_v35 }
  0x4a   : > { %v715_v48 = vadd.f32 %v714_v40, %v713_v33  ;;  %v1548_v49 = vsel %vm643_vm0, %v4232_v9, 0.0  ;;  %v1549_v50 = vsel %vm643_vm0, %v4233_v17, 0.0  ;;  %v1557_v51 = vsel %vm643_vm0, %v4236_v18, 0.0 }
  0x4b   : > { %v1550_v52 = vadd.f32 %v1549_v50, %v1548_v49  ;;  %v1558_v53 = vsel %vm643_vm0, %v4237_v27, 0.0  ;;  %v1566_v54 = vsel %vm643_vm0, %v4240_v28, 0.0  ;;  %v1567_v55 = vsel %vm643_vm0, %v4241_v29, 0.0  ;;  %v4718_v50 = vld [vmem:[%s5333_s22 + $0x48] sm:$0xff]  }
  0x4c   : > { %v3210_v56 = vsel %vm2968_vm7, %v715_v48, %v3209_v44  ;;  %v1559_v57 = vadd.f32 %v1558_v53, %v1557_v51  ;;  %v1568_v58 = vadd.f32 %v1567_v55, %v1566_v54  ;;  %v1575_v59 = vsel %vm643_vm0, %v4244_v34, 0.0  ;;  %v4719_v51 = vld [vmem:[%s5333_s22 + $0x50] sm:$0xff]  }
  0x4d   : > { %4987 = vmatprep.mubr.msk.f32.mxu1 %vm643_vm0, %v3210_v56  ;;  %v1551_v60 = vrot.slane %v1550_v52, 4  ;;  %v1576_v61 = vsel %vm643_vm0, %v4245_v36, 0.0  ;;  %v1584_v62 = vsel %vm643_vm0, %v4248_v37, 0.0  ;;  %v1585_v63 = vsel %vm643_vm0, %v4249_v38, 0.0  ;;  %v4717_v37 = vld [vmem:[%s5333_s22 + $0x40] sm:$0xff]  }
  0x4e   : > { %v1560_v0 = vrot.slane %v1559_v57, 4  ;;  %v1569_v1 = vrot.slane %v1568_v58, 4  ;;  %v1577_v2 = vadd.f32 %v1576_v61, %v1575_v59  ;;  %v1586_v3 = vadd.f32 %v1585_v63, %v1584_v62  ;;  %v4721_v61 = vld [vmem:[%s5333_s22 + $0x60] sm:$0xff]  }
  0x4f   : > { %v1552_v4 = vadd.f32 %v1551_v60, %v1550_v52  ;;  %v1593_v5 = vsel %vm643_vm0, %v4252_v39, 0.0  ;;  %v1594_v6 = vsel %vm643_vm0, %v4253_v42, 0.0  ;;  %v1602_v7 = vsel %vm643_vm0, %v4256_v43, 0.0  ;;  %v4720_v60 = vld [vmem:[%s5333_s22 + $0x58] sm:$0xff]  }
  0x50   : > { %v1561_v9 = vadd.f32 %v1560_v0, %v1559_v57  ;;  %v1570_v10 = vadd.f32 %v1569_v1, %v1568_v58  ;;  %v1578_v11 = vrot.slane %v1577_v2, 4  ;;  %v1587_v12 = vrot.slane %v1586_v3, 4 }
  0x51   : > { %v1553_v13 = vrot.slane %v1552_v4, 2  ;;  %v1595_v14 = vadd.f32 %v1594_v6, %v1593_v5  ;;  %v1603_v15 = vsel %vm643_vm0, %v4257_v45, 0.0  ;;  %v1611_v16 = vsel %vm643_vm0, %v4260_v46, 0.0  ;;  %v4722_v6 = vld [vmem:[%s5333_s22 + $0x68] sm:$0xff]  }
  0x52   : > { %v1562_v17 = vrot.slane %v1561_v9, 2  ;;  %v1571_v18 = vrot.slane %v1570_v10, 2  ;;  %v1579_v19 = vadd.f32 %v1578_v11, %v1577_v2  ;;  %v1588_v20 = vadd.f32 %v1587_v12, %v1586_v3 }
  0x53   : > { %v1554_v21 = vadd.f32 %v1553_v13, %v1552_v4  ;;  %v1596_v22 = vrot.slane %v1595_v14, 4  ;;  %v1604_v23 = vadd.f32 %v1603_v15, %v1602_v7  ;;  %v1612_v24 = vsel %vm643_vm0, %v4261_v47, 0.0  ;;  %v4723_v7 = vld [vmem:[%s5333_s22 + $0x70] sm:$0xff]   ;;  %v4724_v13 = vld [vmem:[%s5333_s22 + $0x78] sm:$0xff]  }
  0x54   : > { %v1563_v25 = vadd.f32 %v1562_v17, %v1561_v9  ;;  %v1572_v26 = vadd.f32 %v1571_v18, %v1570_v10  ;;  %v1580_v27 = vrot.slane %v1579_v19, 2  ;;  %v1589_v28 = vrot.slane %v1588_v20, 2 }
  0x55   : > { %v1555_v29 = vrot.slane %v1554_v21, 1  ;;  %v1597_v30 = vadd.f32 %v1596_v22, %v1595_v14  ;;  %v1605_v31 = vrot.slane %v1604_v23, 4  ;;  %v1613_v32 = vadd.f32 %v1612_v24, %v1611_v16 }
  0x56   : > { %v1564_v33 = vrot.slane %v1563_v25, 1  ;;  %v1573_v34 = vrot.slane %v1572_v26, 1  ;;  %v1581_v35 = vadd.f32 %v1580_v27, %v1579_v19  ;;  %v1590_v36 = vadd.f32 %v1589_v28, %v1588_v20 }
  0x57   : > { %v1556_v38 = vadd.f32 %v1555_v29, %v1554_v21  ;;  %v1598_v39 = vrot.slane %v1597_v30, 2  ;;  %v1606_v40 = vadd.f32 %v1605_v31, %v1604_v23  ;;  %v1614_v41 = vrot.slane %v1613_v32, 4 }
  0x58   : > { %v1565_v42 = vadd.f32 %v1564_v33, %v1563_v25  ;;  %v1574_v43 = vadd.f32 %v1573_v34, %v1572_v26  ;;  %v1582_v44 = vrot.slane %v1581_v35, 1  ;;  %v1591_v45 = vrot.slane %v1590_v36, 1  ;;  %v3383_v34 = vld [vmem:[%s6224_s5 + $0x10] sm:$0xff] }
  0x59   : > { %v1599_v46 = vadd.f32 %v1598_v39, %v1597_v30  ;;  %v1607_v47 = vrot.slane %v1606_v40, 2  ;;  %v1615_v48 = vadd.f32 %v1614_v41, %v1613_v32  ;;  %v3976_v49 = vunpack.c.l.bf16 %v4717_v37 }
  0x5a   : > { %v1583_v52 = vadd.f32 %v1582_v44, %v1581_v35  ;;  %v1592_v53 = vadd.f32 %v1591_v45, %v1590_v36  ;;  %v2970_v54 = vsel %vm2956_vm1, %v1565_v42, %v1556_v38  ;;  %v3977_v55 = vunpack.c.h.bf16 %v4717_v37 }
  0x5b   : > { %v1600_v56 = vrot.slane %v1599_v46, 1  ;;  %v1608_v57 = vadd.f32 %v1607_v47, %v1606_v40  ;;  %v1616_v58 = vrot.slane %v1615_v48, 2  ;;  %v2971_v59 = vsel %vm2958_vm2, %v1574_v43, %v2970_v54 }
  0x5c   : > { %v2972_v62 = vsel %vm2960_vm3, %v1583_v52, %v2971_v59  ;;  %v3980_v63 = vunpack.c.l.bf16 %v4718_v50  ;;  %v3981_v0 = vunpack.c.h.bf16 %v4718_v50  ;;  %v3984_v1 = vunpack.c.l.bf16 %v4719_v51 }
  0x5d   : > { %v1601_v2 = vadd.f32 %v1600_v56, %v1599_v46  ;;  %v1609_v3 = vrot.slane %v1608_v57, 1  ;;  %v1617_v4 = vadd.f32 %v1616_v58, %v1615_v48  ;;  %v2973_v5 = vsel %vm2962_vm4, %v1592_v53, %v2972_v62 }
  0x5e   : > { %v3985_v9 = vunpack.c.h.bf16 %v4719_v51  ;;  %v3988_v10 = vunpack.c.l.bf16 %v4720_v60  ;;  %v3989_v11 = vunpack.c.h.bf16 %v4720_v60  ;;  %v3992_v12 = vunpack.c.l.bf16 %v4721_v61 }
  0x5f   : > { %v1610_v14 = vadd.f32 %v1609_v3, %v1608_v57  ;;  %v1618_v15 = vrot.slane %v1617_v4, 1  ;;  %v2974_v16 = vsel %vm2964_vm5, %v1601_v2, %v2973_v5  ;;  %v3993_v17 = vunpack.c.h.bf16 %v4721_v61 }
  0x60   : > { %v3996_v18 = vunpack.c.l.bf16 %v4722_v6  ;;  %v3997_v19 = vunpack.c.h.bf16 %v4722_v6  ;;  %v4000_v20 = vunpack.c.l.bf16 %v4723_v7  ;;  %v4001_v21 = vunpack.c.h.bf16 %v4723_v7 }
  0x61   : > { %v1619_v22 = vadd.f32 %v1618_v15, %v1617_v4  ;;  %v2975_v23 = vsel %vm2966_vm6, %v1610_v14, %v2974_v16  ;;  %v4004_v24 = vunpack.c.l.bf16 %v4724_v13  ;;  %v4005_v25 = vunpack.c.h.bf16 %v4724_v13  ;;  %v4788_v15 = vld [vmem:[%s5298_s14 + $0x80] sm:$0xff]  }
  0x62   : > { %v716_v26 = vsel %vm643_vm0, %v3976_v49, 0.0  ;;  %v717_v27 = vsel %vm643_vm0, %v3977_v55, 0.0  ;;  %v725_v28 = vsel %vm643_vm0, %v3980_v63, 0.0  ;;  %v726_v29 = vsel %vm643_vm0, %v3981_v0, 0.0 }
  0x63   : > { %v2976_v30 = vsel %vm2968_vm7, %v1619_v22, %v2975_v23  ;;  %v718_v31 = vadd.f32 %v717_v27, %v716_v26  ;;  %v727_v32 = vadd.f32 %v726_v29, %v725_v28  ;;  %v734_v33 = vsel %vm643_vm0, %v3984_v1, 0.0 }
  0x64   : > { %4968 = vmatmul.mubr.msk.f32.vlgmr.msra.gmra.mxu0 %vm643_vm0, %v2976_v30  ;;  %v735_v35 = vsel %vm643_vm0, %v3985_v9, 0.0  ;;  %v743_v36 = vsel %vm643_vm0, %v3988_v10, 0.0  ;;  %v744_v37 = vsel %vm643_vm0, %v3989_v11, 0.0  ;;  %v752_v38 = vsel %vm643_vm0, %v3992_v12, 0.0 }
  0x65   : > { %v719_v39 = vrot.slane %v718_v31, 4  ;;  %v728_v40 = vrot.slane %v727_v32, 4  ;;  %v736_v41 = vadd.f32 %v735_v35, %v734_v33  ;;  %v745_v42 = vadd.f32 %v744_v37, %v743_v36  ;;  %5000 = vmatpush3.msra.mxu0 %v5303_v8  ;;  %v4790_v33 = vld [vmem:[%s5298_s14 + $0x90] sm:$0xff]  }
  0x66   : > { %v753_v43 = vsel %vm643_vm0, %v3993_v17, 0.0  ;;  %v761_v44 = vsel %vm643_vm0, %v3996_v18, 0.0  ;;  %v762_v45 = vsel %vm643_vm0, %v3997_v19, 0.0  ;;  %v770_v46 = vsel %vm643_vm0, %v4000_v20, 0.0  ;;  %5001 = vmatprep.subr.mxu0 %v3383_v34 }
  0x67   : > { %v720_v47 = vadd.f32 %v719_v39, %v718_v31  ;;  %v729_v48 = vadd.f32 %v728_v40, %v727_v32  ;;  %v737_v49 = vrot.slane %v736_v41, 4  ;;  %v746_v50 = vrot.slane %v745_v42, 4  ;;  %5002 = vmatpush3.msra.mxu0 %v3383_v34  ;;  %v4791_v34 = vld [vmem:[%s5298_s14 + $0x98] sm:$0xff]  }
  0x68   : > { %v754_v51 = vadd.f32 %v753_v43, %v752_v38  ;;  %v763_v52 = vadd.f32 %v762_v45, %v761_v44  ;;  %v771_v53 = vsel %vm643_vm0, %v4001_v21, 0.0  ;;  %v779_v8 = vsel %vm643_vm0, %v4004_v24, 0.0  ;;  %v4789_v24 = vld [vmem:[%s5298_s14 + $0x88] sm:$0xff]   ;;  %v4792_v43 = vld [vmem:[%s5298_s14 + $0xa0] sm:$0xff]  }
  0x69   : > { %v721_v54 = vrot.slane %v720_v47, 2  ;;  %v730_v55 = vrot.slane %v729_v48, 2  ;;  %v738_v56 = vadd.f32 %v737_v49, %v736_v41  ;;  %v747_v57 = vadd.f32 %v746_v50, %v745_v42  ;;  %v4793_v44 = vld [vmem:[%s5298_s14 + $0xa8] sm:$0xff]   ;;  %v4794_v49 = vld [vmem:[%s5298_s14 + $0xb0] sm:$0xff]  }
  0x6a   : > { %v755_v58 = vrot.slane %v754_v51, 4  ;;  %v764_v59 = vrot.slane %v763_v52, 4  ;;  %v772_v60 = vadd.f32 %v771_v53, %v770_v46  ;;  %v780_v61 = vsel %vm643_vm0, %v4005_v25, 0.0 }
  0x6b   : > { %v722_v62 = vadd.f32 %v721_v54, %v720_v47  ;;  %v731_v63 = vadd.f32 %v730_v55, %v729_v48  ;;  %v739_v0 = vrot.slane %v738_v56, 2  ;;  %v748_v1 = vrot.slane %v747_v57, 2 }
  0x6c   : > { %v756_v2 = vadd.f32 %v755_v58, %v754_v51  ;;  %v765_v3 = vadd.f32 %v764_v59, %v763_v52  ;;  %v773_v4 = vrot.slane %v772_v60, 4  ;;  %v781_v5 = vadd.f32 %v780_v61, %v779_v8  ;;  %v4795_v8 = vld [vmem:[%s5298_s14 + $0xb8] sm:$0xff]  }
  0x6d   : > { %v723_v6 = vrot.slane %v722_v62, 1  ;;  %v732_v7 = vrot.slane %v731_v63, 1  ;;  %v740_v9 = vadd.f32 %v739_v0, %v738_v56  ;;  %v749_v10 = vadd.f32 %v748_v1, %v747_v57 }
  0x6e   : > { %v757_v11 = vrot.slane %v756_v2, 2  ;;  %v766_v12 = vrot.slane %v765_v3, 2  ;;  %v774_v13 = vadd.f32 %v773_v4, %v772_v60  ;;  %v782_v14 = vrot.slane %v781_v5, 4 }
  0x6f   : > { %v724_v16 = vadd.f32 %v723_v6, %v722_v62  ;;  %v733_v17 = vadd.f32 %v732_v7, %v731_v63  ;;  %v741_v18 = vrot.slane %v740_v9, 1  ;;  %v750_v19 = vrot.slane %v749_v10, 1 }
  0x70   : > { %v758_v20 = vadd.f32 %v757_v11, %v756_v2  ;;  %v767_v21 = vadd.f32 %v766_v12, %v765_v3  ;;  %v775_v22 = vrot.slane %v774_v13, 2  ;;  %v783_v23 = vadd.f32 %v782_v14, %v781_v5 }
  0x71   : > { %v742_v25 = vadd.f32 %v741_v18, %v740_v9  ;;  %v751_v26 = vadd.f32 %v750_v19, %v749_v10  ;;  %v3211_v27 = vsel %vm2956_vm1, %v733_v17, %v724_v16  ;;  %v4264_v28 = vunpack.c.l.bf16 %v4788_v15 }
  0x72   : > { %v759_v29 = vrot.slane %v758_v20, 1  ;;  %v768_v30 = vrot.slane %v767_v21, 1  ;;  %v776_v31 = vadd.f32 %v775_v22, %v774_v13  ;;  %v784_v32 = vrot.slane %v783_v23, 2 }
  0x73   : > { %v3212_v35 = vsel %vm2958_vm2, %v742_v25, %v3211_v27  ;;  %v4265_v36 = vunpack.c.h.bf16 %v4788_v15  ;;  %v4268_v37 = vunpack.c.l.bf16 %v4789_v24  ;;  %v4269_v38 = vunpack.c.h.bf16 %v4789_v24 }
  0x74   : > { %v760_v39 = vadd.f32 %v759_v29, %v758_v20  ;;  %v769_v40 = vadd.f32 %v768_v30, %v767_v21  ;;  %v777_v41 = vrot.slane %v776_v31, 1  ;;  %v785_v42 = vadd.f32 %v784_v32, %v783_v23 }
  0x75   : > { %v3213_v45 = vsel %vm2960_vm3, %v751_v26, %v3212_v35  ;;  %v4272_v46 = vunpack.c.l.bf16 %v4790_v33  ;;  %v4273_v47 = vunpack.c.h.bf16 %v4790_v33  ;;  %v4276_v48 = vunpack.c.l.bf16 %v4791_v34 }
  0x76   : > { %v778_v50 = vadd.f32 %v777_v41, %v776_v31  ;;  %v786_v51 = vrot.slane %v785_v42, 1  ;;  %v3214_v52 = vsel %vm2962_vm4, %v760_v39, %v3213_v45  ;;  %v4277_v53 = vunpack.c.h.bf16 %v4791_v34 }
  0x77   : > { %v3215_v54 = vsel %vm2964_vm5, %v769_v40, %v3214_v52  ;;  %v4280_v55 = vunpack.c.l.bf16 %v4792_v43  ;;  %v4281_v56 = vunpack.c.h.bf16 %v4792_v43  ;;  %v4284_v57 = vunpack.c.l.bf16 %v4793_v44 }
  0x78   : > { %v787_v58 = vadd.f32 %v786_v51, %v785_v42  ;;  %v3216_v59 = vsel %vm2966_vm6, %v778_v50, %v3215_v54  ;;  %v4285_v60 = vunpack.c.h.bf16 %v4793_v44  ;;  %v4288_v61 = vunpack.c.l.bf16 %v4794_v49  ;;  %v4725_v54 = vld [vmem:[%s5333_s22 + $0x80] sm:$0xff]  }
  0x79   : > { %v4289_v62 = vunpack.c.h.bf16 %v4794_v49  ;;  %v4292_v63 = vunpack.c.l.bf16 %v4795_v8  ;;  %v4293_v0 = vunpack.c.h.bf16 %v4795_v8  ;;  %v1620_v1 = vsel %vm643_vm0, %v4264_v28, 0.0 }
  0x7a   : > { %v3217_v2 = vsel %vm2968_vm7, %v787_v58, %v3216_v59  ;;  %v1621_v3 = vsel %vm643_vm0, %v4265_v36, 0.0  ;;  %v1629_v4 = vsel %vm643_vm0, %v4268_v37, 0.0  ;;  %v1630_v5 = vsel %vm643_vm0, %v4269_v38, 0.0 }
  0x7b   : > { %4988 = vmatmul.mubr.msk.f32.vlgmr.msra.gmra.mxu1 %vm643_vm0, %v3217_v2  ;;  %v1622_v6 = vadd.f32 %v1621_v3, %v1620_v1  ;;  %v1631_v7 = vadd.f32 %v1630_v5, %v1629_v4  ;;  %v1638_v9 = vsel %vm643_vm0, %v4272_v46, 0.0  ;;  %v1639_v10 = vsel %vm643_vm0, %v4273_v47, 0.0 }
  0x7c   : > { %v1640_v11 = vadd.f32 %v1639_v10, %v1638_v9  ;;  %v1647_v12 = vsel %vm643_vm0, %v4276_v48, 0.0  ;;  %v1648_v13 = vsel %vm643_vm0, %v4277_v53, 0.0  ;;  %v1656_v14 = vsel %vm643_vm0, %v4280_v55, 0.0  ;;  %v4727_v9 = vld [vmem:[%s5333_s22 + $0x90] sm:$0xff]   ;;  %v4728_v10 = vld [vmem:[%s5333_s22 + $0x98] sm:$0xff]  }
  0x7d   : > { %v1623_v15 = vrot.slane %v1622_v6, 4  ;;  %v1632_v16 = vrot.slane %v1631_v7, 4  ;;  %v1649_v17 = vadd.f32 %v1648_v13, %v1647_v12  ;;  %v1657_v18 = vsel %vm643_vm0, %v4281_v56, 0.0 }
  0x7e   : > { %v1641_v19 = vrot.slane %v1640_v11, 4  ;;  %v1658_v20 = vadd.f32 %v1657_v18, %v1656_v14  ;;  %v1665_v21 = vsel %vm643_vm0, %v4284_v57, 0.0  ;;  %v1666_v22 = vsel %vm643_vm0, %v4285_v60, 0.0 }
  0x7f   : > { %v1624_v23 = vadd.f32 %v1623_v15, %v1622_v6  ;;  %v1633_v24 = vadd.f32 %v1632_v16, %v1631_v7  ;;  %v1650_v25 = vrot.slane %v1649_v17, 4  ;;  %v1667_v26 = vadd.f32 %v1666_v22, %v1665_v21  ;;  %v4729_v15 = vld [vmem:[%s5333_s22 + $0xa0] sm:$0xff]   ;;  %v3382_v16 = vld [vmem:[%s6224_s5 + $0x8] sm:$0xff]  ;;  %v4731_v22 = vld [vmem:[%s5333_s22 + $0xb0] sm:$0xff]  }
  0x80   : > { %v1642_v27 = vadd.f32 %v1641_v19, %v1640_v11  ;;  %v1659_v28 = vrot.slane %v1658_v20, 4  ;;  %v1674_v29 = vsel %vm643_vm0, %v4288_v61, 0.0  ;;  %v1675_v30 = vsel %vm643_vm0, %v4289_v62, 0.0  ;;  %v4730_v21 = vld [vmem:[%s5333_s22 + $0xa8] sm:$0xff]   ;;  %5003 = vmatprep.subr.mxu0 %v3382_v16 }
  0x81   : > { %v1625_v31 = vrot.slane %v1624_v23, 2  ;;  %v1634_v32 = vrot.slane %v1633_v24, 2  ;;  %v1651_v33 = vadd.f32 %v1650_v25, %v1649_v17  ;;  %v1668_v34 = vrot.slane %v1667_v26, 4  ;;  %5004 = vmatpush3.msra.mxu0 %v3382_v16 }
  0x82   : > { %v1643_v35 = vrot.slane %v1642_v27, 2  ;;  %v1660_v36 = vadd.f32 %v1659_v28, %v1658_v20  ;;  %v1676_v37 = vadd.f32 %v1675_v30, %v1674_v29  ;;  %v1683_v38 = vsel %vm643_vm0, %v4292_v63, 0.0  ;;  %v4726_v63 = vld [vmem:[%s5333_s22 + $0x88] sm:$0xff]  }
  0x83   : > { %v1626_v39 = vadd.f32 %v1625_v31, %v1624_v23  ;;  %v1635_v40 = vadd.f32 %v1634_v32, %v1633_v24  ;;  %v1652_v41 = vrot.slane %v1651_v33, 2  ;;  %v1669_v42 = vadd.f32 %v1668_v34, %v1667_v26 }
  0x84   : > { %v1644_v43 = vadd.f32 %v1643_v35, %v1642_v27  ;;  %v1661_v44 = vrot.slane %v1660_v36, 2  ;;  %v1677_v45 = vrot.slane %v1676_v37, 4  ;;  %v1684_v46 = vsel %vm643_vm0, %v4293_v0, 0.0  ;;  %v4732_v27 = vld [vmem:[%s5333_s22 + $0xb8] sm:$0xff]  }
  0x85   : > { %v1627_v47 = vrot.slane %v1626_v39, 1  ;;  %v1636_v48 = vrot.slane %v1635_v40, 1  ;;  %v1653_v49 = vadd.f32 %v1652_v41, %v1651_v33  ;;  %v1670_v50 = vrot.slane %v1669_v42, 2 }
  0x86   : > { %v1645_v51 = vrot.slane %v1644_v43, 1  ;;  %v1662_v52 = vadd.f32 %v1661_v44, %v1660_v36  ;;  %v1678_v53 = vadd.f32 %v1677_v45, %v1676_v37  ;;  %v1685_v8 = vadd.f32 %v1684_v46, %v1683_v38 }
  0x87   : > { %v1628_v55 = vadd.f32 %v1627_v47, %v1626_v39  ;;  %v1637_v56 = vadd.f32 %v1636_v48, %v1635_v40  ;;  %v1654_v57 = vrot.slane %v1653_v49, 1  ;;  %v1671_v58 = vadd.f32 %v1670_v50, %v1669_v42 }
  0x88   : > { %v1646_v59 = vadd.f32 %v1645_v51, %v1644_v43  ;;  %v1663_v60 = vrot.slane %v1662_v52, 1  ;;  %v1679_v61 = vrot.slane %v1678_v53, 2  ;;  %v1686_v62 = vrot.slane %v1685_v8, 4 }
  0x89   : > { %v1655_v0 = vadd.f32 %v1654_v57, %v1653_v49  ;;  %v1672_v1 = vrot.slane %v1671_v58, 1  ;;  %v2977_v2 = vsel %vm2956_vm1, %v1637_v56, %v1628_v55  ;;  %v4008_v3 = vunpack.c.l.bf16 %v4725_v54 }
  0x8a   : > { %v1664_v4 = vadd.f32 %v1663_v60, %v1662_v52  ;;  %v1680_v5 = vadd.f32 %v1679_v61, %v1678_v53  ;;  %v1687_v6 = vadd.f32 %v1686_v62, %v1685_v8  ;;  %v2978_v7 = vsel %vm2958_vm2, %v1646_v59, %v2977_v2 }
  0x8b   : > { %v1673_v11 = vadd.f32 %v1672_v1, %v1671_v58  ;;  %v2979_v12 = vsel %vm2960_vm3, %v1655_v0, %v2978_v7  ;;  %v4009_v13 = vunpack.c.h.bf16 %v4725_v54  ;;  %v4012_v14 = vunpack.c.l.bf16 %v4726_v63 }
  0x8c   : > { %v1681_v17 = vrot.slane %v1680_v5, 1  ;;  %v1688_v18 = vrot.slane %v1687_v6, 2  ;;  %v2980_v19 = vsel %vm2962_vm4, %v1664_v4, %v2979_v12  ;;  %v4013_v20 = vunpack.c.h.bf16 %v4726_v63 }
  0x8d   : > { %v2981_v23 = vsel %vm2964_vm5, %v1673_v11, %v2980_v19  ;;  %v4016_v24 = vunpack.c.l.bf16 %v4727_v9  ;;  %v4017_v25 = vunpack.c.h.bf16 %v4727_v9  ;;  %v4020_v26 = vunpack.c.l.bf16 %v4728_v10 }
  0x8e   : > { %v1682_v28 = vadd.f32 %v1681_v17, %v1680_v5  ;;  %v1689_v29 = vadd.f32 %v1688_v18, %v1687_v6  ;;  %v4021_v30 = vunpack.c.h.bf16 %v4728_v10  ;;  %v4024_v31 = vunpack.c.l.bf16 %v4729_v15 }
  0x8f   : > { %v4025_v32 = vunpack.c.h.bf16 %v4729_v15  ;;  %v4028_v33 = vunpack.c.l.bf16 %v4730_v21  ;;  %v4029_v34 = vunpack.c.h.bf16 %v4730_v21  ;;  %v4032_v35 = vunpack.c.l.bf16 %v4731_v22 }
  0x90   : > { %v1690_v36 = vrot.slane %v1689_v29, 1  ;;  %v2982_v37 = vsel %vm2966_vm6, %v1682_v28, %v2981_v23  ;;  %v4033_v38 = vunpack.c.h.bf16 %v4731_v22  ;;  %v4036_v39 = vunpack.c.l.bf16 %v4732_v27  ;;  %v4796_v28 = vld [vmem:[%s5298_s14 + $0xc0] sm:$0xff]  }
  0x91   : > { %v4037_v40 = vunpack.c.h.bf16 %v4732_v27  ;;  %v788_v41 = vsel %vm643_vm0, %v4008_v3, 0.0  ;;  %v789_v42 = vsel %vm643_vm0, %v4009_v13, 0.0  ;;  %v797_v43 = vsel %vm643_vm0, %v4012_v14, 0.0 }
  0x92   : > { %v1691_v44 = vadd.f32 %v1690_v36, %v1689_v29  ;;  %v790_v45 = vadd.f32 %v789_v42, %v788_v41  ;;  %v798_v46 = vsel %vm643_vm0, %v4013_v20, 0.0  ;;  %v806_v47 = vsel %vm643_vm0, %v4016_v24, 0.0 }
  0x93   : > { %v799_v48 = vadd.f32 %v798_v46, %v797_v43  ;;  %v807_v49 = vsel %vm643_vm0, %v4017_v25, 0.0  ;;  %v815_v50 = vsel %vm643_vm0, %v4020_v26, 0.0  ;;  %v816_v51 = vsel %vm643_vm0, %v4021_v30, 0.0  ;;  %v4798_v46 = vld [vmem:[%s5298_s14 + $0xd0] sm:$0xff]  }
  0x94   : > { %v2983_v52 = vsel %vm2968_vm7, %v1691_v44, %v2982_v37  ;;  %v791_v53 = vrot.slane %v790_v45, 4  ;;  %v808_v8 = vadd.f32 %v807_v49, %v806_v47  ;;  %v817_v54 = vadd.f32 %v816_v51, %v815_v50  ;;  %v4797_v37 = vld [vmem:[%s5298_s14 + $0xc8] sm:$0xff]   ;;  %v4799_v51 = vld [vmem:[%s5298_s14 + $0xd8] sm:$0xff]  }
  0x95   : > { %4970 = vmatprep.mubr.msk.f32.mxu0 %vm643_vm0, %v2983_v52  ;;  %v800_v55 = vrot.slane %v799_v48, 4  ;;  %v824_v56 = vsel %vm643_vm0, %v4024_v31, 0.0  ;;  %v825_v57 = vsel %vm643_vm0, %v4025_v32, 0.0  ;;  %v833_v58 = vsel %vm643_vm0, %v4028_v33, 0.0 }
  0x96   : > { %v792_v59 = vadd.f32 %v791_v53, %v790_v45  ;;  %v809_v60 = vrot.slane %v808_v8, 4  ;;  %v818_v61 = vrot.slane %v817_v54, 4  ;;  %v826_v62 = vadd.f32 %v825_v57, %v824_v56  ;;  %v4801_v56 = vld [vmem:[%s5298_s14 + $0xe8] sm:$0xff]  }
  0x97   : > { %v801_v63 = vadd.f32 %v800_v55, %v799_v48  ;;  %v834_v0 = vsel %vm643_vm0, %v4029_v34, 0.0  ;;  %v842_v1 = vsel %vm643_vm0, %v4032_v35, 0.0  ;;  %v843_v2 = vsel %vm643_vm0, %v4033_v38, 0.0  ;;  %v4800_v55 = vld [vmem:[%s5298_s14 + $0xe0] sm:$0xff]  }
  0x98   : > { %v793_v3 = vrot.slane %v792_v59, 2  ;;  %v810_v4 = vadd.f32 %v809_v60, %v808_v8  ;;  %v819_v5 = vadd.f32 %v818_v61, %v817_v54  ;;  %v827_v6 = vrot.slane %v826_v62, 4  ;;  %v4802_v61 = vld [vmem:[%s5298_s14 + $0xf0] sm:$0xff]  }
  0x99   : > { %v802_v7 = vrot.slane %v801_v63, 2  ;;  %v835_v9 = vadd.f32 %v834_v0, %v833_v58  ;;  %v844_v10 = vadd.f32 %v843_v2, %v842_v1  ;;  %v851_v11 = vsel %vm643_vm0, %v4036_v39, 0.0  ;;  %v4803_v2 = vld [vmem:[%s5298_s14 + $0xf8] sm:$0xff]  }
  0x9a   : > { %v794_v12 = vadd.f32 %v793_v3, %v792_v59  ;;  %v811_v13 = vrot.slane %v810_v4, 2  ;;  %v820_v14 = vrot.slane %v819_v5, 2  ;;  %v828_v15 = vadd.f32 %v827_v6, %v826_v62 }
  0x9b   : > { %v803_v16 = vadd.f32 %v802_v7, %v801_v63  ;;  %v836_v17 = vrot.slane %v835_v9, 4  ;;  %v845_v18 = vrot.slane %v844_v10, 4  ;;  %v852_v19 = vsel %vm643_vm0, %v4037_v40, 0.0 }
  0x9c   : > { %v795_v20 = vrot.slane %v794_v12, 1  ;;  %v812_v21 = vadd.f32 %v811_v13, %v810_v4  ;;  %v821_v22 = vadd.f32 %v820_v14, %v819_v5  ;;  %v829_v23 = vrot.slane %v828_v15, 2 }
  0x9d   : > { %v804_v24 = vrot.slane %v803_v16, 1  ;;  %v837_v25 = vadd.f32 %v836_v17, %v835_v9  ;;  %v846_v26 = vadd.f32 %v845_v18, %v844_v10  ;;  %v853_v27 = vadd.f32 %v852_v19, %v851_v11 }
  0x9e   : > { %v796_v29 = vadd.f32 %v795_v20, %v794_v12  ;;  %v813_v30 = vrot.slane %v812_v21, 1  ;;  %v822_v31 = vrot.slane %v821_v22, 1  ;;  %v830_v32 = vadd.f32 %v829_v23, %v828_v15 }
  0x9f   : > { %v805_v33 = vadd.f32 %v804_v24, %v803_v16  ;;  %v838_v34 = vrot.slane %v837_v25, 2  ;;  %v847_v35 = vrot.slane %v846_v26, 2  ;;  %v854_v36 = vrot.slane %v853_v27, 4 }
  0xa0   : > { %v814_v38 = vadd.f32 %v813_v30, %v812_v21  ;;  %v823_v39 = vadd.f32 %v822_v31, %v821_v22  ;;  %v831_v40 = vrot.slane %v830_v32, 1  ;;  %v4296_v41 = vunpack.c.l.bf16 %v4796_v28 }
  0xa1   : > { %v839_v42 = vadd.f32 %v838_v34, %v837_v25  ;;  %v848_v43 = vadd.f32 %v847_v35, %v846_v26  ;;  %v855_v44 = vadd.f32 %v854_v36, %v853_v27  ;;  %v3218_v45 = vsel %vm2956_vm1, %v805_v33, %v796_v29 }
  0xa2   : > { %v832_v47 = vadd.f32 %v831_v40, %v830_v32  ;;  %v3219_v48 = vsel %vm2958_vm2, %v814_v38, %v3218_v45  ;;  %v4297_v49 = vunpack.c.h.bf16 %v4796_v28  ;;  %v4300_v50 = vunpack.c.l.bf16 %v4797_v37 }
  0xa3   : > { %v840_v52 = vrot.slane %v839_v42, 1  ;;  %v849_v53 = vrot.slane %v848_v43, 1  ;;  %v856_v8 = vrot.slane %v855_v44, 2  ;;  %v3220_v54 = vsel %vm2960_vm3, %v823_v39, %v3219_v48 }
  0xa4   : > { %v3221_v57 = vsel %vm2962_vm4, %v832_v47, %v3220_v54  ;;  %v4301_v58 = vunpack.c.h.bf16 %v4797_v37  ;;  %v4304_v59 = vunpack.c.l.bf16 %v4798_v46  ;;  %v4305_v60 = vunpack.c.h.bf16 %v4798_v46 }
  0xa5   : > { %v841_v62 = vadd.f32 %v840_v52, %v839_v42  ;;  %v850_v63 = vadd.f32 %v849_v53, %v848_v43  ;;  %v857_v0 = vadd.f32 %v856_v8, %v855_v44  ;;  %v4308_v1 = vunpack.c.l.bf16 %v4799_v51 }
  0xa6   : > { %v4309_v3 = vunpack.c.h.bf16 %v4799_v51  ;;  %v4312_v4 = vunpack.c.l.bf16 %v4800_v55  ;;  %v4313_v5 = vunpack.c.h.bf16 %v4800_v55  ;;  %v4316_v6 = vunpack.c.l.bf16 %v4801_v56 }
  0xa7   : > { %v858_v7 = vrot.slane %v857_v0, 1  ;;  %v3222_v9 = vsel %vm2964_vm5, %v841_v62, %v3221_v57  ;;  %v4317_v10 = vunpack.c.h.bf16 %v4801_v56  ;;  %v4320_v11 = vunpack.c.l.bf16 %v4802_v61 }
  0xa8   : > { %v3223_v12 = vsel %vm2966_vm6, %v850_v63, %v3222_v9  ;;  %v4321_v13 = vunpack.c.h.bf16 %v4802_v61  ;;  %v4324_v14 = vunpack.c.l.bf16 %v4803_v2  ;;  %v4325_v15 = vunpack.c.h.bf16 %v4803_v2 }
  0xa9   : > { %v859_v16 = vadd.f32 %v858_v7, %v857_v0  ;;  %v1692_v17 = vsel %vm643_vm0, %v4296_v41, 0.0  ;;  %v1693_v18 = vsel %vm643_vm0, %v4297_v49, 0.0  ;;  %v1701_v19 = vsel %vm643_vm0, %v4300_v50, 0.0 }
  0xaa   : > { %v1694_v20 = vadd.f32 %v1693_v18, %v1692_v17  ;;  %v1702_v21 = vsel %vm643_vm0, %v4301_v58, 0.0  ;;  %v1710_v22 = vsel %vm643_vm0, %v4304_v59, 0.0  ;;  %v1711_v23 = vsel %vm643_vm0, %v4305_v60, 0.0  ;;  %v4734_v17 = vld [vmem:[%s5333_s22 + $0xc8] sm:$0xff]   ;;  %v4735_v18 = vld [vmem:[%s5333_s22 + $0xd0] sm:$0xff]  }
  0xab   : > { %v3224_v24 = vsel %vm2968_vm7, %v859_v16, %v3223_v12  ;;  %v1703_v25 = vadd.f32 %v1702_v21, %v1701_v19  ;;  %v1712_v26 = vadd.f32 %v1711_v23, %v1710_v22  ;;  %v1719_v27 = vsel %vm643_vm0, %v4308_v1, 0.0 }
  0xac   : > { %4990 = vmatprep.mubr.msk.f32.mxu1 %vm643_vm0, %v3224_v24  ;;  %v1695_v28 = vrot.slane %v1694_v20, 4  ;;  %v1720_v29 = vsel %vm643_vm0, %v4309_v3, 0.0  ;;  %v1728_v30 = vsel %vm643_vm0, %v4312_v4, 0.0  ;;  %v1729_v31 = vsel %vm643_vm0, %v4313_v5, 0.0  ;;  %v4733_v3 = vld [vmem:[%s5333_s22 + $0xc0] sm:$0xff]  }
  0xad   : > { %v1704_v32 = vrot.slane %v1703_v25, 4  ;;  %v1713_v33 = vrot.slane %v1712_v26, 4  ;;  %v1721_v34 = vadd.f32 %v1720_v29, %v1719_v27  ;;  %v1730_v35 = vadd.f32 %v1729_v31, %v1728_v30  ;;  %v4736_v27 = vld [vmem:[%s5333_s22 + $0xd8] sm:$0xff]  }
  0xae   : > { %v1696_v36 = vadd.f32 %v1695_v28, %v1694_v20  ;;  %v1737_v37 = vsel %vm643_vm0, %v4316_v6, 0.0  ;;  %v1738_v38 = vsel %vm643_vm0, %v4317_v10, 0.0  ;;  %v1746_v39 = vsel %vm643_vm0, %v4320_v11, 0.0  ;;  %v4737_v28 = vld [vmem:[%s5333_s22 + $0xe0] sm:$0xff]  }
  0xaf   : > { %v1705_v40 = vadd.f32 %v1704_v32, %v1703_v25  ;;  %v1714_v41 = vadd.f32 %v1713_v33, %v1712_v26  ;;  %v1722_v42 = vrot.slane %v1721_v34, 4  ;;  %v1731_v43 = vrot.slane %v1730_v35, 4 }
  0xb0   : > { %v1697_v44 = vrot.slane %v1696_v36, 2  ;;  %v1739_v45 = vadd.f32 %v1738_v38, %v1737_v37  ;;  %v1747_v46 = vsel %vm643_vm0, %v4321_v13, 0.0  ;;  %v1755_v47 = vsel %vm643_vm0, %v4324_v14, 0.0  ;;  %v4738_v37 = vld [vmem:[%s5333_s22 + $0xe8] sm:$0xff]   ;;  %v4739_v38 = vld [vmem:[%s5333_s22 + $0xf0] sm:$0xff]  }
  0xb1   : > { %v1706_v48 = vrot.slane %v1705_v40, 2  ;;  %v1715_v49 = vrot.slane %v1714_v41, 2  ;;  %v1723_v50 = vadd.f32 %v1722_v42, %v1721_v34  ;;  %v1732_v51 = vadd.f32 %v1731_v43, %v1730_v35  ;;  %v4740_v43 = vld [vmem:[%s5333_s22 + $0xf8] sm:$0xff]  }
  0xb2   : > { %v1698_v52 = vadd.f32 %v1697_v44, %v1696_v36  ;;  %v1740_v53 = vrot.slane %v1739_v45, 4  ;;  %v1748_v8 = vadd.f32 %v1747_v46, %v1746_v39  ;;  %v1756_v54 = vsel %vm643_vm0, %v4325_v15, 0.0 }
  0xb3   : > { %v1707_v55 = vadd.f32 %v1706_v48, %v1705_v40  ;;  %v1716_v56 = vadd.f32 %v1715_v49, %v1714_v41  ;;  %v1724_v57 = vrot.slane %v1723_v50, 2  ;;  %v1733_v58 = vrot.slane %v1732_v51, 2 }
  0xb4   : > { %v1699_v59 = vrot.slane %v1698_v52, 1  ;;  %v1741_v60 = vadd.f32 %v1740_v53, %v1739_v45  ;;  %v1749_v61 = vrot.slane %v1748_v8, 4  ;;  %v1757_v62 = vadd.f32 %v1756_v54, %v1755_v47 }
  0xb5   : > { %v1708_v63 = vrot.slane %v1707_v55, 1  ;;  %v1717_v0 = vrot.slane %v1716_v56, 1  ;;  %v1725_v1 = vadd.f32 %v1724_v57, %v1723_v50  ;;  %v1734_v2 = vadd.f32 %v1733_v58, %v1732_v51 }
  0xb6   : > { %v1700_v4 = vadd.f32 %v1699_v59, %v1698_v52  ;;  %v1742_v5 = vrot.slane %v1741_v60, 2  ;;  %v1750_v6 = vadd.f32 %v1749_v61, %v1748_v8  ;;  %v1758_v7 = vrot.slane %v1757_v62, 4 }
  0xb7   : > { %v1709_v9 = vadd.f32 %v1708_v63, %v1707_v55  ;;  %v1718_v10 = vadd.f32 %v1717_v0, %v1716_v56  ;;  %v1726_v11 = vrot.slane %v1725_v1, 1  ;;  %v1735_v12 = vrot.slane %v1734_v2, 1 }
  0xb8   : > { %v1743_v13 = vadd.f32 %v1742_v5, %v1741_v60  ;;  %v1751_v14 = vrot.slane %v1750_v6, 2  ;;  %v1759_v15 = vadd.f32 %v1758_v7, %v1757_v62  ;;  %v4040_v16 = vunpack.c.l.bf16 %v4733_v3 }
  0xb9   : > { %v1727_v19 = vadd.f32 %v1726_v11, %v1725_v1  ;;  %v1736_v20 = vadd.f32 %v1735_v12, %v1734_v2  ;;  %v2984_v21 = vsel %vm2956_vm1, %v1709_v9, %v1700_v4  ;;  %v4041_v22 = vunpack.c.h.bf16 %v4733_v3 }
  0xba   : > { %v1744_v23 = vrot.slane %v1743_v13, 1  ;;  %v1752_v24 = vadd.f32 %v1751_v14, %v1750_v6  ;;  %v1760_v25 = vrot.slane %v1759_v15, 2  ;;  %v2985_v26 = vsel %vm2958_vm2, %v1718_v10, %v2984_v21 }
  0xbb   : > { %v2986_v29 = vsel %vm2960_vm3, %v1727_v19, %v2985_v26  ;;  %v4044_v30 = vunpack.c.l.bf16 %v4734_v17  ;;  %v4045_v31 = vunpack.c.h.bf16 %v4734_v17  ;;  %v4048_v32 = vunpack.c.l.bf16 %v4735_v18 }
  0xbc   : > { %v1745_v33 = vadd.f32 %v1744_v23, %v1743_v13  ;;  %v1753_v34 = vrot.slane %v1752_v24, 1  ;;  %v1761_v35 = vadd.f32 %v1760_v25, %v1759_v15  ;;  %v2987_v36 = vsel %vm2962_vm4, %v1736_v20, %v2986_v29 }
  0xbd   : > { %v4049_v39 = vunpack.c.h.bf16 %v4735_v18  ;;  %v4052_v40 = vunpack.c.l.bf16 %v4736_v27  ;;  %v4053_v41 = vunpack.c.h.bf16 %v4736_v27  ;;  %v4056_v42 = vunpack.c.l.bf16 %v4737_v28 }
  0xbe   : > { %v1754_v44 = vadd.f32 %v1753_v34, %v1752_v24  ;;  %v1762_v45 = vrot.slane %v1761_v35, 1  ;;  %v2988_v46 = vsel %vm2964_vm5, %v1745_v33, %v2987_v36  ;;  %v4057_v47 = vunpack.c.h.bf16 %v4737_v28 }
  0xbf   : > { %v4060_v48 = vunpack.c.l.bf16 %v4738_v37  ;;  %v4061_v49 = vunpack.c.h.bf16 %v4738_v37  ;;  %v4064_v50 = vunpack.c.l.bf16 %v4739_v38  ;;  %v4065_v51 = vunpack.c.h.bf16 %v4739_v38 }
  0xc0   : > { %v1763_v52 = vadd.f32 %v1762_v45, %v1761_v35  ;;  %v2989_v53 = vsel %vm2966_vm6, %v1754_v44, %v2988_v46  ;;  %v4068_v8 = vunpack.c.l.bf16 %v4740_v43  ;;  %v4069_v54 = vunpack.c.h.bf16 %v4740_v43  ;;  %v4804_v44 = vld [vmem:[%s5298_s14 + $0x100] sm:$0xff]  }
  0xc1   : > { %v860_v55 = vsel %vm643_vm0, %v4040_v16, 0.0  ;;  %v861_v56 = vsel %vm643_vm0, %v4041_v22, 0.0  ;;  %v869_v57 = vsel %vm643_vm0, %v4044_v30, 0.0  ;;  %v870_v58 = vsel %vm643_vm0, %v4045_v31, 0.0 }
  0xc2   : > { %v2990_v59 = vsel %vm2968_vm7, %v1763_v52, %v2989_v53  ;;  %v862_v60 = vadd.f32 %v861_v56, %v860_v55  ;;  %v871_v61 = vadd.f32 %v870_v58, %v869_v57  ;;  %v878_v62 = vsel %vm643_vm0, %v4048_v32, 0.0  ;;  %v4805_v53 = vld [vmem:[%s5298_s14 + $0x108] sm:$0xff]  }
  0xc3   : > { %4971 = vmatmul.mubr.msk.f32.gmra.mxu0 %vm643_vm0, %v2990_v59  ;;  %v879_v63 = vsel %vm643_vm0, %v4049_v39, 0.0  ;;  %v887_v0 = vsel %vm643_vm0, %v4052_v40, 0.0  ;;  %v888_v1 = vsel %vm643_vm0, %v4053_v41, 0.0  ;;  %v896_v2 = vsel %vm643_vm0, %v4056_v42, 0.0 }
  0xc4   : > { %v863_v3 = vrot.slane %v862_v60, 4  ;;  %v872_v4 = vrot.slane %v871_v61, 4  ;;  %v880_v5 = vadd.f32 %v879_v63, %v878_v62  ;;  %v889_v6 = vadd.f32 %v888_v1, %v887_v0  ;;  %v4807_v62 = vld [vmem:[%s5298_s14 + $0x118] sm:$0xff]  }
  0xc5   : > { %v897_v7 = vsel %vm643_vm0, %v4057_v47, 0.0  ;;  %v905_v9 = vsel %vm643_vm0, %v4060_v48, 0.0  ;;  %v906_v10 = vsel %vm643_vm0, %v4061_v49, 0.0  ;;  %v914_v11 = vsel %vm643_vm0, %v4064_v50, 0.0 }
  0xc6   : > { %v864_v12 = vadd.f32 %v863_v3, %v862_v60  ;;  %v873_v13 = vadd.f32 %v872_v4, %v871_v61  ;;  %v881_v14 = vrot.slane %v880_v5, 4  ;;  %v890_v15 = vrot.slane %v889_v6, 4  ;;  %v4806_v61 = vld [vmem:[%s5298_s14 + $0x110] sm:$0xff]  }
  0xc7   : > { %v898_v16 = vadd.f32 %v897_v7, %v896_v2  ;;  %v907_v17 = vadd.f32 %v906_v10, %v905_v9  ;;  %v915_v18 = vsel %vm643_vm0, %v4065_v51, 0.0  ;;  %v923_v19 = vsel %vm643_vm0, %v4068_v8, 0.0  ;;  %v4808_v7 = vld [vmem:[%s5298_s14 + $0x120] sm:$0xff]   ;;  %v4809_v9 = vld [vmem:[%s5298_s14 + $0x128] sm:$0xff]  }
  0xc8   : > { %v865_v20 = vrot.slane %v864_v12, 2  ;;  %v874_v21 = vrot.slane %v873_v13, 2  ;;  %v882_v22 = vadd.f32 %v881_v14, %v880_v5  ;;  %v891_v23 = vadd.f32 %v890_v15, %v889_v6  ;;  %v4810_v14 = vld [vmem:[%s5298_s14 + $0x130] sm:$0xff]  }
  0xc9   : > { %v899_v24 = vrot.slane %v898_v16, 4  ;;  %v908_v25 = vrot.slane %v907_v17, 4  ;;  %v916_v26 = vadd.f32 %v915_v18, %v914_v11  ;;  %v924_v27 = vsel %vm643_vm0, %v4069_v54, 0.0 }
  0xca   : > { %v866_v28 = vadd.f32 %v865_v20, %v864_v12  ;;  %v875_v29 = vadd.f32 %v874_v21, %v873_v13  ;;  %v883_v30 = vrot.slane %v882_v22, 2  ;;  %v892_v31 = vrot.slane %v891_v23, 2 }
  0xcb   : > { %v900_v32 = vadd.f32 %v899_v24, %v898_v16  ;;  %v909_v33 = vadd.f32 %v908_v25, %v907_v17  ;;  %v917_v34 = vrot.slane %v916_v26, 4  ;;  %v925_v35 = vadd.f32 %v924_v27, %v923_v19  ;;  %v4811_v19 = vld [vmem:[%s5298_s14 + $0x138] sm:$0xff]  }
  0xcc   : > { %v867_v36 = vrot.slane %v866_v28, 1  ;;  %v876_v37 = vrot.slane %v875_v29, 1  ;;  %v884_v38 = vadd.f32 %v883_v30, %v882_v22  ;;  %v893_v39 = vadd.f32 %v892_v31, %v891_v23 }
  0xcd   : > { %v901_v40 = vrot.slane %v900_v32, 2  ;;  %v910_v41 = vrot.slane %v909_v33, 2  ;;  %v918_v42 = vadd.f32 %v917_v34, %v916_v26  ;;  %v926_v43 = vrot.slane %v925_v35, 4 }
  0xce   : > { %v868_v45 = vadd.f32 %v867_v36, %v866_v28  ;;  %v877_v46 = vadd.f32 %v876_v37, %v875_v29  ;;  %v885_v47 = vrot.slane %v884_v38, 1  ;;  %v894_v48 = vrot.slane %v893_v39, 1 }
  0xcf   : > { %v902_v49 = vadd.f32 %v901_v40, %v900_v32  ;;  %v911_v50 = vadd.f32 %v910_v41, %v909_v33  ;;  %v919_v51 = vrot.slane %v918_v42, 2  ;;  %v927_v52 = vadd.f32 %v926_v43, %v925_v35 }
  0xd0   : > { %v886_v8 = vadd.f32 %v885_v47, %v884_v38  ;;  %v895_v54 = vadd.f32 %v894_v48, %v893_v39  ;;  %v3225_v55 = vsel %vm2956_vm1, %v877_v46, %v868_v45  ;;  %v4328_v56 = vunpack.c.l.bf16 %v4804_v44 }
  0xd1   : > { %v903_v57 = vrot.slane %v902_v49, 1  ;;  %v912_v58 = vrot.slane %v911_v50, 1  ;;  %v920_v59 = vadd.f32 %v919_v51, %v918_v42  ;;  %v928_v60 = vrot.slane %v927_v52, 2 }
  0xd2   : > { %v3226_v63 = vsel %vm2958_vm2, %v886_v8, %v3225_v55  ;;  %v4329_v0 = vunpack.c.h.bf16 %v4804_v44  ;;  %v4332_v1 = vunpack.c.l.bf16 %v4805_v53  ;;  %v4333_v2 = vunpack.c.h.bf16 %v4805_v53 }
  0xd3   : > { %v904_v3 = vadd.f32 %v903_v57, %v902_v49  ;;  %v913_v4 = vadd.f32 %v912_v58, %v911_v50  ;;  %v921_v5 = vrot.slane %v920_v59, 1  ;;  %v929_v6 = vadd.f32 %v928_v60, %v927_v52 }
  0xd4   : > { %v3227_v10 = vsel %vm2960_vm3, %v895_v54, %v3226_v63  ;;  %v4336_v11 = vunpack.c.l.bf16 %v4806_v61  ;;  %v4337_v12 = vunpack.c.h.bf16 %v4806_v61  ;;  %v4340_v13 = vunpack.c.l.bf16 %v4807_v62 }
  0xd5   : > { %v922_v15 = vadd.f32 %v921_v5, %v920_v59  ;;  %v930_v16 = vrot.slane %v929_v6, 1  ;;  %v3228_v17 = vsel %vm2962_vm4, %v904_v3, %v3227_v10  ;;  %v4341_v18 = vunpack.c.h.bf16 %v4807_v62 }
  0xd6   : > { %v3229_v20 = vsel %vm2964_vm5, %v913_v4, %v3228_v17  ;;  %v4344_v21 = vunpack.c.l.bf16 %v4808_v7  ;;  %v4345_v22 = vunpack.c.h.bf16 %v4808_v7  ;;  %v4348_v23 = vunpack.c.l.bf16 %v4809_v9 }
  0xd7   : > { %v931_v24 = vadd.f32 %v930_v16, %v929_v6  ;;  %v3230_v25 = vsel %vm2966_vm6, %v922_v15, %v3229_v20  ;;  %v4349_v26 = vunpack.c.h.bf16 %v4809_v9  ;;  %v4352_v27 = vunpack.c.l.bf16 %v4810_v14  ;;  %v4741_v20 = vld [vmem:[%s5333_s22 + $0x100] sm:$0xff]  }
  0xd8   : > { %v4353_v28 = vunpack.c.h.bf16 %v4810_v14  ;;  %v4356_v29 = vunpack.c.l.bf16 %v4811_v19  ;;  %v4357_v30 = vunpack.c.h.bf16 %v4811_v19  ;;  %v1764_v31 = vsel %vm643_vm0, %v4328_v56, 0.0 }
  0xd9   : > { %v3231_v32 = vsel %vm2968_vm7, %v931_v24, %v3230_v25  ;;  %v1765_v33 = vsel %vm643_vm0, %v4329_v0, 0.0  ;;  %v1773_v34 = vsel %vm643_vm0, %v4332_v1, 0.0  ;;  %v1774_v35 = vsel %vm643_vm0, %v4333_v2, 0.0 }
  0xda   : > { %4991 = vmatmul.mubr.msk.f32.gmra.mxu1 %vm643_vm0, %v3231_v32  ;;  %v1766_v36 = vadd.f32 %v1765_v33, %v1764_v31  ;;  %v1775_v37 = vadd.f32 %v1774_v35, %v1773_v34  ;;  %v1782_v38 = vsel %vm643_vm0, %v4336_v11, 0.0  ;;  %v1783_v39 = vsel %vm643_vm0, %v4337_v12, 0.0 }
  0xdb   : > { %v1784_v40 = vadd.f32 %v1783_v39, %v1782_v38  ;;  %v1791_v41 = vsel %vm643_vm0, %v4340_v13, 0.0  ;;  %v1792_v42 = vsel %vm643_vm0, %v4341_v18, 0.0  ;;  %v1800_v43 = vsel %vm643_vm0, %v4344_v21, 0.0  ;;  %v4743_v38 = vld [vmem:[%s5333_s22 + $0x110] sm:$0xff]   ;;  %v4744_v39 = vld [vmem:[%s5333_s22 + $0x118] sm:$0xff]  }
  0xdc   : > { %v1767_v44 = vrot.slane %v1766_v36, 4  ;;  %v1776_v45 = vrot.slane %v1775_v37, 4  ;;  %v1793_v46 = vadd.f32 %v1792_v42, %v1791_v41  ;;  %v1801_v47 = vsel %vm643_vm0, %v4345_v22, 0.0 }
  0xdd   : > { %v1785_v48 = vrot.slane %v1784_v40, 4  ;;  %v1802_v49 = vadd.f32 %v1801_v47, %v1800_v43  ;;  %v1809_v50 = vsel %vm643_vm0, %v4348_v23, 0.0  ;;  %v1810_v51 = vsel %vm643_vm0, %v4349_v26, 0.0 }
  0xde   : > { %v1768_v52 = vadd.f32 %v1767_v44, %v1766_v36  ;;  %v1777_v53 = vadd.f32 %v1776_v45, %v1775_v37  ;;  %v1794_v8 = vrot.slane %v1793_v46, 4  ;;  %v1811_v54 = vadd.f32 %v1810_v51, %v1809_v50  ;;  %v4745_v44 = vld [vmem:[%s5333_s22 + $0x120] sm:$0xff]   ;;  %v4746_v50 = vld [vmem:[%s5333_s22 + $0x128] sm:$0xff]   ;;  %v4747_v51 = vld [vmem:[%s5333_s22 + $0x130] sm:$0xff]  }
  0xdf   : > { %v1786_v55 = vadd.f32 %v1785_v48, %v1784_v40  ;;  %v1803_v56 = vrot.slane %v1802_v49, 4  ;;  %v1818_v57 = vsel %vm643_vm0, %v4352_v27, 0.0  ;;  %v1819_v58 = vsel %vm643_vm0, %v4353_v28, 0.0  ;;  %v3381_v45 = vld [vmem:[%s6224_s5] sm:$0xff] }
  0xe0   : > { %v1769_v59 = vrot.slane %v1768_v52, 2  ;;  %v1778_v60 = vrot.slane %v1777_v53, 2  ;;  %v1795_v61 = vadd.f32 %v1794_v8, %v1793_v46  ;;  %v1812_v62 = vrot.slane %v1811_v54, 4  ;;  %5005 = vmatprep.subr.mxu0 %v3381_v45 }
  0xe1   : > { %v1787_v63 = vrot.slane %v1786_v55, 2  ;;  %v1804_v0 = vadd.f32 %v1803_v56, %v1802_v49  ;;  %v1820_v1 = vadd.f32 %v1819_v58, %v1818_v57  ;;  %v1827_v2 = vsel %vm643_vm0, %v4356_v29, 0.0  ;;  %v4742_v29 = vld [vmem:[%s5333_s22 + $0x108] sm:$0xff]   ;;  %5006 = vmatpush3.msra.mxu0 %v3381_v45 }
  0xe2   : > { %v1770_v3 = vadd.f32 %v1769_v59, %v1768_v52  ;;  %v1779_v4 = vadd.f32 %v1778_v60, %v1777_v53  ;;  %v1796_v5 = vrot.slane %v1795_v61, 2  ;;  %v1813_v6 = vadd.f32 %v1812_v62, %v1811_v54 }
  0xe3   : > { %v1788_v7 = vadd.f32 %v1787_v63, %v1786_v55  ;;  %v1805_v9 = vrot.slane %v1804_v0, 2  ;;  %v1821_v10 = vrot.slane %v1820_v1, 4  ;;  %v1828_v11 = vsel %vm643_vm0, %v4357_v30, 0.0  ;;  %v4748_v55 = vld [vmem:[%s5333_s22 + $0x138] sm:$0xff]  }
  0xe4   : > { %v1771_v12 = vrot.slane %v1770_v3, 1  ;;  %v1780_v13 = vrot.slane %v1779_v4, 1  ;;  %v1797_v14 = vadd.f32 %v1796_v5, %v1795_v61  ;;  %v1814_v15 = vrot.slane %v1813_v6, 2 }
  0xe5   : > { %v1789_v16 = vrot.slane %v1788_v7, 1  ;;  %v1806_v17 = vadd.f32 %v1805_v9, %v1804_v0  ;;  %v1822_v18 = vadd.f32 %v1821_v10, %v1820_v1  ;;  %v1829_v19 = vadd.f32 %v1828_v11, %v1827_v2 }
  0xe6   : > { %v1772_v21 = vadd.f32 %v1771_v12, %v1770_v3  ;;  %v1781_v22 = vadd.f32 %v1780_v13, %v1779_v4  ;;  %v1798_v23 = vrot.slane %v1797_v14, 1  ;;  %v1815_v24 = vadd.f32 %v1814_v15, %v1813_v6 }
  0xe7   : > { %v1790_v25 = vadd.f32 %v1789_v16, %v1788_v7  ;;  %v1807_v26 = vrot.slane %v1806_v17, 1  ;;  %v1823_v27 = vrot.slane %v1822_v18, 2  ;;  %v1830_v28 = vrot.slane %v1829_v19, 4 }
  0xe8   : > { %v1799_v30 = vadd.f32 %v1798_v23, %v1797_v14  ;;  %v1816_v31 = vrot.slane %v1815_v24, 1  ;;  %v2991_v32 = vsel %vm2956_vm1, %v1781_v22, %v1772_v21  ;;  %v4072_v33 = vunpack.c.l.bf16 %v4741_v20 }
  0xe9   : > { %v1808_v34 = vadd.f32 %v1807_v26, %v1806_v17  ;;  %v1824_v35 = vadd.f32 %v1823_v27, %v1822_v18  ;;  %v1831_v36 = vadd.f32 %v1830_v28, %v1829_v19  ;;  %v2992_v37 = vsel %vm2958_vm2, %v1790_v25, %v2991_v32 }
  0xea   : > { %v1817_v40 = vadd.f32 %v1816_v31, %v1815_v24  ;;  %v2993_v41 = vsel %vm2960_vm3, %v1799_v30, %v2992_v37  ;;  %v4073_v42 = vunpack.c.h.bf16 %v4741_v20  ;;  %v4076_v43 = vunpack.c.l.bf16 %v4742_v29 }
  0xeb   : > { %v1825_v46 = vrot.slane %v1824_v35, 1  ;;  %v1832_v47 = vrot.slane %v1831_v36, 2  ;;  %v2994_v48 = vsel %vm2962_vm4, %v1808_v34, %v2993_v41  ;;  %v4077_v49 = vunpack.c.h.bf16 %v4742_v29 }
  0xec   : > { %v2995_v52 = vsel %vm2964_vm5, %v1817_v40, %v2994_v48  ;;  %v4080_v53 = vunpack.c.l.bf16 %v4743_v38  ;;  %v4081_v8 = vunpack.c.h.bf16 %v4743_v38  ;;  %v4084_v54 = vunpack.c.l.bf16 %v4744_v39 }
  0xed   : > { %v1826_v56 = vadd.f32 %v1825_v46, %v1824_v35  ;;  %v1833_v57 = vadd.f32 %v1832_v47, %v1831_v36  ;;  %v4085_v58 = vunpack.c.h.bf16 %v4744_v39  ;;  %v4088_v59 = vunpack.c.l.bf16 %v4745_v44 }
  0xee   : > { %v4089_v60 = vunpack.c.h.bf16 %v4745_v44  ;;  %v4092_v61 = vunpack.c.l.bf16 %v4746_v50  ;;  %v4093_v62 = vunpack.c.h.bf16 %v4746_v50  ;;  %v4096_v63 = vunpack.c.l.bf16 %v4747_v51 }
  0xef   : > { %v1834_v0 = vrot.slane %v1833_v57, 1  ;;  %v2996_v1 = vsel %vm2966_vm6, %v1826_v56, %v2995_v52  ;;  %v4097_v2 = vunpack.c.h.bf16 %v4747_v51  ;;  %v4100_v3 = vunpack.c.l.bf16 %v4748_v55  ;;  %v4812_v56 = vld [vmem:[%s5298_s14 + $0x140] sm:$0xff]  }
  0xf0   : > { %v4101_v4 = vunpack.c.h.bf16 %v4748_v55  ;;  %v932_v5 = vsel %vm643_vm0, %v4072_v33, 0.0  ;;  %v933_v6 = vsel %vm643_vm0, %v4073_v42, 0.0  ;;  %v941_v7 = vsel %vm643_vm0, %v4076_v43, 0.0 }
  0xf1   : > { %v1835_v9 = vadd.f32 %v1834_v0, %v1833_v57  ;;  %v934_v10 = vadd.f32 %v933_v6, %v932_v5  ;;  %v942_v11 = vsel %vm643_vm0, %v4077_v49, 0.0  ;;  %v950_v12 = vsel %vm643_vm0, %v4080_v53, 0.0 }
  0xf2   : > { %v943_v13 = vadd.f32 %v942_v11, %v941_v7  ;;  %v951_v14 = vsel %vm643_vm0, %v4081_v8, 0.0  ;;  %v959_v15 = vsel %vm643_vm0, %v4084_v54, 0.0  ;;  %v960_v16 = vsel %vm643_vm0, %v4085_v58, 0.0  ;;  %v4814_v11 = vld [vmem:[%s5298_s14 + $0x150] sm:$0xff]  }
  0xf3   : > { %v2997_v17 = vsel %vm2968_vm7, %v1835_v9, %v2996_v1  ;;  %v935_v18 = vrot.slane %v934_v10, 4  ;;  %v952_v19 = vadd.f32 %v951_v14, %v950_v12  ;;  %v961_v20 = vadd.f32 %v960_v16, %v959_v15  ;;  %v4813_v1 = vld [vmem:[%s5298_s14 + $0x148] sm:$0xff]   ;;  %v4815_v16 = vld [vmem:[%s5298_s14 + $0x158] sm:$0xff]  }
  0xf4   : > { %4973 = vmatprep.mubr.msk.f32.mxu0 %vm643_vm0, %v2997_v17  ;;  %v944_v21 = vrot.slane %v943_v13, 4  ;;  %v968_v22 = vsel %vm643_vm0, %v4088_v59, 0.0  ;;  %v969_v23 = vsel %vm643_vm0, %v4089_v60, 0.0  ;;  %v977_v24 = vsel %vm643_vm0, %v4092_v61, 0.0 }
  0xf5   : > { %v936_v25 = vadd.f32 %v935_v18, %v934_v10  ;;  %v953_v26 = vrot.slane %v952_v19, 4  ;;  %v962_v27 = vrot.slane %v961_v20, 4  ;;  %v970_v28 = vadd.f32 %v969_v23, %v968_v22  ;;  %v4817_v22 = vld [vmem:[%s5298_s14 + $0x168] sm:$0xff]  }
  0xf6   : > { %v945_v29 = vadd.f32 %v944_v21, %v943_v13  ;;  %v978_v30 = vsel %vm643_vm0, %v4093_v62, 0.0  ;;  %v986_v31 = vsel %vm643_vm0, %v4096_v63, 0.0  ;;  %v987_v32 = vsel %vm643_vm0, %v4097_v2, 0.0  ;;  %v4816_v21 = vld [vmem:[%s5298_s14 + $0x160] sm:$0xff]  }
  0xf7   : > { %v937_v33 = vrot.slane %v936_v25, 2  ;;  %v954_v34 = vadd.f32 %v953_v26, %v952_v19  ;;  %v963_v35 = vadd.f32 %v962_v27, %v961_v20  ;;  %v971_v36 = vrot.slane %v970_v28, 4  ;;  %v4818_v27 = vld [vmem:[%s5298_s14 + $0x170] sm:$0xff]  }
  0xf8   : > { %v946_v37 = vrot.slane %v945_v29, 2  ;;  %v979_v38 = vadd.f32 %v978_v30, %v977_v24  ;;  %v988_v39 = vadd.f32 %v987_v32, %v986_v31  ;;  %v995_v40 = vsel %vm643_vm0, %v4100_v3, 0.0  ;;  %v4819_v32 = vld [vmem:[%s5298_s14 + $0x178] sm:$0xff]  }
  0xf9   : > { %v938_v41 = vadd.f32 %v937_v33, %v936_v25  ;;  %v955_v42 = vrot.slane %v954_v34, 2  ;;  %v964_v43 = vrot.slane %v963_v35, 2  ;;  %v972_v44 = vadd.f32 %v971_v36, %v970_v28 }
  0xfa   : > { %v947_v45 = vadd.f32 %v946_v37, %v945_v29  ;;  %v980_v46 = vrot.slane %v979_v38, 4  ;;  %v989_v47 = vrot.slane %v988_v39, 4  ;;  %v996_v48 = vsel %vm643_vm0, %v4101_v4, 0.0 }
  0xfb   : > { %v939_v49 = vrot.slane %v938_v41, 1  ;;  %v956_v50 = vadd.f32 %v955_v42, %v954_v34  ;;  %v965_v51 = vadd.f32 %v964_v43, %v963_v35  ;;  %v973_v52 = vrot.slane %v972_v44, 2 }
  0xfc   : > { %v948_v53 = vrot.slane %v947_v45, 1  ;;  %v981_v8 = vadd.f32 %v980_v46, %v979_v38  ;;  %v990_v54 = vadd.f32 %v989_v47, %v988_v39  ;;  %v997_v55 = vadd.f32 %v996_v48, %v995_v40 }
  0xfd   : > { %v940_v57 = vadd.f32 %v939_v49, %v938_v41  ;;  %v957_v58 = vrot.slane %v956_v50, 1  ;;  %v966_v59 = vrot.slane %v965_v51, 1  ;;  %v974_v60 = vadd.f32 %v973_v52, %v972_v44 }
  0xfe   : > { %v949_v61 = vadd.f32 %v948_v53, %v947_v45  ;;  %v982_v62 = vrot.slane %v981_v8, 2  ;;  %v991_v63 = vrot.slane %v990_v54, 2  ;;  %v998_v0 = vrot.slane %v997_v55, 4 }
  0xff   : > { %v958_v2 = vadd.f32 %v957_v58, %v956_v50  ;;  %v967_v3 = vadd.f32 %v966_v59, %v965_v51  ;;  %v975_v4 = vrot.slane %v974_v60, 1  ;;  %v4360_v5 = vunpack.c.l.bf16 %v4812_v56 }
 0x100   : > { %v983_v6 = vadd.f32 %v982_v62, %v981_v8  ;;  %v992_v7 = vadd.f32 %v991_v63, %v990_v54  ;;  %v999_v9 = vadd.f32 %v998_v0, %v997_v55  ;;  %v3232_v10 = vsel %vm2956_vm1, %v949_v61, %v940_v57 }
 0x101   : > { %v976_v12 = vadd.f32 %v975_v4, %v974_v60  ;;  %v3233_v13 = vsel %vm2958_vm2, %v958_v2, %v3232_v10  ;;  %v4361_v14 = vunpack.c.h.bf16 %v4812_v56  ;;  %v4364_v15 = vunpack.c.l.bf16 %v4813_v1 }
 0x102   : > { %v984_v17 = vrot.slane %v983_v6, 1  ;;  %v993_v18 = vrot.slane %v992_v7, 1  ;;  %v1000_v19 = vrot.slane %v999_v9, 2  ;;  %v3234_v20 = vsel %vm2960_vm3, %v967_v3, %v3233_v13 }
 0x103   : > { %v3235_v23 = vsel %vm2962_vm4, %v976_v12, %v3234_v20  ;;  %v4365_v24 = vunpack.c.h.bf16 %v4813_v1  ;;  %v4368_v25 = vunpack.c.l.bf16 %v4814_v11  ;;  %v4369_v26 = vunpack.c.h.bf16 %v4814_v11 }
 0x104   : > { %v985_v28 = vadd.f32 %v984_v17, %v983_v6  ;;  %v994_v29 = vadd.f32 %v993_v18, %v992_v7  ;;  %v1001_v30 = vadd.f32 %v1000_v19, %v999_v9  ;;  %v4372_v31 = vunpack.c.l.bf16 %v4815_v16 }
 0x105   : > { %v4373_v33 = vunpack.c.h.bf16 %v4815_v16  ;;  %v4376_v34 = vunpack.c.l.bf16 %v4816_v21  ;;  %v4377_v35 = vunpack.c.h.bf16 %v4816_v21  ;;  %v4380_v36 = vunpack.c.l.bf16 %v4817_v22 }
 0x106   : > { %v1002_v37 = vrot.slane %v1001_v30, 1  ;;  %v3236_v38 = vsel %vm2964_vm5, %v985_v28, %v3235_v23  ;;  %v4381_v39 = vunpack.c.h.bf16 %v4817_v22  ;;  %v4384_v40 = vunpack.c.l.bf16 %v4818_v27 }
 0x107   : > { %v3237_v41 = vsel %vm2966_vm6, %v994_v29, %v3236_v38  ;;  %v4385_v42 = vunpack.c.h.bf16 %v4818_v27  ;;  %v4388_v43 = vunpack.c.l.bf16 %v4819_v32  ;;  %v4389_v44 = vunpack.c.h.bf16 %v4819_v32 }
 0x108   : > { %v1003_v45 = vadd.f32 %v1002_v37, %v1001_v30  ;;  %v1836_v46 = vsel %vm643_vm0, %v4360_v5, 0.0  ;;  %v1837_v47 = vsel %vm643_vm0, %v4361_v14, 0.0  ;;  %v1845_v48 = vsel %vm643_vm0, %v4364_v15, 0.0 }
 0x109   : > { %v1838_v49 = vadd.f32 %v1837_v47, %v1836_v46  ;;  %v1846_v50 = vsel %vm643_vm0, %v4365_v24, 0.0  ;;  %v1854_v51 = vsel %vm643_vm0, %v4368_v25, 0.0  ;;  %v1855_v52 = vsel %vm643_vm0, %v4369_v26, 0.0  ;;  %v4750_v46 = vld [vmem:[%s5333_s22 + $0x148] sm:$0xff]   ;;  %v4751_v47 = vld [vmem:[%s5333_s22 + $0x150] sm:$0xff]  }
 0x10a   : > { %v3238_v53 = vsel %vm2968_vm7, %v1003_v45, %v3237_v41  ;;  %v1847_v8 = vadd.f32 %v1846_v50, %v1845_v48  ;;  %v1856_v54 = vadd.f32 %v1855_v52, %v1854_v51  ;;  %v1863_v55 = vsel %vm643_vm0, %v4372_v31, 0.0 }
 0x10b   : > { %4993 = vmatprep.mubr.msk.f32.mxu1 %vm643_vm0, %v3238_v53  ;;  %v1839_v56 = vrot.slane %v1838_v49, 4  ;;  %v1864_v57 = vsel %vm643_vm0, %v4373_v33, 0.0  ;;  %v1872_v58 = vsel %vm643_vm0, %v4376_v34, 0.0  ;;  %v1873_v59 = vsel %vm643_vm0, %v4377_v35, 0.0  ;;  %v4749_v33 = vld [vmem:[%s5333_s22 + $0x140] sm:$0xff]  }
 0x10c   : > { %v1848_v60 = vrot.slane %v1847_v8, 4  ;;  %v1857_v61 = vrot.slane %v1856_v54, 4  ;;  %v1865_v62 = vadd.f32 %v1864_v57, %v1863_v55  ;;  %v1874_v63 = vadd.f32 %v1873_v59, %v1872_v58  ;;  %v4752_v55 = vld [vmem:[%s5333_s22 + $0x158] sm:$0xff]  }
 0x10d   : > { %v1840_v0 = vadd.f32 %v1839_v56, %v1838_v49  ;;  %v1881_v1 = vsel %vm643_vm0, %v4380_v36, 0.0  ;;  %v1882_v2 = vsel %vm643_vm0, %v4381_v39, 0.0  ;;  %v1890_v3 = vsel %vm643_vm0, %v4384_v40, 0.0  ;;  %v4753_v56 = vld [vmem:[%s5333_s22 + $0x160] sm:$0xff]  }
 0x10e   : > { %v1849_v4 = vadd.f32 %v1848_v60, %v1847_v8  ;;  %v1858_v5 = vadd.f32 %v1857_v61, %v1856_v54  ;;  %v1866_v6 = vrot.slane %v1865_v62, 4  ;;  %v1875_v7 = vrot.slane %v1874_v63, 4 }
 0x10f   : > { %v1841_v9 = vrot.slane %v1840_v0, 2  ;;  %v1883_v10 = vadd.f32 %v1882_v2, %v1881_v1  ;;  %v1891_v11 = vsel %vm643_vm0, %v4385_v42, 0.0  ;;  %v1899_v12 = vsel %vm643_vm0, %v4388_v43, 0.0  ;;  %v4754_v1 = vld [vmem:[%s5333_s22 + $0x168] sm:$0xff]   ;;  %v4755_v2 = vld [vmem:[%s5333_s22 + $0x170] sm:$0xff]  }
 0x110   : > { %v1850_v13 = vrot.slane %v1849_v4, 2  ;;  %v1859_v14 = vrot.slane %v1858_v5, 2  ;;  %v1867_v15 = vadd.f32 %v1866_v6, %v1865_v62  ;;  %v1876_v16 = vadd.f32 %v1875_v7, %v1874_v63  ;;  %v4756_v7 = vld [vmem:[%s5333_s22 + $0x178] sm:$0xff]  }
 0x111   : > { %v1842_v17 = vadd.f32 %v1841_v9, %v1840_v0  ;;  %v1884_v18 = vrot.slane %v1883_v10, 4  ;;  %v1892_v19 = vadd.f32 %v1891_v11, %v1890_v3  ;;  %v1900_v20 = vsel %vm643_vm0, %v4389_v44, 0.0 }
 0x112   : > { %v1851_v21 = vadd.f32 %v1850_v13, %v1849_v4  ;;  %v1860_v22 = vadd.f32 %v1859_v14, %v1858_v5  ;;  %v1868_v23 = vrot.slane %v1867_v15, 2  ;;  %v1877_v24 = vrot.slane %v1876_v16, 2 }
 0x113   : > { %v1843_v25 = vrot.slane %v1842_v17, 1  ;;  %v1885_v26 = vadd.f32 %v1884_v18, %v1883_v10  ;;  %v1893_v27 = vrot.slane %v1892_v19, 4  ;;  %v1901_v28 = vadd.f32 %v1900_v20, %v1899_v12 }
 0x114   : > { %v1852_v29 = vrot.slane %v1851_v21, 1  ;;  %v1861_v30 = vrot.slane %v1860_v22, 1  ;;  %v1869_v31 = vadd.f32 %v1868_v23, %v1867_v15  ;;  %v1878_v32 = vadd.f32 %v1877_v24, %v1876_v16 }
 0x115   : > { %v1844_v34 = vadd.f32 %v1843_v25, %v1842_v17  ;;  %v1886_v35 = vrot.slane %v1885_v26, 2  ;;  %v1894_v36 = vadd.f32 %v1893_v27, %v1892_v19  ;;  %v1902_v37 = vrot.slane %v1901_v28, 4 }
 0x116   : > { %v1853_v38 = vadd.f32 %v1852_v29, %v1851_v21  ;;  %v1862_v39 = vadd.f32 %v1861_v30, %v1860_v22  ;;  %v1870_v40 = vrot.slane %v1869_v31, 1  ;;  %v1879_v41 = vrot.slane %v1878_v32, 1 }
 0x117   : > { %v1887_v42 = vadd.f32 %v1886_v35, %v1885_v26  ;;  %v1895_v43 = vrot.slane %v1894_v36, 2  ;;  %v1903_v44 = vadd.f32 %v1902_v37, %v1901_v28  ;;  %v4104_v45 = vunpack.c.l.bf16 %v4749_v33 }
 0x118   : > { %v1871_v48 = vadd.f32 %v1870_v40, %v1869_v31  ;;  %v1880_v49 = vadd.f32 %v1879_v41, %v1878_v32  ;;  %v2998_v50 = vsel %vm2956_vm1, %v1853_v38, %v1844_v34  ;;  %v4105_v51 = vunpack.c.h.bf16 %v4749_v33 }
 0x119   : > { %v1888_v52 = vrot.slane %v1887_v42, 1  ;;  %v1896_v53 = vadd.f32 %v1895_v43, %v1894_v36  ;;  %v1904_v8 = vrot.slane %v1903_v44, 2  ;;  %v2999_v54 = vsel %vm2958_vm2, %v1862_v39, %v2998_v50 }
 0x11a   : > { %v3000_v57 = vsel %vm2960_vm3, %v1871_v48, %v2999_v54  ;;  %v4108_v58 = vunpack.c.l.bf16 %v4750_v46  ;;  %v4109_v59 = vunpack.c.h.bf16 %v4750_v46  ;;  %v4112_v60 = vunpack.c.l.bf16 %v4751_v47 }
 0x11b   : > { %v1889_v61 = vadd.f32 %v1888_v52, %v1887_v42  ;;  %v1897_v62 = vrot.slane %v1896_v53, 1  ;;  %v1905_v63 = vadd.f32 %v1904_v8, %v1903_v44  ;;  %v3001_v0 = vsel %vm2962_vm4, %v1880_v49, %v3000_v57 }
 0x11c   : > { %v4113_v3 = vunpack.c.h.bf16 %v4751_v47  ;;  %v4116_v4 = vunpack.c.l.bf16 %v4752_v55  ;;  %v4117_v5 = vunpack.c.h.bf16 %v4752_v55  ;;  %v4120_v6 = vunpack.c.l.bf16 %v4753_v56 }
 0x11d   : > { %v1898_v9 = vadd.f32 %v1897_v62, %v1896_v53  ;;  %v1906_v10 = vrot.slane %v1905_v63, 1  ;;  %v3002_v11 = vsel %vm2964_vm5, %v1889_v61, %v3001_v0  ;;  %v4121_v12 = vunpack.c.h.bf16 %v4753_v56 }
 0x11e   : > { %v4124_v13 = vunpack.c.l.bf16 %v4754_v1  ;;  %v4125_v14 = vunpack.c.h.bf16 %v4754_v1  ;;  %v4128_v15 = vunpack.c.l.bf16 %v4755_v2  ;;  %v4129_v16 = vunpack.c.h.bf16 %v4755_v2 }
 0x11f   : > { %v1907_v17 = vadd.f32 %v1906_v10, %v1905_v63  ;;  %v3003_v18 = vsel %vm2966_vm6, %v1898_v9, %v3002_v11  ;;  %v4132_v19 = vunpack.c.l.bf16 %v4756_v7  ;;  %v4133_v20 = vunpack.c.h.bf16 %v4756_v7  ;;  %v4820_v9 = vld [vmem:[%s5298_s14 + $0x180] sm:$0xff]  }
 0x120   : > { %v1004_v21 = vsel %vm643_vm0, %v4104_v45, 0.0  ;;  %v1005_v22 = vsel %vm643_vm0, %v4105_v51, 0.0  ;;  %v1013_v23 = vsel %vm643_vm0, %v4108_v58, 0.0  ;;  %v1014_v24 = vsel %vm643_vm0, %v4109_v59, 0.0 }
 0x121   : > { %v3004_v25 = vsel %vm2968_vm7, %v1907_v17, %v3003_v18  ;;  %v1006_v26 = vadd.f32 %v1005_v22, %v1004_v21  ;;  %v1015_v27 = vadd.f32 %v1014_v24, %v1013_v23  ;;  %v1022_v28 = vsel %vm643_vm0, %v4112_v60, 0.0  ;;  %v4821_v18 = vld [vmem:[%s5298_s14 + $0x188] sm:$0xff]  }
 0x122   : > { %4974 = vmatmul.mubr.msk.f32.gmra.mxu0 %vm643_vm0, %v3004_v25  ;;  %v1023_v29 = vsel %vm643_vm0, %v4113_v3, 0.0  ;;  %v1031_v30 = vsel %vm643_vm0, %v4116_v4, 0.0  ;;  %v1032_v31 = vsel %vm643_vm0, %v4117_v5, 0.0  ;;  %v1040_v32 = vsel %vm643_vm0, %v4120_v6, 0.0 }
 0x123   : > { %v1007_v33 = vrot.slane %v1006_v26, 4  ;;  %v1016_v34 = vrot.slane %v1015_v27, 4  ;;  %v1024_v35 = vadd.f32 %v1023_v29, %v1022_v28  ;;  %v1033_v36 = vadd.f32 %v1032_v31, %v1031_v30  ;;  %v4823_v28 = vld [vmem:[%s5298_s14 + $0x198] sm:$0xff]  }
 0x124   : > { %v1041_v37 = vsel %vm643_vm0, %v4121_v12, 0.0  ;;  %v1049_v38 = vsel %vm643_vm0, %v4124_v13, 0.0  ;;  %v1050_v39 = vsel %vm643_vm0, %v4125_v14, 0.0  ;;  %v1058_v40 = vsel %vm643_vm0, %v4128_v15, 0.0 }
 0x125   : > { %v1008_v41 = vadd.f32 %v1007_v33, %v1006_v26  ;;  %v1017_v42 = vadd.f32 %v1016_v34, %v1015_v27  ;;  %v1025_v43 = vrot.slane %v1024_v35, 4  ;;  %v1034_v44 = vrot.slane %v1033_v36, 4  ;;  %v4822_v27 = vld [vmem:[%s5298_s14 + $0x190] sm:$0xff]  }
 0x126   : > { %v1042_v45 = vadd.f32 %v1041_v37, %v1040_v32  ;;  %v1051_v46 = vadd.f32 %v1050_v39, %v1049_v38  ;;  %v1059_v47 = vsel %vm643_vm0, %v4129_v16, 0.0  ;;  %v1067_v48 = vsel %vm643_vm0, %v4132_v19, 0.0  ;;  %v4824_v37 = vld [vmem:[%s5298_s14 + $0x1a0] sm:$0xff]   ;;  %v4825_v38 = vld [vmem:[%s5298_s14 + $0x1a8] sm:$0xff]  }
 0x127   : > { %v1009_v49 = vrot.slane %v1008_v41, 2  ;;  %v1018_v50 = vrot.slane %v1017_v42, 2  ;;  %v1026_v51 = vadd.f32 %v1025_v43, %v1024_v35  ;;  %v1035_v52 = vadd.f32 %v1034_v44, %v1033_v36  ;;  %v4826_v43 = vld [vmem:[%s5298_s14 + $0x1b0] sm:$0xff]  }
 0x128   : > { %v1043_v53 = vrot.slane %v1042_v45, 4  ;;  %v1052_v8 = vrot.slane %v1051_v46, 4  ;;  %v1060_v54 = vadd.f32 %v1059_v47, %v1058_v40  ;;  %v1068_v55 = vsel %vm643_vm0, %v4133_v20, 0.0 }
 0x129   : > { %v1010_v56 = vadd.f32 %v1009_v49, %v1008_v41  ;;  %v1019_v57 = vadd.f32 %v1018_v50, %v1017_v42  ;;  %v1027_v58 = vrot.slane %v1026_v51, 2  ;;  %v1036_v59 = vrot.slane %v1035_v52, 2 }
 0x12a   : > { %v1044_v60 = vadd.f32 %v1043_v53, %v1042_v45  ;;  %v1053_v61 = vadd.f32 %v1052_v8, %v1051_v46  ;;  %v1061_v62 = vrot.slane %v1060_v54, 4  ;;  %v1069_v63 = vadd.f32 %v1068_v55, %v1067_v48  ;;  %v4827_v48 = vld [vmem:[%s5298_s14 + $0x1b8] sm:$0xff]  }
 0x12b   : > { %v1011_v0 = vrot.slane %v1010_v56, 1  ;;  %v1020_v1 = vrot.slane %v1019_v57, 1  ;;  %v1028_v2 = vadd.f32 %v1027_v58, %v1026_v51  ;;  %v1037_v3 = vadd.f32 %v1036_v59, %v1035_v52 }
 0x12c   : > { %v1045_v4 = vrot.slane %v1044_v60, 2  ;;  %v1054_v5 = vrot.slane %v1053_v61, 2  ;;  %v1062_v6 = vadd.f32 %v1061_v62, %v1060_v54  ;;  %v1070_v7 = vrot.slane %v1069_v63, 4 }
 0x12d   : > { %v1012_v10 = vadd.f32 %v1011_v0, %v1010_v56  ;;  %v1021_v11 = vadd.f32 %v1020_v1, %v1019_v57  ;;  %v1029_v12 = vrot.slane %v1028_v2, 1  ;;  %v1038_v13 = vrot.slane %v1037_v3, 1 }
 0x12e   : > { %v1046_v14 = vadd.f32 %v1045_v4, %v1044_v60  ;;  %v1055_v15 = vadd.f32 %v1054_v5, %v1053_v61  ;;  %v1063_v16 = vrot.slane %v1062_v6, 2  ;;  %v1071_v17 = vadd.f32 %v1070_v7, %v1069_v63 }
 0x12f   : > { %v1030_v19 = vadd.f32 %v1029_v12, %v1028_v2  ;;  %v1039_v20 = vadd.f32 %v1038_v13, %v1037_v3  ;;  %v3239_v21 = vsel %vm2956_vm1, %v1021_v11, %v1012_v10  ;;  %v4392_v22 = vunpack.c.l.bf16 %v4820_v9 }
 0x130   : > { %v1047_v23 = vrot.slane %v1046_v14, 1  ;;  %v1056_v24 = vrot.slane %v1055_v15, 1  ;;  %v1064_v25 = vadd.f32 %v1063_v16, %v1062_v6  ;;  %v1072_v26 = vrot.slane %v1071_v17, 2 }
 0x131   : > { %v3240_v29 = vsel %vm2958_vm2, %v1030_v19, %v3239_v21  ;;  %v4393_v30 = vunpack.c.h.bf16 %v4820_v9  ;;  %v4396_v31 = vunpack.c.l.bf16 %v4821_v18  ;;  %v4397_v32 = vunpack.c.h.bf16 %v4821_v18 }
 0x132   : > { %v1048_v33 = vadd.f32 %v1047_v23, %v1046_v14  ;;  %v1057_v34 = vadd.f32 %v1056_v24, %v1055_v15  ;;  %v1065_v35 = vrot.slane %v1064_v25, 1  ;;  %v1073_v36 = vadd.f32 %v1072_v26, %v1071_v17 }
 0x133   : > { %v3241_v39 = vsel %vm2960_vm3, %v1039_v20, %v3240_v29  ;;  %v4400_v40 = vunpack.c.l.bf16 %v4822_v27  ;;  %v4401_v41 = vunpack.c.h.bf16 %v4822_v27  ;;  %v4404_v42 = vunpack.c.l.bf16 %v4823_v28 }
 0x134   : > { %v1066_v44 = vadd.f32 %v1065_v35, %v1064_v25  ;;  %v1074_v45 = vrot.slane %v1073_v36, 1  ;;  %v3242_v46 = vsel %vm2962_vm4, %v1048_v33, %v3241_v39  ;;  %v4405_v47 = vunpack.c.h.bf16 %v4823_v28 }
 0x135   : > { %v3243_v49 = vsel %vm2964_vm5, %v1057_v34, %v3242_v46  ;;  %v4408_v50 = vunpack.c.l.bf16 %v4824_v37  ;;  %v4409_v51 = vunpack.c.h.bf16 %v4824_v37  ;;  %v4412_v52 = vunpack.c.l.bf16 %v4825_v38 }
 0x136   : > { %v1075_v53 = vadd.f32 %v1074_v45, %v1073_v36  ;;  %v3244_v8 = vsel %vm2966_vm6, %v1066_v44, %v3243_v49  ;;  %v4413_v54 = vunpack.c.h.bf16 %v4825_v38  ;;  %v4416_v55 = vunpack.c.l.bf16 %v4826_v43  ;;  %v4757_v49 = vld [vmem:[%s5333_s22 + $0x180] sm:$0xff]  }
 0x137   : > { %v4417_v56 = vunpack.c.h.bf16 %v4826_v43  ;;  %v4420_v57 = vunpack.c.l.bf16 %v4827_v48  ;;  %v4421_v58 = vunpack.c.h.bf16 %v4827_v48  ;;  %v1908_v59 = vsel %vm643_vm0, %v4392_v22, 0.0 }
 0x138   : > { %v3245_v60 = vsel %vm2968_vm7, %v1075_v53, %v3244_v8  ;;  %v1909_v61 = vsel %vm643_vm0, %v4393_v30, 0.0  ;;  %v1917_v62 = vsel %vm643_vm0, %v4396_v31, 0.0  ;;  %v1918_v63 = vsel %vm643_vm0, %v4397_v32, 0.0 }
 0x139   : > { %4994 = vmatmul.mubr.msk.f32.gmra.mxu1 %vm643_vm0, %v3245_v60  ;;  %v1910_v0 = vadd.f32 %v1909_v61, %v1908_v59  ;;  %v1919_v1 = vadd.f32 %v1918_v63, %v1917_v62  ;;  %v1926_v2 = vsel %vm643_vm0, %v4400_v40, 0.0  ;;  %v1927_v3 = vsel %vm643_vm0, %v4401_v41, 0.0 }
 0x13a   : > { %v1928_v4 = vadd.f32 %v1927_v3, %v1926_v2  ;;  %v1935_v5 = vsel %vm643_vm0, %v4404_v42, 0.0  ;;  %v1936_v6 = vsel %vm643_vm0, %v4405_v47, 0.0  ;;  %v1944_v7 = vsel %vm643_vm0, %v4408_v50, 0.0  ;;  %v4759_v2 = vld [vmem:[%s5333_s22 + $0x190] sm:$0xff]   ;;  %v4760_v3 = vld [vmem:[%s5333_s22 + $0x198] sm:$0xff]  }
 0x13b   : > { %v1911_v9 = vrot.slane %v1910_v0, 4  ;;  %v1920_v10 = vrot.slane %v1919_v1, 4  ;;  %v1937_v11 = vadd.f32 %v1936_v6, %v1935_v5  ;;  %v1945_v12 = vsel %vm643_vm0, %v4409_v51, 0.0 }
 0x13c   : > { %v1929_v13 = vrot.slane %v1928_v4, 4  ;;  %v1946_v14 = vadd.f32 %v1945_v12, %v1944_v7  ;;  %v1953_v15 = vsel %vm643_vm0, %v4412_v52, 0.0  ;;  %v1954_v16 = vsel %vm643_vm0, %v4413_v54, 0.0 }
 0x13d   : > { %v1912_v17 = vadd.f32 %v1911_v9, %v1910_v0  ;;  %v1921_v18 = vadd.f32 %v1920_v10, %v1919_v1  ;;  %v1938_v19 = vrot.slane %v1937_v11, 4  ;;  %v1955_v20 = vadd.f32 %v1954_v16, %v1953_v15  ;;  %v4761_v9 = vld [vmem:[%s5333_s22 + $0x1a0] sm:$0xff]   ;;  %v4763_v15 = vld [vmem:[%s5333_s22 + $0x1b0] sm:$0xff]  }
 0x13e   : > { %v1930_v21 = vadd.f32 %v1929_v13, %v1928_v4  ;;  %v1947_v22 = vrot.slane %v1946_v14, 4  ;;  %v1962_v23 = vsel %vm643_vm0, %v4416_v55, 0.0  ;;  %v1963_v24 = vsel %vm643_vm0, %v4417_v56, 0.0 }
 0x13f   : > { %v1913_v25 = vrot.slane %v1912_v17, 2  ;;  %v1922_v26 = vrot.slane %v1921_v18, 2  ;;  %v1939_v27 = vadd.f32 %v1938_v19, %v1937_v11  ;;  %v1956_v28 = vrot.slane %v1955_v20, 4 }
 0x140   : > { %v1931_v29 = vrot.slane %v1930_v21, 2  ;;  %v1948_v30 = vadd.f32 %v1947_v22, %v1946_v14  ;;  %v1964_v31 = vadd.f32 %v1963_v24, %v1962_v23  ;;  %v1971_v32 = vsel %vm643_vm0, %v4420_v57, 0.0  ;;  %v4758_v57 = vld [vmem:[%s5333_s22 + $0x188] sm:$0xff]  }
 0x141   : > { %v1914_v33 = vadd.f32 %v1913_v25, %v1912_v17  ;;  %v1923_v34 = vadd.f32 %v1922_v26, %v1921_v18  ;;  %v1940_v35 = vrot.slane %v1939_v27, 2  ;;  %v1957_v36 = vadd.f32 %v1956_v28, %v1955_v20  ;;  %v4762_v14 = vld [vmem:[%s5333_s22 + $0x1a8] sm:$0xff]   ;;  %v4764_v20 = vld [vmem:[%s5333_s22 + $0x1b8] sm:$0xff]  }
 0x142   : > { %v1932_v37 = vadd.f32 %v1931_v29, %v1930_v21  ;;  %v1949_v38 = vrot.slane %v1948_v30, 2  ;;  %v1965_v39 = vrot.slane %v1964_v31, 4  ;;  %v1972_v40 = vsel %vm643_vm0, %v4421_v58, 0.0 }
 0x143   : > { %v1915_v41 = vrot.slane %v1914_v33, 1  ;;  %v1924_v42 = vrot.slane %v1923_v34, 1  ;;  %v1941_v43 = vadd.f32 %v1940_v35, %v1939_v27  ;;  %v1958_v44 = vrot.slane %v1957_v36, 2 }
 0x144   : > { %v1933_v45 = vrot.slane %v1932_v37, 1  ;;  %v1950_v46 = vadd.f32 %v1949_v38, %v1948_v30  ;;  %v1966_v47 = vadd.f32 %v1965_v39, %v1964_v31  ;;  %v1973_v48 = vadd.f32 %v1972_v40, %v1971_v32 }
 0x145   : > { %v1916_v50 = vadd.f32 %v1915_v41, %v1914_v33  ;;  %v1925_v51 = vadd.f32 %v1924_v42, %v1923_v34  ;;  %v1942_v52 = vrot.slane %v1941_v43, 1  ;;  %v1959_v53 = vadd.f32 %v1958_v44, %v1957_v36 }
 0x146   : > { %v1934_v8 = vadd.f32 %v1933_v45, %v1932_v37  ;;  %v1951_v54 = vrot.slane %v1950_v46, 1  ;;  %v1967_v55 = vrot.slane %v1966_v47, 2  ;;  %v1974_v56 = vrot.slane %v1973_v48, 4 }
 0x147   : > { %v1943_v58 = vadd.f32 %v1942_v52, %v1941_v43  ;;  %v1960_v59 = vrot.slane %v1959_v53, 1  ;;  %v3005_v60 = vsel %vm2956_vm1, %v1925_v51, %v1916_v50  ;;  %v4136_v61 = vunpack.c.l.bf16 %v4757_v49 }
 0x148   : > { %v1952_v62 = vadd.f32 %v1951_v54, %v1950_v46  ;;  %v1968_v63 = vadd.f32 %v1967_v55, %v1966_v47  ;;  %v1975_v0 = vadd.f32 %v1974_v56, %v1973_v48  ;;  %v3006_v1 = vsel %vm2958_vm2, %v1934_v8, %v3005_v60 }
 0x149   : > { %v1961_v4 = vadd.f32 %v1960_v59, %v1959_v53  ;;  %v3007_v5 = vsel %vm2960_vm3, %v1943_v58, %v3006_v1  ;;  %v4137_v6 = vunpack.c.h.bf16 %v4757_v49  ;;  %v4140_v7 = vunpack.c.l.bf16 %v4758_v57 }
 0x14a   : > { %v1969_v10 = vrot.slane %v1968_v63, 1  ;;  %v1976_v11 = vrot.slane %v1975_v0, 2  ;;  %v3008_v12 = vsel %vm2962_vm4, %v1952_v62, %v3007_v5  ;;  %v4141_v13 = vunpack.c.h.bf16 %v4758_v57 }
 0x14b   : > { %v3009_v16 = vsel %vm2964_vm5, %v1961_v4, %v3008_v12  ;;  %v4144_v17 = vunpack.c.l.bf16 %v4759_v2  ;;  %v4145_v18 = vunpack.c.h.bf16 %v4759_v2  ;;  %v4148_v19 = vunpack.c.l.bf16 %v4760_v3 }
 0x14c   : > { %v1970_v21 = vadd.f32 %v1969_v10, %v1968_v63  ;;  %v1977_v22 = vadd.f32 %v1976_v11, %v1975_v0  ;;  %v4149_v23 = vunpack.c.h.bf16 %v4760_v3  ;;  %v4152_v24 = vunpack.c.l.bf16 %v4761_v9 }
 0x14d   : > { %v4153_v25 = vunpack.c.h.bf16 %v4761_v9  ;;  %v4156_v26 = vunpack.c.l.bf16 %v4762_v14  ;;  %v4157_v27 = vunpack.c.h.bf16 %v4762_v14  ;;  %v4160_v28 = vunpack.c.l.bf16 %v4763_v15 }
 0x14e   : > { %v1978_v29 = vrot.slane %v1977_v22, 1  ;;  %v3010_v30 = vsel %vm2966_vm6, %v1970_v21, %v3009_v16  ;;  %v4161_v31 = vunpack.c.h.bf16 %v4763_v15  ;;  %v4164_v32 = vunpack.c.l.bf16 %v4764_v20  ;;  %v4828_v21 = vld [vmem:[%s5298_s14 + $0x1c0] sm:$0xff]  }
 0x14f   : > { %v4165_v33 = vunpack.c.h.bf16 %v4764_v20  ;;  %v1076_v34 = vsel %vm643_vm0, %v4136_v61, 0.0  ;;  %v1077_v35 = vsel %vm643_vm0, %v4137_v6, 0.0  ;;  %v1085_v36 = vsel %vm643_vm0, %v4140_v7, 0.0 }
 0x150   : > { %v1979_v37 = vadd.f32 %v1978_v29, %v1977_v22  ;;  %v1078_v38 = vadd.f32 %v1077_v35, %v1076_v34  ;;  %v1086_v39 = vsel %vm643_vm0, %v4141_v13, 0.0  ;;  %v1094_v40 = vsel %vm643_vm0, %v4144_v17, 0.0 }
 0x151   : > { %v1087_v41 = vadd.f32 %v1086_v39, %v1085_v36  ;;  %v1095_v42 = vsel %vm643_vm0, %v4145_v18, 0.0  ;;  %v1103_v43 = vsel %vm643_vm0, %v4148_v19, 0.0  ;;  %v1104_v44 = vsel %vm643_vm0, %v4149_v23, 0.0  ;;  %v4830_v39 = vld [vmem:[%s5298_s14 + $0x1d0] sm:$0xff]  }
 0x152   : > { %v3011_v45 = vsel %vm2968_vm7, %v1979_v37, %v3010_v30  ;;  %v1079_v46 = vrot.slane %v1078_v38, 4  ;;  %v1096_v47 = vadd.f32 %v1095_v42, %v1094_v40  ;;  %v1105_v48 = vadd.f32 %v1104_v44, %v1103_v43  ;;  %v4829_v30 = vld [vmem:[%s5298_s14 + $0x1c8] sm:$0xff]   ;;  %v4831_v44 = vld [vmem:[%s5298_s14 + $0x1d8] sm:$0xff]  }
 0x153   : > { %4976 = vmatprep.mubr.msk.f32.mxu0 %vm643_vm0, %v3011_v45  ;;  %v1088_v49 = vrot.slane %v1087_v41, 4  ;;  %v1112_v50 = vsel %vm643_vm0, %v4152_v24, 0.0  ;;  %v1113_v51 = vsel %vm643_vm0, %v4153_v25, 0.0  ;;  %v1121_v52 = vsel %vm643_vm0, %v4156_v26, 0.0 }
 0x154   : > { %v1080_v53 = vadd.f32 %v1079_v46, %v1078_v38  ;;  %v1097_v8 = vrot.slane %v1096_v47, 4  ;;  %v1106_v54 = vrot.slane %v1105_v48, 4  ;;  %v1114_v55 = vadd.f32 %v1113_v51, %v1112_v50  ;;  %v4833_v50 = vld [vmem:[%s5298_s14 + $0x1e8] sm:$0xff]  }
 0x155   : > { %v1089_v56 = vadd.f32 %v1088_v49, %v1087_v41  ;;  %v1122_v57 = vsel %vm643_vm0, %v4157_v27, 0.0  ;;  %v1130_v58 = vsel %vm643_vm0, %v4160_v28, 0.0  ;;  %v1131_v59 = vsel %vm643_vm0, %v4161_v31, 0.0  ;;  %v4832_v49 = vld [vmem:[%s5298_s14 + $0x1e0] sm:$0xff]  }
 0x156   : > { %v1081_v60 = vrot.slane %v1080_v53, 2  ;;  %v1098_v61 = vadd.f32 %v1097_v8, %v1096_v47  ;;  %v1107_v62 = vadd.f32 %v1106_v54, %v1105_v48  ;;  %v1115_v63 = vrot.slane %v1114_v55, 4  ;;  %v4834_v54 = vld [vmem:[%s5298_s14 + $0x1f0] sm:$0xff]  }
 0x157   : > { %v1090_v0 = vrot.slane %v1089_v56, 2  ;;  %v1123_v1 = vadd.f32 %v1122_v57, %v1121_v52  ;;  %v1132_v2 = vadd.f32 %v1131_v59, %v1130_v58  ;;  %v1139_v3 = vsel %vm643_vm0, %v4164_v32, 0.0  ;;  %v4835_v59 = vld [vmem:[%s5298_s14 + $0x1f8] sm:$0xff]   ;;  %s6179_s14 = scalar_lea.sflag [#allocation3], %s362_s26 }
 0x158   : > { %v1082_v4 = vadd.f32 %v1081_v60, %v1080_v53  ;;  %v1099_v5 = vrot.slane %v1098_v61, 2  ;;  %v1108_v6 = vrot.slane %v1107_v62, 2  ;;  %v1116_v7 = vadd.f32 %v1115_v63, %v1114_v55 }
 0x159   : > { %v1091_v9 = vadd.f32 %v1090_v0, %v1089_v56  ;;  %v1124_v10 = vrot.slane %v1123_v1, 4  ;;  %v1133_v11 = vrot.slane %v1132_v2, 4  ;;  %v1140_v12 = vsel %vm643_vm0, %v4165_v33, 0.0 }
 0x15a   : > { %v1083_v13 = vrot.slane %v1082_v4, 1  ;;  %v1100_v14 = vadd.f32 %v1099_v5, %v1098_v61  ;;  %v1109_v15 = vadd.f32 %v1108_v6, %v1107_v62  ;;  %v1117_v16 = vrot.slane %v1116_v7, 2 }
 0x15b   : > { %v1092_v17 = vrot.slane %v1091_v9, 1  ;;  %v1125_v18 = vadd.f32 %v1124_v10, %v1123_v1  ;;  %v1134_v19 = vadd.f32 %v1133_v11, %v1132_v2  ;;  %v1141_v20 = vadd.f32 %v1140_v12, %v1139_v3 }
 0x15c   : > { %v1084_v22 = vadd.f32 %v1083_v13, %v1082_v4  ;;  %v1101_v23 = vrot.slane %v1100_v14, 1  ;;  %v1110_v24 = vrot.slane %v1109_v15, 1  ;;  %v1118_v25 = vadd.f32 %v1117_v16, %v1116_v7 }
 0x15d   : > { %v1093_v26 = vadd.f32 %v1092_v17, %v1091_v9  ;;  %v1126_v27 = vrot.slane %v1125_v18, 2  ;;  %v1135_v28 = vrot.slane %v1134_v19, 2  ;;  %v1142_v29 = vrot.slane %v1141_v20, 4 }
 0x15e   : > { %v1102_v31 = vadd.f32 %v1101_v23, %v1100_v14  ;;  %v1111_v32 = vadd.f32 %v1110_v24, %v1109_v15  ;;  %v1119_v33 = vrot.slane %v1118_v25, 1  ;;  %v4424_v34 = vunpack.c.l.bf16 %v4828_v21 }
 0x15f   : > { %v1127_v35 = vadd.f32 %v1126_v27, %v1125_v18  ;;  %v1136_v36 = vadd.f32 %v1135_v28, %v1134_v19  ;;  %v1143_v37 = vadd.f32 %v1142_v29, %v1141_v20  ;;  %v3246_v38 = vsel %vm2956_vm1, %v1093_v26, %v1084_v22 }
 0x160   : > { %v1120_v40 = vadd.f32 %v1119_v33, %v1118_v25  ;;  %v3247_v41 = vsel %vm2958_vm2, %v1102_v31, %v3246_v38  ;;  %v4425_v42 = vunpack.c.h.bf16 %v4828_v21  ;;  %v4428_v43 = vunpack.c.l.bf16 %v4829_v30 }
 0x161   : > { %v1128_v45 = vrot.slane %v1127_v35, 1  ;;  %v1137_v46 = vrot.slane %v1136_v36, 1  ;;  %v1144_v47 = vrot.slane %v1143_v37, 2  ;;  %v3248_v48 = vsel %vm2960_vm3, %v1111_v32, %v3247_v41 }
 0x162   : > { %v3249_v51 = vsel %vm2962_vm4, %v1120_v40, %v3248_v48  ;;  %v4429_v52 = vunpack.c.h.bf16 %v4829_v30  ;;  %v4432_v53 = vunpack.c.l.bf16 %v4830_v39  ;;  %v4433_v8 = vunpack.c.h.bf16 %v4830_v39 }
 0x163   : > { %v1129_v55 = vadd.f32 %v1128_v45, %v1127_v35  ;;  %v1138_v56 = vadd.f32 %v1137_v46, %v1136_v36  ;;  %v1145_v57 = vadd.f32 %v1144_v47, %v1143_v37  ;;  %v4436_v58 = vunpack.c.l.bf16 %v4831_v44 }
 0x164   : > { %v4437_v60 = vunpack.c.h.bf16 %v4831_v44  ;;  %v4440_v61 = vunpack.c.l.bf16 %v4832_v49  ;;  %v4441_v62 = vunpack.c.h.bf16 %v4832_v49  ;;  %v4444_v63 = vunpack.c.l.bf16 %v4833_v50 }
 0x165   : > { %v1146_v0 = vrot.slane %v1145_v57, 1  ;;  %v3250_v1 = vsel %vm2964_vm5, %v1129_v55, %v3249_v51  ;;  %v4445_v2 = vunpack.c.h.bf16 %v4833_v50  ;;  %v4448_v3 = vunpack.c.l.bf16 %v4834_v54 }
 0x166   : > { %v3251_v4 = vsel %vm2966_vm6, %v1138_v56, %v3250_v1  ;;  %v4449_v5 = vunpack.c.h.bf16 %v4834_v54  ;;  %v4452_v6 = vunpack.c.l.bf16 %v4835_v59  ;;  %v4453_v7 = vunpack.c.h.bf16 %v4835_v59 }
 0x167   : > { %v1147_v9 = vadd.f32 %v1146_v0, %v1145_v57  ;;  %v1980_v10 = vsel %vm643_vm0, %v4424_v34, 0.0  ;;  %v1981_v11 = vsel %vm643_vm0, %v4425_v42, 0.0  ;;  %v1989_v12 = vsel %vm643_vm0, %v4428_v43, 0.0 }
 0x168   : > { %v1982_v13 = vadd.f32 %v1981_v11, %v1980_v10  ;;  %v1990_v14 = vsel %vm643_vm0, %v4429_v52, 0.0  ;;  %v1998_v15 = vsel %vm643_vm0, %v4432_v53, 0.0  ;;  %v1999_v16 = vsel %vm643_vm0, %v4433_v8, 0.0  ;;  %v4766_v10 = vld [vmem:[%s5333_s22 + $0x1c8] sm:$0xff]   ;;  %v4767_v11 = vld [vmem:[%s5333_s22 + $0x1d0] sm:$0xff]  }
 0x169   : > { %v3252_v17 = vsel %vm2968_vm7, %v1147_v9, %v3251_v4  ;;  %v1991_v18 = vadd.f32 %v1990_v14, %v1989_v12  ;;  %v2000_v19 = vadd.f32 %v1999_v16, %v1998_v15  ;;  %v2007_v20 = vsel %vm643_vm0, %v4436_v58, 0.0 }
 0x16a   : > { %4996 = vmatprep.mubr.msk.f32.mxu1 %vm643_vm0, %v3252_v17  ;;  %v1983_v21 = vrot.slane %v1982_v13, 4  ;;  %v2008_v22 = vsel %vm643_vm0, %v4437_v60, 0.0  ;;  %v2016_v23 = vsel %vm643_vm0, %v4440_v61, 0.0  ;;  %v2017_v24 = vsel %vm643_vm0, %v4441_v62, 0.0  ;;  %v4765_v60 = vld [vmem:[%s5333_s22 + $0x1c0] sm:$0xff]  }
 0x16b   : > { %v1992_v25 = vrot.slane %v1991_v18, 4  ;;  %v2001_v26 = vrot.slane %v2000_v19, 4  ;;  %v2009_v27 = vadd.f32 %v2008_v22, %v2007_v20  ;;  %v2018_v28 = vadd.f32 %v2017_v24, %v2016_v23  ;;  %v4768_v20 = vld [vmem:[%s5333_s22 + $0x1d8] sm:$0xff]  }
 0x16c   : > { %v1984_v29 = vadd.f32 %v1983_v21, %v1982_v13  ;;  %v2025_v30 = vsel %vm643_vm0, %v4444_v63, 0.0  ;;  %v2026_v31 = vsel %vm643_vm0, %v4445_v2, 0.0  ;;  %v2034_v32 = vsel %vm643_vm0, %v4448_v3, 0.0  ;;  %v4769_v21 = vld [vmem:[%s5333_s22 + $0x1e0] sm:$0xff]  }
 0x16d   : > { %v1993_v33 = vadd.f32 %v1992_v25, %v1991_v18  ;;  %v2002_v34 = vadd.f32 %v2001_v26, %v2000_v19  ;;  %v2010_v35 = vrot.slane %v2009_v27, 4  ;;  %v2019_v36 = vrot.slane %v2018_v28, 4 }
 0x16e   : > { %v1985_v37 = vrot.slane %v1984_v29, 2  ;;  %v2027_v38 = vadd.f32 %v2026_v31, %v2025_v30  ;;  %v2035_v39 = vsel %vm643_vm0, %v4449_v5, 0.0  ;;  %v2043_v40 = vsel %vm643_vm0, %v4452_v6, 0.0  ;;  %v4770_v30 = vld [vmem:[%s5333_s22 + $0x1e8] sm:$0xff]   ;;  %v4771_v31 = vld [vmem:[%s5333_s22 + $0x1f0] sm:$0xff]  }
 0x16f   : > { %v1994_v41 = vrot.slane %v1993_v33, 2  ;;  %v2003_v42 = vrot.slane %v2002_v34, 2  ;;  %v2011_v43 = vadd.f32 %v2010_v35, %v2009_v27  ;;  %v2020_v44 = vadd.f32 %v2019_v36, %v2018_v28  ;;  %v4772_v36 = vld [vmem:[%s5333_s22 + $0x1f8] sm:$0xff]   ;;  %s5110_s22 = scalar_lea.vmem %s5109_s21, 2048 }
 0x170   : > { %v1986_v45 = vadd.f32 %v1985_v37, %v1984_v29  ;;  %v2028_v46 = vrot.slane %v2027_v38, 4  ;;  %v2036_v47 = vadd.f32 %v2035_v39, %v2034_v32  ;;  %v2044_v48 = vsel %vm643_vm0, %v4453_v7, 0.0 }
 0x171   : > { %v1995_v49 = vadd.f32 %v1994_v41, %v1993_v33  ;;  %v2004_v50 = vadd.f32 %v2003_v42, %v2002_v34  ;;  %v2012_v51 = vrot.slane %v2011_v43, 2  ;;  %v2021_v52 = vrot.slane %v2020_v44, 2 }
 0x172   : > { %v1987_v53 = vrot.slane %v1986_v45, 1  ;;  %v2029_v8 = vadd.f32 %v2028_v46, %v2027_v38  ;;  %v2037_v54 = vrot.slane %v2036_v47, 4  ;;  %v2045_v55 = vadd.f32 %v2044_v48, %v2043_v40 }
 0x173   : > { %v1996_v56 = vrot.slane %v1995_v49, 1  ;;  %v2005_v57 = vrot.slane %v2004_v50, 1  ;;  %v2013_v58 = vadd.f32 %v2012_v51, %v2011_v43  ;;  %v2022_v59 = vadd.f32 %v2021_v52, %v2020_v44 }
 0x174   : > { %v1988_v61 = vadd.f32 %v1987_v53, %v1986_v45  ;;  %v2030_v62 = vrot.slane %v2029_v8, 2  ;;  %v2038_v63 = vadd.f32 %v2037_v54, %v2036_v47  ;;  %v2046_v0 = vrot.slane %v2045_v55, 4 }
 0x175   : > { %v1997_v1 = vadd.f32 %v1996_v56, %v1995_v49  ;;  %v2006_v2 = vadd.f32 %v2005_v57, %v2004_v50  ;;  %v2014_v3 = vrot.slane %v2013_v58, 1  ;;  %v2023_v4 = vrot.slane %v2022_v59, 1 }
 0x176   : > { %v2031_v5 = vadd.f32 %v2030_v62, %v2029_v8  ;;  %v2039_v6 = vrot.slane %v2038_v63, 2  ;;  %v2047_v7 = vadd.f32 %v2046_v0, %v2045_v55  ;;  %v4168_v9 = vunpack.c.l.bf16 %v4765_v60 }
 0x177   : > { %v2015_v12 = vadd.f32 %v2014_v3, %v2013_v58  ;;  %v2024_v13 = vadd.f32 %v2023_v4, %v2022_v59  ;;  %v3012_v14 = vsel %vm2956_vm1, %v1997_v1, %v1988_v61  ;;  %v4169_v15 = vunpack.c.h.bf16 %v4765_v60 }
 0x178   : > { %v2032_v16 = vrot.slane %v2031_v5, 1  ;;  %v2040_v17 = vadd.f32 %v2039_v6, %v2038_v63  ;;  %v2048_v18 = vrot.slane %v2047_v7, 2  ;;  %v3013_v19 = vsel %vm2958_vm2, %v2006_v2, %v3012_v14 }
 0x179   : > { %v3014_v22 = vsel %vm2960_vm3, %v2015_v12, %v3013_v19  ;;  %v4172_v23 = vunpack.c.l.bf16 %v4766_v10  ;;  %v4173_v24 = vunpack.c.h.bf16 %v4766_v10  ;;  %v4176_v25 = vunpack.c.l.bf16 %v4767_v11 }
 0x17a   : > { %v2033_v26 = vadd.f32 %v2032_v16, %v2031_v5  ;;  %v2041_v27 = vrot.slane %v2040_v17, 1  ;;  %v2049_v28 = vadd.f32 %v2048_v18, %v2047_v7  ;;  %v3015_v29 = vsel %vm2962_vm4, %v2024_v13, %v3014_v22 }
 0x17b   : > { %v4177_v32 = vunpack.c.h.bf16 %v4767_v11  ;;  %v4180_v33 = vunpack.c.l.bf16 %v4768_v20  ;;  %v4181_v34 = vunpack.c.h.bf16 %v4768_v20  ;;  %v4184_v35 = vunpack.c.l.bf16 %v4769_v21 }
 0x17c   : > { %v2042_v37 = vadd.f32 %v2041_v27, %v2040_v17  ;;  %v2050_v38 = vrot.slane %v2049_v28, 1  ;;  %v3016_v39 = vsel %vm2964_vm5, %v2033_v26, %v3015_v29  ;;  %v4185_v40 = vunpack.c.h.bf16 %v4769_v21 }
 0x17d   : > { %v4188_v41 = vunpack.c.l.bf16 %v4770_v30  ;;  %v4189_v42 = vunpack.c.h.bf16 %v4770_v30  ;;  %v4192_v43 = vunpack.c.l.bf16 %v4771_v31  ;;  %v4193_v44 = vunpack.c.h.bf16 %v4771_v31 }
 0x17e   : > { %v2051_v45 = vadd.f32 %v2050_v38, %v2049_v28  ;;  %v3017_v46 = vsel %vm2966_vm6, %v2042_v37, %v3016_v39  ;;  %v4196_v47 = vunpack.c.l.bf16 %v4772_v36  ;;  %v4197_v48 = vunpack.c.h.bf16 %v4772_v36  ;;  %v4455_v37 = vld [vmem:[%s5830_s27] sm:$0xff]  }
 0x17f   : > { %v1148_v49 = vsel %vm643_vm0, %v4168_v9, 0.0  ;;  %v1149_v50 = vsel %vm643_vm0, %v4169_v15, 0.0  ;;  %v1157_v51 = vsel %vm643_vm0, %v4172_v23, 0.0  ;;  %v1158_v52 = vsel %vm643_vm0, %v4173_v24, 0.0 }
 0x180   : > { %v3018_v53 = vsel %vm2968_vm7, %v2051_v45, %v3017_v46  ;;  %v1150_v8 = vadd.f32 %v1149_v50, %v1148_v49  ;;  %v1159_v54 = vadd.f32 %v1158_v52, %v1157_v51  ;;  %v1166_v55 = vsel %vm643_vm0, %v4176_v25, 0.0  ;;  %v4836_v46 = vld [vmem:[%s5830_s27 + $0x8] sm:$0xff]  }
 0x181   : > { %4977 = vmatmul.mubr.msk.f32.gmra.mxu0 %vm643_vm0, %v3018_v53  ;;  %v1167_v56 = vsel %vm643_vm0, %v4177_v32, 0.0  ;;  %v1175_v57 = vsel %vm643_vm0, %v4180_v33, 0.0  ;;  %v1176_v58 = vsel %vm643_vm0, %v4181_v34, 0.0  ;;  %v1184_v59 = vsel %vm643_vm0, %v4184_v35, 0.0 }
 0x182   : > { %v1151_v60 = vrot.slane %v1150_v8, 4  ;;  %v1160_v61 = vrot.slane %v1159_v54, 4  ;;  %v1168_v62 = vadd.f32 %v1167_v56, %v1166_v55  ;;  %v1177_v63 = vadd.f32 %v1176_v58, %v1175_v57  ;;  %v4838_v55 = vld [vmem:[%s5830_s27 + $0x18] sm:$0xff]  }
 0x183   : > { %v1185_v0 = vsel %vm643_vm0, %v4185_v40, 0.0  ;;  %v1193_v1 = vsel %vm643_vm0, %v4188_v41, 0.0  ;;  %v1194_v2 = vsel %vm643_vm0, %v4189_v42, 0.0  ;;  %v1202_v3 = vsel %vm643_vm0, %v4192_v43, 0.0 }
 0x184   : > { %v1152_v4 = vadd.f32 %v1151_v60, %v1150_v8  ;;  %v1161_v5 = vadd.f32 %v1160_v61, %v1159_v54  ;;  %v1169_v6 = vrot.slane %v1168_v62, 4  ;;  %v1178_v7 = vrot.slane %v1177_v63, 4  ;;  %v4837_v54 = vld [vmem:[%s5830_s27 + $0x10] sm:$0xff]  }
 0x185   : > { %v1186_v9 = vadd.f32 %v1185_v0, %v1184_v59  ;;  %v1195_v10 = vadd.f32 %v1194_v2, %v1193_v1  ;;  %v1203_v11 = vsel %vm643_vm0, %v4193_v44, 0.0  ;;  %v1211_v12 = vsel %vm643_vm0, %v4196_v47, 0.0  ;;  %v4839_v0 = vld [vmem:[%s5830_s27 + $0x20] sm:$0xff]   ;;  %v4840_v1 = vld [vmem:[%s5830_s27 + $0x28] sm:$0xff]  }
 0x186   : > { %v1153_v13 = vrot.slane %v1152_v4, 2  ;;  %v1162_v14 = vrot.slane %v1161_v5, 2  ;;  %v1170_v15 = vadd.f32 %v1169_v6, %v1168_v62  ;;  %v1179_v16 = vadd.f32 %v1178_v7, %v1177_v63  ;;  %v4841_v6 = vld [vmem:[%s5830_s27 + $0x30] sm:$0xff]  }
 0x187   : > { %v1187_v17 = vrot.slane %v1186_v9, 4  ;;  %v1196_v18 = vrot.slane %v1195_v10, 4  ;;  %v1204_v19 = vadd.f32 %v1203_v11, %v1202_v3  ;;  %v1212_v20 = vsel %vm643_vm0, %v4197_v48, 0.0 }
 0x188   : > { %v1154_v21 = vadd.f32 %v1153_v13, %v1152_v4  ;;  %v1163_v22 = vadd.f32 %v1162_v14, %v1161_v5  ;;  %v1171_v23 = vrot.slane %v1170_v15, 2  ;;  %v1180_v24 = vrot.slane %v1179_v16, 2 }
 0x189   : > { %v1188_v25 = vadd.f32 %v1187_v17, %v1186_v9  ;;  %v1197_v26 = vadd.f32 %v1196_v18, %v1195_v10  ;;  %v1205_v27 = vrot.slane %v1204_v19, 4  ;;  %v1213_v28 = vadd.f32 %v1212_v20, %v1211_v12  ;;  %v4842_v12 = vld [vmem:[%s5830_s27 + $0x38] sm:$0xff]  }
 0x18a   : > { %v1155_v29 = vrot.slane %v1154_v21, 1  ;;  %v1164_v30 = vrot.slane %v1163_v22, 1  ;;  %v1172_v31 = vadd.f32 %v1171_v23, %v1170_v15  ;;  %v1181_v32 = vadd.f32 %v1180_v24, %v1179_v16 }
 0x18b   : > { %v1189_v33 = vrot.slane %v1188_v25, 2  ;;  %v1198_v34 = vrot.slane %v1197_v26, 2  ;;  %v1206_v35 = vadd.f32 %v1205_v27, %v1204_v19  ;;  %v1214_v36 = vrot.slane %v1213_v28, 4 }
 0x18c   : > { %v1156_v38 = vadd.f32 %v1155_v29, %v1154_v21  ;;  %v1165_v39 = vadd.f32 %v1164_v30, %v1163_v22  ;;  %v1173_v40 = vrot.slane %v1172_v31, 1  ;;  %v1182_v41 = vrot.slane %v1181_v32, 1 }
 0x18d   : > { %v1190_v42 = vadd.f32 %v1189_v33, %v1188_v25  ;;  %v1199_v43 = vadd.f32 %v1198_v34, %v1197_v26  ;;  %v1207_v44 = vrot.slane %v1206_v35, 2  ;;  %v1215_v45 = vadd.f32 %v1214_v36, %v1213_v28 }
 0x18e   : > { %v1174_v47 = vadd.f32 %v1173_v40, %v1172_v31  ;;  %v1183_v48 = vadd.f32 %v1182_v41, %v1181_v32  ;;  %v3253_v49 = vsel %vm2956_vm1, %v1165_v39, %v1156_v38  ;;  %v4456_v50 = vunpack.c.l.bf16 %v4455_v37 }
 0x18f   : > { %v1191_v51 = vrot.slane %v1190_v42, 1  ;;  %v1200_v52 = vrot.slane %v1199_v43, 1  ;;  %v1208_v53 = vadd.f32 %v1207_v44, %v1206_v35  ;;  %v1216_v8 = vrot.slane %v1215_v45, 2 }
 0x190   : > { %v3254_v56 = vsel %vm2958_vm2, %v1174_v47, %v3253_v49  ;;  %v4457_v57 = vunpack.c.h.bf16 %v4455_v37  ;;  %v4460_v58 = vunpack.c.l.bf16 %v4836_v46  ;;  %v4461_v59 = vunpack.c.h.bf16 %v4836_v46 }
 0x191   : > { %v1192_v60 = vadd.f32 %v1191_v51, %v1190_v42  ;;  %v1201_v61 = vadd.f32 %v1200_v52, %v1199_v43  ;;  %v1209_v62 = vrot.slane %v1208_v53, 1  ;;  %v1217_v63 = vadd.f32 %v1216_v8, %v1215_v45 }
 0x192   : > { %v3255_v2 = vsel %vm2960_vm3, %v1183_v48, %v3254_v56  ;;  %v4464_v3 = vunpack.c.l.bf16 %v4837_v54  ;;  %v4465_v4 = vunpack.c.h.bf16 %v4837_v54  ;;  %v4468_v5 = vunpack.c.l.bf16 %v4838_v55 }
 0x193   : > { %v1210_v7 = vadd.f32 %v1209_v62, %v1208_v53  ;;  %v1218_v9 = vrot.slane %v1217_v63, 1  ;;  %v3256_v10 = vsel %vm2962_vm4, %v1192_v60, %v3255_v2  ;;  %v4469_v11 = vunpack.c.h.bf16 %v4838_v55 }
 0x194   : > { %v3257_v13 = vsel %vm2964_vm5, %v1201_v61, %v3256_v10  ;;  %v4472_v14 = vunpack.c.l.bf16 %v4839_v0  ;;  %v4473_v15 = vunpack.c.h.bf16 %v4839_v0  ;;  %v4476_v16 = vunpack.c.l.bf16 %v4840_v1 }
 0x195   : > { %v1219_v17 = vadd.f32 %v1218_v9, %v1217_v63  ;;  %v3258_v18 = vsel %vm2966_vm6, %v1210_v7, %v3257_v13  ;;  %v4477_v19 = vunpack.c.h.bf16 %v4840_v1  ;;  %v4480_v20 = vunpack.c.l.bf16 %v4841_v6  ;;  %v4843_v13 = vld [vmem:[%s5830_s27 + $0x40] sm:$0xff]  }
 0x196   : > { %v4481_v21 = vunpack.c.h.bf16 %v4841_v6  ;;  %v4484_v22 = vunpack.c.l.bf16 %v4842_v12  ;;  %v4485_v23 = vunpack.c.h.bf16 %v4842_v12  ;;  %v2308_v24 = vsel %vm643_vm0, %v4456_v50, 0.0 }
 0x197   : > { %v3259_v25 = vsel %vm2968_vm7, %v1219_v17, %v3258_v18  ;;  %v2309_v26 = vsel %vm643_vm0, %v4457_v57, 0.0  ;;  %v2317_v27 = vsel %vm643_vm0, %v4460_v58, 0.0  ;;  %v2318_v28 = vsel %vm643_vm0, %v4461_v59, 0.0 }
 0x198   : > { %4997 = vmatmul.mubr.msk.f32.gmra.mxu1 %vm643_vm0, %v3259_v25  ;;  %v2310_v29 = vadd.f32 %v2309_v26, %v2308_v24  ;;  %v2319_v30 = vadd.f32 %v2318_v28, %v2317_v27  ;;  %v2326_v31 = vsel %vm643_vm0, %v4464_v3, 0.0  ;;  %v2327_v32 = vsel %vm643_vm0, %v4465_v4, 0.0 }
 0x199   : > { %v2328_v33 = vadd.f32 %v2327_v32, %v2326_v31  ;;  %v2335_v34 = vsel %vm643_vm0, %v4468_v5, 0.0  ;;  %v2336_v35 = vsel %vm643_vm0, %v4469_v11, 0.0  ;;  %v2344_v36 = vsel %vm643_vm0, %v4472_v14, 0.0  ;;  %v4845_v31 = vld [vmem:[%s5830_s27 + $0x50] sm:$0xff]   ;;  %v4846_v32 = vld [vmem:[%s5830_s27 + $0x58] sm:$0xff]  }
 0x19a   : > { %v2311_v37 = vrot.slane %v2310_v29, 4  ;;  %v2320_v38 = vrot.slane %v2319_v30, 4  ;;  %v2337_v39 = vadd.f32 %v2336_v35, %v2335_v34  ;;  %v2345_v40 = vsel %vm643_vm0, %v4473_v15, 0.0 }
 0x19b   : > { %v2329_v41 = vrot.slane %v2328_v33, 4  ;;  %v2346_v42 = vadd.f32 %v2345_v40, %v2344_v36  ;;  %v2353_v43 = vsel %vm643_vm0, %v4476_v16, 0.0  ;;  %v2354_v44 = vsel %vm643_vm0, %v4477_v19, 0.0 }
 0x19c   : > { %v2312_v45 = vadd.f32 %v2311_v37, %v2310_v29  ;;  %v2321_v46 = vadd.f32 %v2320_v38, %v2319_v30  ;;  %v2338_v47 = vrot.slane %v2337_v39, 4  ;;  %v2355_v48 = vadd.f32 %v2354_v44, %v2353_v43  ;;  %v4847_v37 = vld [vmem:[%s5830_s27 + $0x60] sm:$0xff]   ;;  %v4849_v43 = vld [vmem:[%s5830_s27 + $0x70] sm:$0xff]  }
 0x19d   : > { %v2330_v49 = vadd.f32 %v2329_v41, %v2328_v33  ;;  %v2347_v50 = vrot.slane %v2346_v42, 4  ;;  %v2362_v51 = vsel %vm643_vm0, %v4480_v20, 0.0  ;;  %v2363_v52 = vsel %vm643_vm0, %v4481_v21, 0.0 }
 0x19e   : > { %v2313_v53 = vrot.slane %v2312_v45, 2  ;;  %v2322_v8 = vrot.slane %v2321_v46, 2  ;;  %v2339_v54 = vadd.f32 %v2338_v47, %v2337_v39  ;;  %v2356_v55 = vrot.slane %v2355_v48, 4 }
 0x19f   : > { %v2331_v56 = vrot.slane %v2330_v49, 2  ;;  %v2348_v57 = vadd.f32 %v2347_v50, %v2346_v42  ;;  %v2364_v58 = vadd.f32 %v2363_v52, %v2362_v51  ;;  %v2371_v59 = vsel %vm643_vm0, %v4484_v22, 0.0  ;;  %v4844_v22 = vld [vmem:[%s5830_s27 + $0x48] sm:$0xff]  }
 0x1a0   : > { %v2314_v60 = vadd.f32 %v2313_v53, %v2312_v45  ;;  %v2323_v61 = vadd.f32 %v2322_v8, %v2321_v46  ;;  %v2340_v62 = vrot.slane %v2339_v54, 2  ;;  %v2357_v63 = vadd.f32 %v2356_v55, %v2355_v48  ;;  %v4848_v42 = vld [vmem:[%s5830_s27 + $0x68] sm:$0xff]   ;;  %v4850_v48 = vld [vmem:[%s5830_s27 + $0x78] sm:$0xff]  }
 0x1a1   : > { %v2332_v0 = vadd.f32 %v2331_v56, %v2330_v49  ;;  %v2349_v1 = vrot.slane %v2348_v57, 2  ;;  %v2365_v2 = vrot.slane %v2364_v58, 4  ;;  %v2372_v3 = vsel %vm643_vm0, %v4485_v23, 0.0 }
 0x1a2   : > { %v2315_v4 = vrot.slane %v2314_v60, 1  ;;  %v2324_v5 = vrot.slane %v2323_v61, 1  ;;  %v2341_v6 = vadd.f32 %v2340_v62, %v2339_v54  ;;  %v2358_v7 = vrot.slane %v2357_v63, 2 }
 0x1a3   : > { %v2333_v9 = vrot.slane %v2332_v0, 1  ;;  %v2350_v10 = vadd.f32 %v2349_v1, %v2348_v57  ;;  %v2366_v11 = vadd.f32 %v2365_v2, %v2364_v58  ;;  %v2373_v12 = vadd.f32 %v2372_v3, %v2371_v59 }
 0x1a4   : > { %v2316_v14 = vadd.f32 %v2315_v4, %v2314_v60  ;;  %v2325_v15 = vadd.f32 %v2324_v5, %v2323_v61  ;;  %v2342_v16 = vrot.slane %v2341_v6, 1  ;;  %v2359_v17 = vadd.f32 %v2358_v7, %v2357_v63 }
 0x1a5   : > { %v2334_v18 = vadd.f32 %v2333_v9, %v2332_v0  ;;  %v2351_v19 = vrot.slane %v2350_v10, 1  ;;  %v2367_v20 = vrot.slane %v2366_v11, 2  ;;  %v2374_v21 = vrot.slane %v2373_v12, 4 }
 0x1a6   : > { %v2343_v23 = vadd.f32 %v2342_v16, %v2341_v6  ;;  %v2360_v24 = vrot.slane %v2359_v17, 1  ;;  %v3449_v25 = vsel %vm2956_vm1, %v2325_v15, %v2316_v14  ;;  %v4488_v26 = vunpack.c.l.bf16 %v4843_v13 }
 0x1a7   : > { %v2352_v27 = vadd.f32 %v2351_v19, %v2350_v10  ;;  %v2368_v28 = vadd.f32 %v2367_v20, %v2366_v11  ;;  %v2375_v29 = vadd.f32 %v2374_v21, %v2373_v12  ;;  %v3450_v30 = vsel %vm2958_vm2, %v2334_v18, %v3449_v25 }
 0x1a8   : > { %v2361_v33 = vadd.f32 %v2360_v24, %v2359_v17  ;;  %v3451_v34 = vsel %vm2960_vm3, %v2343_v23, %v3450_v30  ;;  %v4489_v35 = vunpack.c.h.bf16 %v4843_v13  ;;  %v4492_v36 = vunpack.c.l.bf16 %v4844_v22 }
 0x1a9   : > { %v2369_v38 = vrot.slane %v2368_v28, 1  ;;  %v2376_v39 = vrot.slane %v2375_v29, 2  ;;  %v3452_v40 = vsel %vm2962_vm4, %v2352_v27, %v3451_v34  ;;  %v4493_v41 = vunpack.c.h.bf16 %v4844_v22 }
 0x1aa   : > { %v3453_v44 = vsel %vm2964_vm5, %v2361_v33, %v3452_v40  ;;  %v4496_v45 = vunpack.c.l.bf16 %v4845_v31  ;;  %v4497_v46 = vunpack.c.h.bf16 %v4845_v31  ;;  %v4500_v47 = vunpack.c.l.bf16 %v4846_v32 }
 0x1ab   : > { %v2370_v49 = vadd.f32 %v2369_v38, %v2368_v28  ;;  %v2377_v50 = vadd.f32 %v2376_v39, %v2375_v29  ;;  %v4501_v51 = vunpack.c.h.bf16 %v4846_v32  ;;  %v4504_v52 = vunpack.c.l.bf16 %v4847_v37 }
 0x1ac   : > { %v4505_v53 = vunpack.c.h.bf16 %v4847_v37  ;;  %v4508_v8 = vunpack.c.l.bf16 %v4848_v42  ;;  %v4509_v54 = vunpack.c.h.bf16 %v4848_v42  ;;  %v4512_v55 = vunpack.c.l.bf16 %v4849_v43 }
 0x1ad   : > { %v2378_v56 = vrot.slane %v2377_v50, 1  ;;  %v3454_v57 = vsel %vm2966_vm6, %v2370_v49, %v3453_v44  ;;  %v4513_v58 = vunpack.c.h.bf16 %v4849_v43  ;;  %v4516_v59 = vunpack.c.l.bf16 %v4850_v48  ;;  %v4851_v49 = vld [vmem:[%s5830_s27 + $0x80] sm:$0xff]  }
 0x1ae   : > { %v4517_v60 = vunpack.c.h.bf16 %v4850_v48  ;;  %v2380_v61 = vsel %vm643_vm0, %v4488_v26, 0.0  ;;  %v2381_v62 = vsel %vm643_vm0, %v4489_v35, 0.0  ;;  %v2389_v63 = vsel %vm643_vm0, %v4492_v36, 0.0 }
 0x1af   : > { %v2379_v0 = vadd.f32 %v2378_v56, %v2377_v50  ;;  %v2382_v1 = vadd.f32 %v2381_v62, %v2380_v61  ;;  %v2390_v2 = vsel %vm643_vm0, %v4493_v41, 0.0  ;;  %v2398_v3 = vsel %vm643_vm0, %v4496_v45, 0.0 }
 0x1b0   : > { %v2391_v4 = vadd.f32 %v2390_v2, %v2389_v63  ;;  %v2399_v5 = vsel %vm643_vm0, %v4497_v46, 0.0  ;;  %v2407_v6 = vsel %vm643_vm0, %v4500_v47, 0.0  ;;  %v2408_v7 = vsel %vm643_vm0, %v4501_v51, 0.0  ;;  %v4853_v2 = vld [vmem:[%s5830_s27 + $0x90] sm:$0xff]  }
 0x1b1   : > { %v3455_v9 = vsel %vm2968_vm7, %v2379_v0, %v3454_v57  ;;  %v2383_v10 = vrot.slane %v2382_v1, 4  ;;  %v2400_v11 = vadd.f32 %v2399_v5, %v2398_v3  ;;  %v2409_v12 = vadd.f32 %v2408_v7, %v2407_v6  ;;  %v4852_v57 = vld [vmem:[%s5830_s27 + $0x88] sm:$0xff]   ;;  %v4854_v7 = vld [vmem:[%s5830_s27 + $0x98] sm:$0xff]  }
 0x1b2   : > { %5007 = vmatprep.mubr.msk.f32.mxu0 %vm643_vm0, %v3455_v9  ;;  %v2392_v13 = vrot.slane %v2391_v4, 4  ;;  %v2416_v14 = vsel %vm643_vm0, %v4504_v52, 0.0  ;;  %v2417_v15 = vsel %vm643_vm0, %v4505_v53, 0.0  ;;  %v2425_v16 = vsel %vm643_vm0, %v4508_v8, 0.0 }
 0x1b3   : > { %v2384_v17 = vadd.f32 %v2383_v10, %v2382_v1  ;;  %v2401_v18 = vrot.slane %v2400_v11, 4  ;;  %v2410_v19 = vrot.slane %v2409_v12, 4  ;;  %v2418_v20 = vadd.f32 %v2417_v15, %v2416_v14  ;;  %v4856_v14 = vld [vmem:[%s5830_s27 + $0xa8] sm:$0xff]  }
 0x1b4   : > { %v2393_v21 = vadd.f32 %v2392_v13, %v2391_v4  ;;  %v2426_v22 = vsel %vm643_vm0, %v4509_v54, 0.0  ;;  %v2434_v23 = vsel %vm643_vm0, %v4512_v55, 0.0  ;;  %v2435_v24 = vsel %vm643_vm0, %v4513_v58, 0.0  ;;  %v4855_v13 = vld [vmem:[%s5830_s27 + $0xa0] sm:$0xff]  }
 0x1b5   : > { %v2385_v25 = vrot.slane %v2384_v17, 2  ;;  %v2402_v26 = vadd.f32 %v2401_v18, %v2400_v11  ;;  %v2411_v27 = vadd.f32 %v2410_v19, %v2409_v12  ;;  %v2419_v28 = vrot.slane %v2418_v20, 4  ;;  %v4857_v19 = vld [vmem:[%s5830_s27 + $0xb0] sm:$0xff]  }
 0x1b6   : > { %v2394_v29 = vrot.slane %v2393_v21, 2  ;;  %v2427_v30 = vadd.f32 %v2426_v22, %v2425_v16  ;;  %v2436_v31 = vadd.f32 %v2435_v24, %v2434_v23  ;;  %v2443_v32 = vsel %vm643_vm0, %v4516_v59, 0.0  ;;  %v4858_v24 = vld [vmem:[%s5830_s27 + $0xb8] sm:$0xff]  }
 0x1b7   : > { %v2386_v33 = vadd.f32 %v2385_v25, %v2384_v17  ;;  %v2403_v34 = vrot.slane %v2402_v26, 2  ;;  %v2412_v35 = vrot.slane %v2411_v27, 2  ;;  %v2420_v36 = vadd.f32 %v2419_v28, %v2418_v20 }
 0x1b8   : > { %v2395_v37 = vadd.f32 %v2394_v29, %v2393_v21  ;;  %v2428_v38 = vrot.slane %v2427_v30, 4  ;;  %v2437_v39 = vrot.slane %v2436_v31, 4  ;;  %v2444_v40 = vsel %vm643_vm0, %v4517_v60, 0.0 }
 0x1b9   : > { %v2387_v41 = vrot.slane %v2386_v33, 1  ;;  %v2404_v42 = vadd.f32 %v2403_v34, %v2402_v26  ;;  %v2413_v43 = vadd.f32 %v2412_v35, %v2411_v27  ;;  %v2421_v44 = vrot.slane %v2420_v36, 2 }
 0x1ba   : > { %v2396_v45 = vrot.slane %v2395_v37, 1  ;;  %v2429_v46 = vadd.f32 %v2428_v38, %v2427_v30  ;;  %v2438_v47 = vadd.f32 %v2437_v39, %v2436_v31  ;;  %v2445_v48 = vadd.f32 %v2444_v40, %v2443_v32 }
 0x1bb   : > { %v2388_v50 = vadd.f32 %v2387_v41, %v2386_v33  ;;  %v2405_v51 = vrot.slane %v2404_v42, 1  ;;  %v2414_v52 = vrot.slane %v2413_v43, 1  ;;  %v2422_v53 = vadd.f32 %v2421_v44, %v2420_v36 }
 0x1bc   : > { %v2397_v8 = vadd.f32 %v2396_v45, %v2395_v37  ;;  %v2430_v54 = vrot.slane %v2429_v46, 2  ;;  %v2439_v55 = vrot.slane %v2438_v47, 2  ;;  %v2446_v56 = vrot.slane %v2445_v48, 4 }
 0x1bd   : > { %v2406_v58 = vadd.f32 %v2405_v51, %v2404_v42  ;;  %v2415_v59 = vadd.f32 %v2414_v52, %v2413_v43  ;;  %v2423_v60 = vrot.slane %v2422_v53, 1  ;;  %v4520_v61 = vunpack.c.l.bf16 %v4851_v49 }
 0x1be   : > { %v2431_v62 = vadd.f32 %v2430_v54, %v2429_v46  ;;  %v2440_v63 = vadd.f32 %v2439_v55, %v2438_v47  ;;  %v2447_v0 = vadd.f32 %v2446_v56, %v2445_v48  ;;  %v3456_v1 = vsel %vm2956_vm1, %v2397_v8, %v2388_v50 }
 0x1bf   : > { %v2424_v3 = vadd.f32 %v2423_v60, %v2422_v53  ;;  %v3457_v4 = vsel %vm2958_vm2, %v2406_v58, %v3456_v1  ;;  %v4521_v5 = vunpack.c.h.bf16 %v4851_v49  ;;  %v4524_v6 = vunpack.c.l.bf16 %v4852_v57 }
 0x1c0   : > { %v2432_v9 = vrot.slane %v2431_v62, 1  ;;  %v2441_v10 = vrot.slane %v2440_v63, 1  ;;  %v2448_v11 = vrot.slane %v2447_v0, 2  ;;  %v3458_v12 = vsel %vm2960_vm3, %v2415_v59, %v3457_v4 }
 0x1c1   : > { %v3459_v15 = vsel %vm2962_vm4, %v2424_v3, %v3458_v12  ;;  %v4525_v16 = vunpack.c.h.bf16 %v4852_v57  ;;  %v4528_v17 = vunpack.c.l.bf16 %v4853_v2  ;;  %v4529_v18 = vunpack.c.h.bf16 %v4853_v2 }
 0x1c2   : > { %v2433_v20 = vadd.f32 %v2432_v9, %v2431_v62  ;;  %v2442_v21 = vadd.f32 %v2441_v10, %v2440_v63  ;;  %v2449_v22 = vadd.f32 %v2448_v11, %v2447_v0  ;;  %v4532_v23 = vunpack.c.l.bf16 %v4854_v7 }
 0x1c3   : > { %v4533_v25 = vunpack.c.h.bf16 %v4854_v7  ;;  %v4536_v26 = vunpack.c.l.bf16 %v4855_v13  ;;  %v4537_v27 = vunpack.c.h.bf16 %v4855_v13  ;;  %v4540_v28 = vunpack.c.l.bf16 %v4856_v14 }
 0x1c4   : > { %v2450_v29 = vrot.slane %v2449_v22, 1  ;;  %v3460_v30 = vsel %vm2964_vm5, %v2433_v20, %v3459_v15  ;;  %v4541_v31 = vunpack.c.h.bf16 %v4856_v14  ;;  %v4544_v32 = vunpack.c.l.bf16 %v4857_v19 }
 0x1c5   : > { %v3461_v33 = vsel %vm2966_vm6, %v2442_v21, %v3460_v30  ;;  %v4545_v34 = vunpack.c.h.bf16 %v4857_v19  ;;  %v4548_v35 = vunpack.c.l.bf16 %v4858_v24  ;;  %v4549_v36 = vunpack.c.h.bf16 %v4858_v24 }
 0x1c6   : > { %v2451_v37 = vadd.f32 %v2450_v29, %v2449_v22  ;;  %v2452_v38 = vsel %vm643_vm0, %v4520_v61, 0.0  ;;  %v2453_v39 = vsel %vm643_vm0, %v4521_v5, 0.0  ;;  %v2461_v40 = vsel %vm643_vm0, %v4524_v6, 0.0 }
 0x1c7   : > { %v2454_v41 = vadd.f32 %v2453_v39, %v2452_v38  ;;  %v2462_v42 = vsel %vm643_vm0, %v4525_v16, 0.0  ;;  %v2470_v43 = vsel %vm643_vm0, %v4528_v17, 0.0  ;;  %v2471_v44 = vsel %vm643_vm0, %v4529_v18, 0.0  ;;  %v4860_v38 = vld [vmem:[%s5830_s27 + $0xc8] sm:$0xff]   ;;  %v5934_v39 = vld [vmem:[%s5830_s27 + $0xd0] sm:$0xff]  }
 0x1c8   : > { %v3462_v45 = vsel %vm2968_vm7, %v2451_v37, %v3461_v33  ;;  %v2463_v46 = vadd.f32 %v2462_v42, %v2461_v40  ;;  %v2472_v47 = vadd.f32 %v2471_v44, %v2470_v43  ;;  %v2479_v48 = vsel %vm643_vm0, %v4532_v23, 0.0  ;;  %v3672_v44 = vld [vmem:[%s6226_s7 + $0x78] sm:$0xff] }
 0x1c9   : > { %5008 = vmatmul.mubr.msk.f32.vlgmr.msra.gmra.mxu0 %vm643_vm0, %v3462_v45  ;;  %v2455_v49 = vrot.slane %v2454_v41, 4  ;;  %v2480_v50 = vsel %vm643_vm0, %v4533_v25, 0.0  ;;  %v2488_v51 = vsel %vm643_vm0, %v4536_v26, 0.0  ;;  %v2489_v52 = vsel %vm643_vm0, %v4537_v27, 0.0  ;;  %v5929_v25 = vld [vmem:[%s5830_s27 + $0xc0] sm:$0xff]   ;;  %v3671_v45 = vld [vmem:[%s6226_s7 + $0x70] sm:$0xff]  ;;  %5019 = vmatprep.subr.mxu1 %v3672_v44 }
 0x1ca   : > { %v2464_v53 = vrot.slane %v2463_v46, 4  ;;  %v2473_v8 = vrot.slane %v2472_v47, 4  ;;  %v2481_v54 = vadd.f32 %v2480_v50, %v2479_v48  ;;  %v2490_v55 = vadd.f32 %v2489_v52, %v2488_v51  ;;  %v4862_v50 = vld [vmem:[%s5830_s27 + $0xd8] sm:$0xff]   ;;  %v4863_v51 = vld [vmem:[%s5830_s27 + $0xe0] sm:$0xff]   ;;  %5020 = vmatpush3.msra.mxu1 %v3672_v44 }
 0x1cb   : > { %v2456_v56 = vadd.f32 %v2455_v49, %v2454_v41  ;;  %v2497_v57 = vsel %vm643_vm0, %v4540_v28, 0.0  ;;  %v2498_v58 = vsel %vm643_vm0, %v4541_v31, 0.0  ;;  %v2506_v59 = vsel %vm643_vm0, %v4544_v32, 0.0  ;;  %5021 = vmatprep.subr.mxu1 %v3671_v45 }
 0x1cc   : > { %v2465_v60 = vadd.f32 %v2464_v53, %v2463_v46  ;;  %v2474_v61 = vadd.f32 %v2473_v8, %v2472_v47  ;;  %v2482_v62 = vrot.slane %v2481_v54, 4  ;;  %v2491_v63 = vrot.slane %v2490_v55, 4  ;;  %5022 = vmatpush3.msra.mxu1 %v3671_v45 }
 0x1cd   : > { %v2457_v0 = vrot.slane %v2456_v56, 2  ;;  %v2499_v1 = vadd.f32 %v2498_v58, %v2497_v57  ;;  %v2507_v2 = vsel %vm643_vm0, %v4545_v34, 0.0  ;;  %v2515_v3 = vsel %vm643_vm0, %v4548_v35, 0.0 }
 0x1ce   : > { %v2466_v4 = vrot.slane %v2465_v60, 2  ;;  %v2475_v5 = vrot.slane %v2474_v61, 2  ;;  %v2483_v6 = vadd.f32 %v2482_v62, %v2481_v54  ;;  %v2492_v7 = vadd.f32 %v2491_v63, %v2490_v55  ;;  %v3670_v55 = vld [vmem:[%s6226_s7 + $0x68] sm:$0xff] }
 0x1cf   : > { %v2458_v9 = vadd.f32 %v2457_v0, %v2456_v56  ;;  %v2500_v10 = vrot.slane %v2499_v1, 4  ;;  %v2508_v11 = vadd.f32 %v2507_v2, %v2506_v59  ;;  %v2516_v12 = vsel %vm643_vm0, %v4549_v36, 0.0  ;;  %v5957_v2 = vld [vmem:[%s5830_s27 + $0xf8] sm:$0xff]   ;;  %5023 = vmatprep.subr.mxu1 %v3670_v55 }
 0x1d0   : > { %v2467_v13 = vadd.f32 %v2466_v4, %v2465_v60  ;;  %v2476_v14 = vadd.f32 %v2475_v5, %v2474_v61  ;;  %v2484_v15 = vrot.slane %v2483_v6, 2  ;;  %v2493_v16 = vrot.slane %v2492_v7, 2  ;;  %v4864_v60 = vld [vmem:[%s5830_s27 + $0xe8] sm:$0xff]   ;;  %v4865_v61 = vld [vmem:[%s5830_s27 + $0xf0] sm:$0xff]   ;;  %5024 = vmatpush3.msra.mxu1 %v3670_v55 }
 0x1d1   : > { %v2459_v17 = vrot.slane %v2458_v9, 1  ;;  %v2501_v18 = vadd.f32 %v2500_v10, %v2499_v1  ;;  %v2509_v19 = vrot.slane %v2508_v11, 4  ;;  %v2517_v20 = vadd.f32 %v2516_v12, %v2515_v3  ;;  %v3669_v3 = vld [vmem:[%s6226_s7 + $0x60] sm:$0xff] }
 0x1d2   : > { %v2468_v21 = vrot.slane %v2467_v13, 1  ;;  %v2477_v22 = vrot.slane %v2476_v14, 1  ;;  %v2485_v23 = vadd.f32 %v2484_v15, %v2483_v6  ;;  %v2494_v24 = vadd.f32 %v2493_v16, %v2492_v7  ;;  %5025 = vmatprep.subr.mxu1 %v3669_v3 }
 0x1d3   : > { %v2460_v26 = vadd.f32 %v2459_v17, %v2458_v9  ;;  %v2502_v27 = vrot.slane %v2501_v18, 2  ;;  %v2510_v28 = vadd.f32 %v2509_v19, %v2508_v11  ;;  %v2518_v29 = vrot.slane %v2517_v20, 4  ;;  %5026 = vmatpush3.msra.mxu1 %v3669_v3 }
 0x1d4   : > { %v2469_v30 = vadd.f32 %v2468_v21, %v2467_v13  ;;  %v2478_v31 = vadd.f32 %v2477_v22, %v2476_v14  ;;  %v2486_v32 = vrot.slane %v2485_v23, 1  ;;  %v2495_v33 = vrot.slane %v2494_v24, 1  ;;  %v3668_v13 = vld [vmem:[%s6226_s7 + $0x58] sm:$0xff]  ;;  %v3667_v22 = vld [vmem:[%s6226_s7 + $0x50] sm:$0xff] }
 0x1d5   : > { %v2503_v34 = vadd.f32 %v2502_v27, %v2501_v18  ;;  %v2511_v35 = vrot.slane %v2510_v28, 2  ;;  %v2519_v36 = vadd.f32 %v2518_v29, %v2517_v20  ;;  %v4552_v37 = vunpack.c.l.bf16 %v5929_v25  ;;  %5027 = vmatprep.subr.mxu1 %v3668_v13 }
 0x1d6   : > { %v2487_v40 = vadd.f32 %v2486_v32, %v2485_v23  ;;  %v2496_v41 = vadd.f32 %v2495_v33, %v2494_v24  ;;  %v3463_v42 = vsel %vm2956_vm1, %v2469_v30, %v2460_v26  ;;  %v4553_v43 = vunpack.c.h.bf16 %v5929_v25  ;;  %5028 = vmatpush3.msra.mxu1 %v3668_v13 }
 0x1d7   : > { %v2504_v46 = vrot.slane %v2503_v34, 1  ;;  %v2512_v47 = vadd.f32 %v2511_v35, %v2510_v28  ;;  %v2520_v48 = vrot.slane %v2519_v36, 2  ;;  %v3464_v49 = vsel %vm2958_vm2, %v2478_v31, %v3463_v42  ;;  %v3666_v31 = vld [vmem:[%s6226_s7 + $0x48] sm:$0xff]  ;;  %5029 = vmatprep.subr.mxu1 %v3667_v22 }
 0x1d8   : > { %v3465_v52 = vsel %vm2960_vm3, %v2487_v40, %v3464_v49  ;;  %v4556_v53 = vunpack.c.l.bf16 %v4860_v38  ;;  %v4557_v8 = vunpack.c.h.bf16 %v4860_v38  ;;  %v4560_v54 = vunpack.c.l.bf16 %v5934_v39  ;;  %5030 = vmatpush3.msra.mxu1 %v3667_v22  ;;  %v3665_v40 = vld [vmem:[%s6226_s7 + $0x40] sm:$0xff]  ;;  %v3664_v49 = vld [vmem:[%s6226_s7 + $0x38] sm:$0xff] }
 0x1d9   : > { %v2505_v56 = vadd.f32 %v2504_v46, %v2503_v34  ;;  %v2513_v57 = vrot.slane %v2512_v47, 1  ;;  %v2521_v58 = vadd.f32 %v2520_v48, %v2519_v36  ;;  %v3466_v59 = vsel %vm2962_vm4, %v2496_v41, %v3465_v52  ;;  %5031 = vmatprep.subr.mxu1 %v3666_v31 }
 0x1da   : > { %v4561_v62 = vunpack.c.h.bf16 %v5934_v39  ;;  %v4564_v63 = vunpack.c.l.bf16 %v4862_v50  ;;  %v4565_v0 = vunpack.c.h.bf16 %v4862_v50  ;;  %v4568_v1 = vunpack.c.l.bf16 %v4863_v51  ;;  %5032 = vmatpush3.msra.mxu1 %v3666_v31  ;;  %v4870_v31 = vld [vmem:[%s5830_s27 + $0x118] sm:$0xff]  }
 0x1db   : > { %v2514_v4 = vadd.f32 %v2513_v57, %v2512_v47  ;;  %v2522_v5 = vrot.slane %v2521_v58, 1  ;;  %v3467_v6 = vsel %vm2964_vm5, %v2505_v56, %v3466_v59  ;;  %v4569_v7 = vunpack.c.h.bf16 %v4863_v51  ;;  %5033 = vmatprep.subr.mxu1 %v3665_v40  ;;  %v3663_v57 = vld [vmem:[%s6226_s7 + $0x30] sm:$0xff] }
 0x1dc   : > { %v4572_v9 = vunpack.c.l.bf16 %v4864_v60  ;;  %v4573_v10 = vunpack.c.h.bf16 %v4864_v60  ;;  %v4576_v11 = vunpack.c.l.bf16 %v4865_v61  ;;  %v4577_v12 = vunpack.c.h.bf16 %v4865_v61  ;;  %5034 = vmatpush3.msra.mxu1 %v3665_v40  ;;  %v4871_v40 = vld [vmem:[%s5830_s27 + $0x120] sm:$0xff]  }
 0x1dd   : > { %v2523_v14 = vadd.f32 %v2522_v5, %v2521_v58  ;;  %v3468_v15 = vsel %vm2966_vm6, %v2514_v4, %v3467_v6  ;;  %v4580_v16 = vunpack.c.l.bf16 %v5957_v2  ;;  %v4581_v17 = vunpack.c.h.bf16 %v5957_v2  ;;  %5035 = vmatprep.subr.mxu1 %v3664_v49  ;;  %v3662_v2 = vld [vmem:[%s6226_s7 + $0x28] sm:$0xff] }
 0x1de   : > { %v2524_v18 = vsel %vm643_vm0, %v4552_v37, 0.0  ;;  %v2525_v19 = vsel %vm643_vm0, %v4553_v43, 0.0  ;;  %v2533_v20 = vsel %vm643_vm0, %v4556_v53, 0.0  ;;  %v2534_v21 = vsel %vm643_vm0, %v4557_v8, 0.0  ;;  %5036 = vmatpush3.msra.mxu1 %v3664_v49 }
 0x1df   : > { %v3469_v23 = vsel %vm2968_vm7, %v2523_v14, %v3468_v15  ;;  %v2526_v24 = vadd.f32 %v2525_v19, %v2524_v18  ;;  %v2535_v25 = vadd.f32 %v2534_v21, %v2533_v20  ;;  %v2542_v26 = vsel %vm643_vm0, %v4560_v54, 0.0  ;;  %5037 = vmatprep.subr.mxu1 %v3663_v57  ;;  %v4868_v21 = vld [vmem:[%s5830_s27 + $0x108] sm:$0xff]  }
 0x1e0   : > { %5010 = vmatprep.mubr.msk.f32.mxu0 %vm643_vm0, %v3469_v23  ;;  %v2543_v27 = vsel %vm643_vm0, %v4561_v62, 0.0  ;;  %v2551_v28 = vsel %vm643_vm0, %v4564_v63, 0.0  ;;  %v2552_v29 = vsel %vm643_vm0, %v4565_v0, 0.0  ;;  %v2560_v30 = vsel %vm643_vm0, %v4568_v1, 0.0  ;;  %5038 = vmatpush3.msra.mxu1 %v3663_v57 }
 0x1e1   : > { %v2527_v32 = vrot.slane %v2526_v24, 4  ;;  %v2536_v33 = vrot.slane %v2535_v25, 4  ;;  %v2544_v34 = vadd.f32 %v2543_v27, %v2542_v26  ;;  %v2553_v35 = vadd.f32 %v2552_v29, %v2551_v28  ;;  %5039 = vmatprep.subr.mxu1 %v3662_v2 }
 0x1e2   : > { %v2561_v36 = vsel %vm643_vm0, %v4569_v7, 0.0  ;;  %v2569_v37 = vsel %vm643_vm0, %v4572_v9, 0.0  ;;  %v2570_v38 = vsel %vm643_vm0, %v4573_v10, 0.0  ;;  %v2578_v39 = vsel %vm643_vm0, %v4576_v11, 0.0  ;;  %5040 = vmatpush3.msra.mxu1 %v3662_v2 }
 0x1e3   : > { %v2528_v41 = vadd.f32 %v2527_v32, %v2526_v24  ;;  %v2537_v42 = vadd.f32 %v2536_v33, %v2535_v25  ;;  %v2545_v43 = vrot.slane %v2544_v34, 4  ;;  %v2554_v44 = vrot.slane %v2553_v35, 4 }
 0x1e4   : > { %v2562_v45 = vadd.f32 %v2561_v36, %v2560_v30  ;;  %v2571_v46 = vadd.f32 %v2570_v38, %v2569_v37  ;;  %v2579_v47 = vsel %vm643_vm0, %v4577_v12, 0.0  ;;  %v2587_v48 = vsel %vm643_vm0, %v4580_v16, 0.0  ;;  %v4867_v12 = vld [vmem:[%s5830_s27 + $0x100] sm:$0xff]   ;;  %v4869_v30 = vld [vmem:[%s5830_s27 + $0x110] sm:$0xff]  }
 0x1e5   : > { %v2529_v50 = vrot.slane %v2528_v41, 2  ;;  %v2538_v51 = vrot.slane %v2537_v42, 2  ;;  %v2546_v52 = vadd.f32 %v2545_v43, %v2544_v34  ;;  %v2555_v53 = vadd.f32 %v2554_v44, %v2553_v35 }
 0x1e6   : > { %v2563_v8 = vrot.slane %v2562_v45, 4  ;;  %v2572_v54 = vrot.slane %v2571_v46, 4  ;;  %v2580_v55 = vadd.f32 %v2579_v47, %v2578_v39  ;;  %v2588_v56 = vsel %vm643_vm0, %v4581_v17, 0.0 }
 0x1e7   : > { %v2530_v58 = vadd.f32 %v2529_v50, %v2528_v41  ;;  %v2539_v59 = vadd.f32 %v2538_v51, %v2537_v42  ;;  %v2547_v60 = vrot.slane %v2546_v52, 2  ;;  %v2556_v61 = vrot.slane %v2555_v53, 2  ;;  %v4872_v41 = vld [vmem:[%s5830_s27 + $0x128] sm:$0xff]   ;;  %v4874_v51 = vld [vmem:[%s5830_s27 + $0x138] sm:$0xff]  }
 0x1e8   : > { %v2564_v62 = vadd.f32 %v2563_v8, %v2562_v45  ;;  %v2573_v63 = vadd.f32 %v2572_v54, %v2571_v46  ;;  %v2581_v0 = vrot.slane %v2580_v55, 4  ;;  %v2589_v1 = vadd.f32 %v2588_v56, %v2587_v48  ;;  %v4873_v46 = vld [vmem:[%s5830_s27 + $0x130] sm:$0xff]  }
 0x1e9   : > { %v2531_v3 = vrot.slane %v2530_v58, 1  ;;  %v2540_v4 = vrot.slane %v2539_v59, 1  ;;  %v2548_v5 = vadd.f32 %v2547_v60, %v2546_v52  ;;  %v2557_v6 = vadd.f32 %v2556_v61, %v2555_v53 }
 0x1ea   : > { %v2565_v7 = vrot.slane %v2564_v62, 2  ;;  %v2574_v9 = vrot.slane %v2573_v63, 2  ;;  %v2582_v10 = vadd.f32 %v2581_v0, %v2580_v55  ;;  %v2590_v11 = vrot.slane %v2589_v1, 4 }
 0x1eb   : > { %v2532_v13 = vadd.f32 %v2531_v3, %v2530_v58  ;;  %v2541_v14 = vadd.f32 %v2540_v4, %v2539_v59  ;;  %v2549_v15 = vrot.slane %v2548_v5, 1  ;;  %v2558_v16 = vrot.slane %v2557_v6, 1 }
 0x1ec   : > { %v2566_v17 = vadd.f32 %v2565_v7, %v2564_v62  ;;  %v2575_v18 = vadd.f32 %v2574_v9, %v2573_v63  ;;  %v2583_v19 = vrot.slane %v2582_v10, 2  ;;  %v2591_v20 = vadd.f32 %v2590_v11, %v2589_v1 }
 0x1ed   : > { %v2550_v22 = vadd.f32 %v2549_v15, %v2548_v5  ;;  %v2559_v23 = vadd.f32 %v2558_v16, %v2557_v6  ;;  %v3470_v24 = vsel %vm2956_vm1, %v2541_v14, %v2532_v13  ;;  %v4584_v25 = vunpack.c.l.bf16 %v4867_v12 }
 0x1ee   : > { %v2567_v26 = vrot.slane %v2566_v17, 1  ;;  %v2576_v27 = vrot.slane %v2575_v18, 1  ;;  %v2584_v28 = vadd.f32 %v2583_v19, %v2582_v10  ;;  %v2592_v29 = vrot.slane %v2591_v20, 2 }
 0x1ef   : > { %v3471_v32 = vsel %vm2958_vm2, %v2550_v22, %v3470_v24  ;;  %v4585_v33 = vunpack.c.h.bf16 %v4867_v12  ;;  %v4588_v34 = vunpack.c.l.bf16 %v4868_v21  ;;  %v4589_v35 = vunpack.c.h.bf16 %v4868_v21 }
 0x1f0   : > { %v2568_v36 = vadd.f32 %v2567_v26, %v2566_v17  ;;  %v2577_v37 = vadd.f32 %v2576_v27, %v2575_v18  ;;  %v2585_v38 = vrot.slane %v2584_v28, 1  ;;  %v2593_v39 = vadd.f32 %v2592_v29, %v2591_v20 }
 0x1f1   : > { %v3472_v42 = vsel %vm2960_vm3, %v2559_v23, %v3471_v32  ;;  %v4592_v43 = vunpack.c.l.bf16 %v4869_v30  ;;  %v4593_v44 = vunpack.c.h.bf16 %v4869_v30  ;;  %v4596_v45 = vunpack.c.l.bf16 %v4870_v31 }
 0x1f2   : > { %v2586_v47 = vadd.f32 %v2585_v38, %v2584_v28  ;;  %v2594_v48 = vrot.slane %v2593_v39, 1  ;;  %v3473_v49 = vsel %vm2962_vm4, %v2568_v36, %v3472_v42  ;;  %v4597_v50 = vunpack.c.h.bf16 %v4870_v31 }
 0x1f3   : > { %v3474_v52 = vsel %vm2964_vm5, %v2577_v37, %v3473_v49  ;;  %v4600_v53 = vunpack.c.l.bf16 %v4871_v40  ;;  %v4601_v8 = vunpack.c.h.bf16 %v4871_v40  ;;  %v4604_v54 = vunpack.c.l.bf16 %v4872_v41 }
 0x1f4   : > { %v2595_v55 = vadd.f32 %v2594_v48, %v2593_v39  ;;  %v3475_v56 = vsel %vm2966_vm6, %v2586_v47, %v3474_v52  ;;  %v4605_v57 = vunpack.c.h.bf16 %v4872_v41  ;;  %v4608_v58 = vunpack.c.l.bf16 %v4873_v46  ;;  %v4875_v52 = vld [vmem:[%s5830_s27 + $0x140] sm:$0xff]  }
 0x1f5   : > { %v4609_v59 = vunpack.c.h.bf16 %v4873_v46  ;;  %v4612_v60 = vunpack.c.l.bf16 %v4874_v51  ;;  %v4613_v61 = vunpack.c.h.bf16 %v4874_v51  ;;  %v2596_v62 = vsel %vm643_vm0, %v4584_v25, 0.0 }
 0x1f6   : > { %v3476_v63 = vsel %vm2968_vm7, %v2595_v55, %v3475_v56  ;;  %v2597_v0 = vsel %vm643_vm0, %v4585_v33, 0.0  ;;  %v2605_v1 = vsel %vm643_vm0, %v4588_v34, 0.0  ;;  %v2606_v2 = vsel %vm643_vm0, %v4589_v35, 0.0 }
 0x1f7   : > { %5011 = vmatmul.mubr.msk.f32.gmra.mxu0 %vm643_vm0, %v3476_v63  ;;  %v2598_v3 = vadd.f32 %v2597_v0, %v2596_v62  ;;  %v2607_v4 = vadd.f32 %v2606_v2, %v2605_v1  ;;  %v2614_v5 = vsel %vm643_vm0, %v4592_v43, 0.0  ;;  %v2615_v6 = vsel %vm643_vm0, %v4593_v44, 0.0 }
 0x1f8   : > { %v2616_v7 = vadd.f32 %v2615_v6, %v2614_v5  ;;  %v2623_v9 = vsel %vm643_vm0, %v4596_v45, 0.0  ;;  %v2624_v10 = vsel %vm643_vm0, %v4597_v50, 0.0  ;;  %v2632_v11 = vsel %vm643_vm0, %v4600_v53, 0.0  ;;  %v4877_v5 = vld [vmem:[%s5830_s27 + $0x150] sm:$0xff]   ;;  %v4878_v6 = vld [vmem:[%s5830_s27 + $0x158] sm:$0xff]  }
 0x1f9   : > { %v2599_v12 = vrot.slane %v2598_v3, 4  ;;  %v2608_v13 = vrot.slane %v2607_v4, 4  ;;  %v2625_v14 = vadd.f32 %v2624_v10, %v2623_v9  ;;  %v2633_v15 = vsel %vm643_vm0, %v4601_v8, 0.0 }
 0x1fa   : > { %v2617_v16 = vrot.slane %v2616_v7, 4  ;;  %v2634_v17 = vadd.f32 %v2633_v15, %v2632_v11  ;;  %v2641_v18 = vsel %vm643_vm0, %v4604_v54, 0.0  ;;  %v2642_v19 = vsel %vm643_vm0, %v4605_v57, 0.0 }
 0x1fb   : > { %v2600_v20 = vadd.f32 %v2599_v12, %v2598_v3  ;;  %v2609_v21 = vadd.f32 %v2608_v13, %v2607_v4  ;;  %v2626_v22 = vrot.slane %v2625_v14, 4  ;;  %v2643_v23 = vadd.f32 %v2642_v19, %v2641_v18  ;;  %v4879_v12 = vld [vmem:[%s5830_s27 + $0x160] sm:$0xff]   ;;  %v4881_v18 = vld [vmem:[%s5830_s27 + $0x170] sm:$0xff]  }
 0x1fc   : > { %v2618_v24 = vadd.f32 %v2617_v16, %v2616_v7  ;;  %v2635_v25 = vrot.slane %v2634_v17, 4  ;;  %v2650_v26 = vsel %vm643_vm0, %v4608_v58, 0.0  ;;  %v2651_v27 = vsel %vm643_vm0, %v4609_v59, 0.0 }
 0x1fd   : > { %v2601_v28 = vrot.slane %v2600_v20, 2  ;;  %v2610_v29 = vrot.slane %v2609_v21, 2  ;;  %v2627_v30 = vadd.f32 %v2626_v22, %v2625_v14  ;;  %v2644_v31 = vrot.slane %v2643_v23, 4 }
 0x1fe   : > { %v2619_v32 = vrot.slane %v2618_v24, 2  ;;  %v2636_v33 = vadd.f32 %v2635_v25, %v2634_v17  ;;  %v2652_v34 = vadd.f32 %v2651_v27, %v2650_v26  ;;  %v2659_v35 = vsel %vm643_vm0, %v4612_v60, 0.0  ;;  %v4876_v60 = vld [vmem:[%s5830_s27 + $0x148] sm:$0xff]  }
 0x1ff   : > { %v2602_v36 = vadd.f32 %v2601_v28, %v2600_v20  ;;  %v2611_v37 = vadd.f32 %v2610_v29, %v2609_v21  ;;  %v2628_v38 = vrot.slane %v2627_v30, 2  ;;  %v2645_v39 = vadd.f32 %v2644_v31, %v2643_v23  ;;  %v4880_v17 = vld [vmem:[%s5830_s27 + $0x168] sm:$0xff]   ;;  %v6050_v23 = vld [vmem:[%s5830_s27 + $0x178] sm:$0xff]  }
 0x200   : > { %v2620_v40 = vadd.f32 %v2619_v32, %v2618_v24  ;;  %v2637_v41 = vrot.slane %v2636_v33, 2  ;;  %v2653_v42 = vrot.slane %v2652_v34, 4  ;;  %v2660_v43 = vsel %vm643_vm0, %v4613_v61, 0.0 }
 0x201   : > { %v2603_v44 = vrot.slane %v2602_v36, 1  ;;  %v2612_v45 = vrot.slane %v2611_v37, 1  ;;  %v2629_v46 = vadd.f32 %v2628_v38, %v2627_v30  ;;  %v2646_v47 = vrot.slane %v2645_v39, 2 }
 0x202   : > { %v2621_v48 = vrot.slane %v2620_v40, 1  ;;  %v2638_v49 = vadd.f32 %v2637_v41, %v2636_v33  ;;  %v2654_v50 = vadd.f32 %v2653_v42, %v2652_v34  ;;  %v2661_v51 = vadd.f32 %v2660_v43, %v2659_v35 }
 0x203   : > { %v2604_v53 = vadd.f32 %v2603_v44, %v2602_v36  ;;  %v2613_v8 = vadd.f32 %v2612_v45, %v2611_v37  ;;  %v2630_v54 = vrot.slane %v2629_v46, 1  ;;  %v2647_v55 = vadd.f32 %v2646_v47, %v2645_v39  ;;  %v3661_v44 = vld [vmem:[%s6226_s7 + $0x20] sm:$0xff] }
 0x204   : > { %v2622_v56 = vadd.f32 %v2621_v48, %v2620_v40  ;;  %v2639_v57 = vrot.slane %v2638_v49, 1  ;;  %v2655_v58 = vrot.slane %v2654_v50, 2  ;;  %v2662_v59 = vrot.slane %v2661_v51, 4  ;;  %5041 = vmatprep.subr.mxu1 %v3661_v44 }
 0x205   : > { %v2631_v61 = vadd.f32 %v2630_v54, %v2629_v46  ;;  %v2648_v62 = vrot.slane %v2647_v55, 1  ;;  %v3477_v63 = vsel %vm2956_vm1, %v2613_v8, %v2604_v53  ;;  %v4616_v0 = vunpack.c.l.bf16 %v4875_v52  ;;  %5042 = vmatpush3.msra.mxu1 %v3661_v44  ;;  %v3660_v53 = vld [vmem:[%s6226_s7 + $0x18] sm:$0xff]  ;;  %v4885_v44 = vld [vmem:[%s5830_s27 + $0x190] sm:$0xff]  }
 0x206   : > { %v2640_v1 = vadd.f32 %v2639_v57, %v2638_v49  ;;  %v2656_v2 = vadd.f32 %v2655_v58, %v2654_v50  ;;  %v2663_v3 = vadd.f32 %v2662_v59, %v2661_v51  ;;  %v3478_v4 = vsel %vm2958_vm2, %v2622_v56, %v3477_v63  ;;  %5043 = vmatprep.subr.mxu1 %v3660_v53 }
 0x207   : > { %v2649_v7 = vadd.f32 %v2648_v62, %v2647_v55  ;;  %v3479_v9 = vsel %vm2960_vm3, %v2631_v61, %v3478_v4  ;;  %v4617_v10 = vunpack.c.h.bf16 %v4875_v52  ;;  %v4620_v11 = vunpack.c.l.bf16 %v4876_v60  ;;  %5044 = vmatpush3.msra.mxu1 %v3660_v53 }
 0x208   : > { %v2657_v13 = vrot.slane %v2656_v2, 1  ;;  %v2664_v14 = vrot.slane %v2663_v3, 2  ;;  %v3480_v15 = vsel %vm2962_vm4, %v2640_v1, %v3479_v9  ;;  %v4621_v16 = vunpack.c.h.bf16 %v4876_v60 }
 0x209   : > { %v3481_v19 = vsel %vm2964_vm5, %v2649_v7, %v3480_v15  ;;  %v4624_v20 = vunpack.c.l.bf16 %v4877_v5  ;;  %v4625_v21 = vunpack.c.h.bf16 %v4877_v5  ;;  %v4628_v22 = vunpack.c.l.bf16 %v4878_v6 }
 0x20a   : > { %v2658_v24 = vadd.f32 %v2657_v13, %v2656_v2  ;;  %v2665_v25 = vadd.f32 %v2664_v14, %v2663_v3  ;;  %v4629_v26 = vunpack.c.h.bf16 %v4878_v6  ;;  %v4632_v27 = vunpack.c.l.bf16 %v4879_v12 }
 0x20b   : > { %v4633_v28 = vunpack.c.h.bf16 %v4879_v12  ;;  %v4636_v29 = vunpack.c.l.bf16 %v4880_v17  ;;  %v4637_v30 = vunpack.c.h.bf16 %v4880_v17  ;;  %v4640_v31 = vunpack.c.l.bf16 %v4881_v18 }
 0x20c   : > { %v2666_v32 = vrot.slane %v2665_v25, 1  ;;  %v3482_v33 = vsel %vm2966_vm6, %v2658_v24, %v3481_v19  ;;  %v4641_v34 = vunpack.c.h.bf16 %v4881_v18  ;;  %v4644_v35 = vunpack.c.l.bf16 %v6050_v23 }
 0x20d   : > { %v4645_v36 = vunpack.c.h.bf16 %v6050_v23  ;;  %v2668_v37 = vsel %vm643_vm0, %v4616_v0, 0.0  ;;  %v2669_v38 = vsel %vm643_vm0, %v4617_v10, 0.0  ;;  %v2677_v39 = vsel %vm643_vm0, %v4620_v11, 0.0 }
 0x20e   : > { %v2667_v40 = vadd.f32 %v2666_v32, %v2665_v25  ;;  %v2670_v41 = vadd.f32 %v2669_v38, %v2668_v37  ;;  %v2678_v42 = vsel %vm643_vm0, %v4621_v16, 0.0  ;;  %v2686_v43 = vsel %vm643_vm0, %v4624_v20, 0.0 }
 0x20f   : > { %v2679_v45 = vadd.f32 %v2678_v42, %v2677_v39  ;;  %v2687_v46 = vsel %vm643_vm0, %v4625_v21, 0.0  ;;  %v2695_v47 = vsel %vm643_vm0, %v4628_v22, 0.0  ;;  %v2696_v48 = vsel %vm643_vm0, %v4629_v26, 0.0  ;;  %v4883_v26 = vld [vmem:[%s5830_s27 + $0x180] sm:$0xff]  }
 0x210   : > { %v3483_v49 = vsel %vm2968_vm7, %v2667_v40, %v3482_v33  ;;  %v2671_v50 = vrot.slane %v2670_v41, 4  ;;  %v2688_v51 = vadd.f32 %v2687_v46, %v2686_v43  ;;  %v2697_v52 = vadd.f32 %v2696_v48, %v2695_v47 }
 0x211   : > { %5013 = vmatprep.mubr.msk.f32.mxu0 %vm643_vm0, %v3483_v49  ;;  %v2680_v8 = vrot.slane %v2679_v45, 4  ;;  %v2704_v54 = vsel %vm643_vm0, %v4632_v27, 0.0  ;;  %v2705_v55 = vsel %vm643_vm0, %v4633_v28, 0.0  ;;  %v2713_v56 = vsel %vm643_vm0, %v4636_v29, 0.0  ;;  %v4886_v49 = vld [vmem:[%s5830_s27 + $0x198] sm:$0xff]  }
 0x212   : > { %v2672_v57 = vadd.f32 %v2671_v50, %v2670_v41  ;;  %v2689_v58 = vrot.slane %v2688_v51, 4  ;;  %v2698_v59 = vrot.slane %v2697_v52, 4  ;;  %v2706_v60 = vadd.f32 %v2705_v55, %v2704_v54  ;;  %v4888_v54 = vld [vmem:[%s5830_s27 + $0x1a8] sm:$0xff]  }
 0x213   : > { %v2681_v61 = vadd.f32 %v2680_v8, %v2679_v45  ;;  %v2714_v62 = vsel %vm643_vm0, %v4637_v30, 0.0  ;;  %v2722_v63 = vsel %vm643_vm0, %v4640_v31, 0.0  ;;  %v2723_v0 = vsel %vm643_vm0, %v4641_v34, 0.0  ;;  %v4887_v8 = vld [vmem:[%s5830_s27 + $0x1a0] sm:$0xff]  }
 0x214   : > { %v2673_v1 = vrot.slane %v2672_v57, 2  ;;  %v2690_v2 = vadd.f32 %v2689_v58, %v2688_v51  ;;  %v2699_v3 = vadd.f32 %v2698_v59, %v2697_v52  ;;  %v2707_v4 = vrot.slane %v2706_v60, 4  ;;  %v4889_v59 = vld [vmem:[%s5830_s27 + $0x1b0] sm:$0xff]  }
 0x215   : > { %v2682_v5 = vrot.slane %v2681_v61, 2  ;;  %v2715_v6 = vadd.f32 %v2714_v62, %v2713_v56  ;;  %v2724_v7 = vadd.f32 %v2723_v0, %v2722_v63  ;;  %v2731_v9 = vsel %vm643_vm0, %v4644_v35, 0.0  ;;  %v4884_v35 = vld [vmem:[%s5830_s27 + $0x188] sm:$0xff]   ;;  %v4890_v0 = vld [vmem:[%s5830_s27 + $0x1b8] sm:$0xff]  }
 0x216   : > { %v2674_v10 = vadd.f32 %v2673_v1, %v2672_v57  ;;  %v2691_v11 = vrot.slane %v2690_v2, 2  ;;  %v2700_v12 = vrot.slane %v2699_v3, 2  ;;  %v2708_v13 = vadd.f32 %v2707_v4, %v2706_v60 }
 0x217   : > { %v2683_v14 = vadd.f32 %v2682_v5, %v2681_v61  ;;  %v2716_v15 = vrot.slane %v2715_v6, 4  ;;  %v2725_v16 = vrot.slane %v2724_v7, 4  ;;  %v2732_v17 = vsel %vm643_vm0, %v4645_v36, 0.0 }
 0x218   : > { %v2675_v18 = vrot.slane %v2674_v10, 1  ;;  %v2692_v19 = vadd.f32 %v2691_v11, %v2690_v2  ;;  %v2701_v20 = vadd.f32 %v2700_v12, %v2699_v3  ;;  %v2709_v21 = vrot.slane %v2708_v13, 2 }
 0x219   : > { %v2684_v22 = vrot.slane %v2683_v14, 1  ;;  %v2717_v23 = vadd.f32 %v2716_v15, %v2715_v6  ;;  %v2726_v24 = vadd.f32 %v2725_v16, %v2724_v7  ;;  %v2733_v25 = vadd.f32 %v2732_v17, %v2731_v9 }
 0x21a   : > { %v2676_v27 = vadd.f32 %v2675_v18, %v2674_v10  ;;  %v2693_v28 = vrot.slane %v2692_v19, 1  ;;  %v2702_v29 = vrot.slane %v2701_v20, 1  ;;  %v2710_v30 = vadd.f32 %v2709_v21, %v2708_v13 }
 0x21b   : > { %v2685_v31 = vadd.f32 %v2684_v22, %v2683_v14  ;;  %v2718_v32 = vrot.slane %v2717_v23, 2  ;;  %v2727_v33 = vrot.slane %v2726_v24, 2  ;;  %v2734_v34 = vrot.slane %v2733_v25, 4 }
 0x21c   : > { %v2694_v36 = vadd.f32 %v2693_v28, %v2692_v19  ;;  %v2703_v37 = vadd.f32 %v2702_v29, %v2701_v20  ;;  %v2711_v38 = vrot.slane %v2710_v30, 1  ;;  %v4648_v39 = vunpack.c.l.bf16 %v4883_v26 }
 0x21d   : > { %v2719_v40 = vadd.f32 %v2718_v32, %v2717_v23  ;;  %v2728_v41 = vadd.f32 %v2727_v33, %v2726_v24  ;;  %v2735_v42 = vadd.f32 %v2734_v34, %v2733_v25  ;;  %v3484_v43 = vsel %vm2956_vm1, %v2685_v31, %v2676_v27 }
 0x21e   : > { %v2712_v45 = vadd.f32 %v2711_v38, %v2710_v30  ;;  %v3485_v46 = vsel %vm2958_vm2, %v2694_v36, %v3484_v43  ;;  %v4649_v47 = vunpack.c.h.bf16 %v4883_v26  ;;  %v4652_v48 = vunpack.c.l.bf16 %v4884_v35 }
 0x21f   : > { %v2720_v50 = vrot.slane %v2719_v40, 1  ;;  %v2729_v51 = vrot.slane %v2728_v41, 1  ;;  %v2736_v52 = vrot.slane %v2735_v42, 2  ;;  %v3486_v53 = vsel %vm2960_vm3, %v2703_v37, %v3485_v46 }
 0x220   : > { %v3487_v55 = vsel %vm2962_vm4, %v2712_v45, %v3486_v53  ;;  %v4653_v56 = vunpack.c.h.bf16 %v4884_v35  ;;  %v4656_v57 = vunpack.c.l.bf16 %v4885_v44  ;;  %v4657_v58 = vunpack.c.h.bf16 %v4885_v44 }
 0x221   : > { %v2721_v60 = vadd.f32 %v2720_v50, %v2719_v40  ;;  %v2730_v61 = vadd.f32 %v2729_v51, %v2728_v41  ;;  %v2737_v62 = vadd.f32 %v2736_v52, %v2735_v42  ;;  %v4660_v63 = vunpack.c.l.bf16 %v4886_v49 }
 0x222   : > { %v4661_v1 = vunpack.c.h.bf16 %v4886_v49  ;;  %v4664_v2 = vunpack.c.l.bf16 %v4887_v8  ;;  %v4665_v3 = vunpack.c.h.bf16 %v4887_v8  ;;  %v4668_v4 = vunpack.c.l.bf16 %v4888_v54 }
 0x223   : > { %v2738_v5 = vrot.slane %v2737_v62, 1  ;;  %v3488_v6 = vsel %vm2964_vm5, %v2721_v60, %v3487_v55  ;;  %v4669_v7 = vunpack.c.h.bf16 %v4888_v54  ;;  %v4672_v9 = vunpack.c.l.bf16 %v4889_v59 }
 0x224   : > { %v3489_v10 = vsel %vm2966_vm6, %v2730_v61, %v3488_v6  ;;  %v4673_v11 = vunpack.c.h.bf16 %v4889_v59  ;;  %v4676_v12 = vunpack.c.l.bf16 %v4890_v0  ;;  %v4677_v13 = vunpack.c.h.bf16 %v4890_v0 }
 0x225   : > { %v2739_v14 = vadd.f32 %v2738_v5, %v2737_v62  ;;  %v2740_v15 = vsel %vm643_vm0, %v4648_v39, 0.0  ;;  %v2741_v16 = vsel %vm643_vm0, %v4649_v47, 0.0  ;;  %v2749_v17 = vsel %vm643_vm0, %v4652_v48, 0.0 }
 0x226   : > { %v2742_v18 = vadd.f32 %v2741_v16, %v2740_v15  ;;  %v2750_v19 = vsel %vm643_vm0, %v4653_v56, 0.0  ;;  %v2758_v20 = vsel %vm643_vm0, %v4656_v57, 0.0  ;;  %v2759_v21 = vsel %vm643_vm0, %v4657_v58, 0.0  ;;  %v4892_v15 = vld [vmem:[%s5830_s27 + $0x1c8] sm:$0xff]   ;;  %v4893_v16 = vld [vmem:[%s5830_s27 + $0x1d0] sm:$0xff]  }
 0x227   : > { %v3490_v22 = vsel %vm2968_vm7, %v2739_v14, %v3489_v10  ;;  %v2751_v23 = vadd.f32 %v2750_v19, %v2749_v17  ;;  %v2760_v24 = vadd.f32 %v2759_v21, %v2758_v20  ;;  %v2767_v25 = vsel %vm643_vm0, %v4660_v63, 0.0 }
 0x228   : > { %5014 = vmatmul.mubr.msk.f32.gmra.mxu0 %vm643_vm0, %v3490_v22  ;;  %v2743_v26 = vrot.slane %v2742_v18, 4  ;;  %v2768_v27 = vsel %vm643_vm0, %v4661_v1, 0.0  ;;  %v2776_v28 = vsel %vm643_vm0, %v4664_v2, 0.0  ;;  %v2777_v29 = vsel %vm643_vm0, %v4665_v3, 0.0  ;;  %v4891_v1 = vld [vmem:[%s5830_s27 + $0x1c0] sm:$0xff]  }
 0x229   : > { %v2752_v30 = vrot.slane %v2751_v23, 4  ;;  %v2761_v31 = vrot.slane %v2760_v24, 4  ;;  %v2769_v32 = vadd.f32 %v2768_v27, %v2767_v25  ;;  %v2778_v33 = vadd.f32 %v2777_v29, %v2776_v28  ;;  %v4894_v25 = vld [vmem:[%s5830_s27 + $0x1d8] sm:$0xff]  }
 0x22a   : > { %v2744_v34 = vadd.f32 %v2743_v26, %v2742_v18  ;;  %v2785_v35 = vsel %vm643_vm0, %v4668_v4, 0.0  ;;  %v2786_v36 = vsel %vm643_vm0, %v4669_v7, 0.0  ;;  %v2794_v37 = vsel %vm643_vm0, %v4672_v9, 0.0  ;;  %v4895_v26 = vld [vmem:[%s5830_s27 + $0x1e0] sm:$0xff]  }
 0x22b   : > { %v2753_v38 = vadd.f32 %v2752_v30, %v2751_v23  ;;  %v2762_v39 = vadd.f32 %v2761_v31, %v2760_v24  ;;  %v2770_v40 = vrot.slane %v2769_v32, 4  ;;  %v2779_v41 = vrot.slane %v2778_v33, 4 }
 0x22c   : > { %v2745_v42 = vrot.slane %v2744_v34, 2  ;;  %v2787_v43 = vadd.f32 %v2786_v36, %v2785_v35  ;;  %v2795_v44 = vsel %vm643_vm0, %v4673_v11, 0.0  ;;  %v2803_v45 = vsel %vm643_vm0, %v4676_v12, 0.0  ;;  %v4896_v35 = vld [vmem:[%s5830_s27 + $0x1e8] sm:$0xff]   ;;  %v4897_v36 = vld [vmem:[%s5830_s27 + $0x1f0] sm:$0xff]  }
 0x22d   : > { %v2754_v46 = vrot.slane %v2753_v38, 2  ;;  %v2763_v47 = vrot.slane %v2762_v39, 2  ;;  %v2771_v48 = vadd.f32 %v2770_v40, %v2769_v32  ;;  %v2780_v49 = vadd.f32 %v2779_v41, %v2778_v33  ;;  %v4898_v41 = vld [vmem:[%s5830_s27 + $0x1f8] sm:$0xff]   ;;  %s3807_s27 = sshll.u32 %s364_s24, 4  ;;  %s6175_s27 = int_to_ptr.vmem [resolvable:$true] %s3807_s27 }
 0x22e   : > { %v2746_v50 = vadd.f32 %v2745_v42, %v2744_v34  ;;  %v2788_v51 = vrot.slane %v2787_v43, 4  ;;  %v2796_v52 = vadd.f32 %v2795_v44, %v2794_v37  ;;  %v2804_v53 = vsel %vm643_vm0, %v4677_v13, 0.0  ;;  %s5104_s13 = scalar_lea.vmem %s6175_s27, 1024  ;;  %p5111_p0 = scmp.lt.s32.totalorder %s6175_s27, %s5109_s21 }
 0x22f   : > { %v2755_v8 = vadd.f32 %v2754_v46, %v2753_v38  ;;  %v2764_v54 = vadd.f32 %v2763_v47, %v2762_v39  ;;  %v2772_v55 = vrot.slane %v2771_v48, 2  ;;  %v2781_v56 = vrot.slane %v2780_v49, 2  ;;  %p5105_p11 = scmp.ne.s32.totalorder %s6175_s27, %s5104_s13  ;;  %p5112_p1 = scmp.lt.s32.totalorder %s5110_s22, %s5104_s13 }
 0x230   : > { %v2747_v57 = vrot.slane %v2746_v50, 1  ;;  %v2789_v58 = vadd.f32 %v2788_v51, %v2787_v43  ;;  %v2797_v59 = vrot.slane %v2796_v52, 4  ;;  %v2805_v60 = vadd.f32 %v2804_v53, %v2803_v45 }
 0x231   : > { %v2756_v61 = vrot.slane %v2755_v8, 1  ;;  %v2765_v62 = vrot.slane %v2764_v54, 1  ;;  %v2773_v63 = vadd.f32 %v2772_v55, %v2771_v48  ;;  %v2782_v0 = vadd.f32 %v2781_v56, %v2780_v49  ;;  %p5106_p12 = pnand %p5105_p11, %p5257_p5  ;;  %p5113_p2 = por %p5112_p1, %p5111_p0 }
 0x232   : > { %v2748_v2 = vadd.f32 %v2747_v57, %v2746_v50  ;;  %v2790_v3 = vrot.slane %v2789_v58, 2  ;;  %v2798_v4 = vadd.f32 %v2797_v59, %v2796_v52  ;;  %v2806_v5 = vrot.slane %v2805_v60, 4 }
 0x233   : > { %v2757_v6 = vadd.f32 %v2756_v61, %v2755_v8  ;;  %v2766_v7 = vadd.f32 %v2765_v62, %v2764_v54  ;;  %v2774_v9 = vrot.slane %v2773_v63, 1  ;;  %v2783_v10 = vrot.slane %v2782_v0, 1  ;;  %v3659_v8 = vld [vmem:[%s6226_s7 + $0x10] sm:$0xff]  ;;  %v3658_v62 = vld [vmem:[%s6226_s7 + $0x8] sm:$0xff]  ;;  %p5107_p13 = pneg %p5106_p12 }
 0x234   : > { %v2791_v11 = vadd.f32 %v2790_v3, %v2789_v58  ;;  %v2799_v12 = vrot.slane %v2798_v4, 2  ;;  %v2807_v13 = vadd.f32 %v2806_v5, %v2805_v60  ;;  %v4680_v14 = vunpack.c.l.bf16 %v4891_v1  ;;  %5045 = vmatprep.subr.mxu1 %v3659_v8 }
 0x235   : > { %v2775_v17 = vadd.f32 %v2774_v9, %v2773_v63  ;;  %v2784_v18 = vadd.f32 %v2783_v10, %v2782_v0  ;;  %v3491_v19 = vsel %vm2956_vm1, %v2757_v6, %v2748_v2  ;;  %v4681_v20 = vunpack.c.h.bf16 %v4891_v1  ;;  %5046 = vmatpush3.msra.mxu1 %v3659_v8  ;;  %p5114_p3 = pnand %p5113_p2, %p5107_p13 }
 0x236   : > { %v2792_v21 = vrot.slane %v2791_v11, 1  ;;  %v2800_v22 = vadd.f32 %v2799_v12, %v2798_v4  ;;  %v2808_v23 = vrot.slane %v2807_v13, 2  ;;  %v3492_v24 = vsel %vm2958_vm2, %v2766_v7, %v3491_v19  ;;  %5047 = vmatprep.subr.mxu1 %v3658_v62 }
 0x237   : > { %v3493_v27 = vsel %vm2960_vm3, %v2775_v17, %v3492_v24  ;;  %v4684_v28 = vunpack.c.l.bf16 %v4892_v15  ;;  %v4685_v29 = vunpack.c.h.bf16 %v4892_v15  ;;  %v4688_v30 = vunpack.c.l.bf16 %v4893_v16  ;;  %5048 = vmatpush3.msra.mxu1 %v3658_v62 }
 0x238   : > { %v2793_v31 = vadd.f32 %v2792_v21, %v2791_v11  ;;  %v2801_v32 = vrot.slane %v2800_v22, 1  ;;  %v2809_v33 = vadd.f32 %v2808_v23, %v2807_v13  ;;  %v3494_v34 = vsel %vm2962_vm4, %v2784_v18, %v3493_v27 }
 0x239   : > { %v4689_v37 = vunpack.c.h.bf16 %v4893_v16  ;;  %v4692_v38 = vunpack.c.l.bf16 %v4894_v25  ;;  %v4693_v39 = vunpack.c.h.bf16 %v4894_v25  ;;  %v4696_v40 = vunpack.c.l.bf16 %v4895_v26 }
 0x23a   : > { %v2802_v42 = vadd.f32 %v2801_v32, %v2800_v22  ;;  %v2810_v43 = vrot.slane %v2809_v33, 1  ;;  %v3495_v44 = vsel %vm2964_vm5, %v2793_v31, %v3494_v34  ;;  %v4697_v45 = vunpack.c.h.bf16 %v4895_v26 }
 0x23b   : > { %v4700_v46 = vunpack.c.l.bf16 %v4896_v35  ;;  %v4701_v47 = vunpack.c.h.bf16 %v4896_v35  ;;  %v4704_v48 = vunpack.c.l.bf16 %v4897_v36  ;;  %v4705_v49 = vunpack.c.h.bf16 %v4897_v36 }
 0x23c   : > { %v2811_v50 = vadd.f32 %v2810_v43, %v2809_v33  ;;  %v3496_v51 = vsel %vm2966_vm6, %v2802_v42, %v3495_v44  ;;  %v4708_v52 = vunpack.c.l.bf16 %v4898_v41  ;;  %v4709_v53 = vunpack.c.h.bf16 %v4898_v41 }
 0x23d   : > { %v2812_v54 = vsel %vm643_vm0, %v4680_v14, 0.0  ;;  %v2813_v55 = vsel %vm643_vm0, %v4681_v20, 0.0  ;;  %v2821_v56 = vsel %vm643_vm0, %v4684_v28, 0.0  ;;  %v2822_v57 = vsel %vm643_vm0, %v4685_v29, 0.0 }
 0x23e   : > { %v3497_v58 = vsel %vm2968_vm7, %v2811_v50, %v3496_v51  ;;  %v2814_v59 = vadd.f32 %v2813_v55, %v2812_v54  ;;  %v2823_v60 = vadd.f32 %v2822_v57, %v2821_v56  ;;  %v2830_v61 = vsel %vm643_vm0, %v4688_v30, 0.0 }
 0x23f   : > { %5016 = vmatprep.mubr.msk.f32.mxu0 %vm643_vm0, %v3497_v58  ;;  %v2831_v63 = vsel %vm643_vm0, %v4689_v37, 0.0  ;;  %v2839_v0 = vsel %vm643_vm0, %v4692_v38, 0.0  ;;  %v2840_v1 = vsel %vm643_vm0, %v4693_v39, 0.0  ;;  %v2848_v2 = vsel %vm643_vm0, %v4696_v40, 0.0 }
 0x240   : > { %v2815_v3 = vrot.slane %v2814_v59, 4  ;;  %v2824_v4 = vrot.slane %v2823_v60, 4  ;;  %v2832_v5 = vadd.f32 %v2831_v63, %v2830_v61  ;;  %v2841_v6 = vadd.f32 %v2840_v1, %v2839_v0 }
 0x241   : > { %v2849_v7 = vsel %vm643_vm0, %v4697_v45, 0.0  ;;  %v2857_v9 = vsel %vm643_vm0, %v4700_v46, 0.0  ;;  %v2858_v10 = vsel %vm643_vm0, %v4701_v47, 0.0  ;;  %v2866_v11 = vsel %vm643_vm0, %v4704_v48, 0.0 }
 0x242   : > { %v2816_v12 = vadd.f32 %v2815_v3, %v2814_v59  ;;  %v2825_v13 = vadd.f32 %v2824_v4, %v2823_v60  ;;  %v2833_v14 = vrot.slane %v2832_v5, 4  ;;  %v2842_v15 = vrot.slane %v2841_v6, 4 }
 0x243   : > { %v2850_v16 = vadd.f32 %v2849_v7, %v2848_v2  ;;  %v2859_v17 = vadd.f32 %v2858_v10, %v2857_v9  ;;  %v2867_v18 = vsel %vm643_vm0, %v4705_v49, 0.0  ;;  %v2875_v19 = vsel %vm643_vm0, %v4708_v52, 0.0  ;;  %v4969_v7 = vpop.f32.mrf.mxu0  ;;  %v3657_v10 = vld [vmem:[%s6226_s7] sm:$0xff] }
 0x244   : > { %v2817_v20 = vrot.slane %v2816_v12, 2  ;;  %v2826_v21 = vrot.slane %v2825_v13, 2  ;;  %v2834_v22 = vadd.f32 %v2833_v14, %v2832_v5  ;;  %v2843_v23 = vadd.f32 %v2842_v15, %v2841_v6  ;;  %5049 = vmatprep.subr.mxu1 %v3657_v10 }
 0x245   : > { %v2851_v24 = vrot.slane %v2850_v16, 4  ;;  %v2860_v25 = vrot.slane %v2859_v17, 4  ;;  %v2868_v26 = vadd.f32 %v2867_v18, %v2866_v11  ;;  %v2876_v27 = vsel %vm643_vm0, %v4709_v53, 0.0  ;;  %v3101_v9 = vpop.f32.mrf.mxu0  ;;  %5050 = vmatpush3.msra.mxu1 %v3657_v10 }
 0x246   : > { %v2818_v28 = vadd.f32 %v2817_v20, %v2816_v12  ;;  %v2827_v29 = vadd.f32 %v2826_v21, %v2825_v13  ;;  %v2835_v30 = vrot.slane %v2834_v22, 2  ;;  %v2844_v31 = vrot.slane %v2843_v23, 2 }
 0x247   : > { %v2852_v32 = vadd.f32 %v2851_v24, %v2850_v16  ;;  %v2861_v33 = vadd.f32 %v2860_v25, %v2859_v17  ;;  %v2869_v34 = vrot.slane %v2868_v26, 4  ;;  %v2877_v35 = vadd.f32 %v2876_v27, %v2875_v19  ;;  %v4972_v11 = vpop.f32.mrf.mxu0  ;;  %v4989_v16 = vpop.f32.mrf.mxu1 }
 0x248   : > { %v2819_v36 = vrot.slane %v2818_v28, 1  ;;  %v2828_v37 = vrot.slane %v2827_v29, 1  ;;  %v2836_v38 = vadd.f32 %v2835_v30, %v2834_v22  ;;  %v2845_v39 = vadd.f32 %v2844_v31, %v2843_v23  ;;  %v3931_v23 = vld [vmem:[%s6225_s6] ss:$0 sm:$0xff] }
 0x249   : > { %v2853_v40 = vrot.slane %v2852_v32, 2  ;;  %v2862_v41 = vrot.slane %v2861_v33, 2  ;;  %v2870_v42 = vadd.f32 %v2869_v34, %v2868_v26  ;;  %v2878_v43 = vrot.slane %v2877_v35, 4  ;;  %v3111_v12 = vpop.f32.mrf.mxu0  ;;  %v3342_v18 = vpop.f32.mrf.mxu1 }
 0x24a   : > { %v2820_v44 = vadd.f32 %v2819_v36, %v2818_v28  ;;  %v2829_v45 = vadd.f32 %v2828_v37, %v2827_v29  ;;  %v2837_v46 = vrot.slane %v2836_v38, 1  ;;  %v2846_v47 = vrot.slane %v2845_v39, 1 }
 0x24b   : > { %v2854_v48 = vadd.f32 %v2853_v40, %v2852_v32  ;;  %v2863_v49 = vadd.f32 %v2862_v41, %v2861_v33  ;;  %v2871_v50 = vrot.slane %v2870_v42, 2  ;;  %v2879_v51 = vadd.f32 %v2878_v43, %v2877_v35  ;;  %v4975_v13 = vpop.f32.mrf.mxu0  ;;  %v4992_v30 = vpop.f32.mrf.mxu1 }
 0x24c   : > { %v2838_v52 = vadd.f32 %v2837_v46, %v2836_v38  ;;  %v2847_v53 = vadd.f32 %v2846_v47, %v2845_v39  ;;  %v3498_v8 = vsel %vm2956_vm1, %v2829_v45, %v2820_v44  ;;  %v3348_v19 = vadd.f32 %v4989_v16, %v4969_v7 }
 0x24d   : > { %v2855_v54 = vrot.slane %v2854_v48, 1  ;;  %v2864_v55 = vrot.slane %v2863_v49, 1  ;;  %v2872_v56 = vadd.f32 %v2871_v50, %v2870_v42  ;;  %v2880_v57 = vrot.slane %v2879_v51, 2  ;;  %v3121_v14 = vpop.f32.mrf.mxu0  ;;  %v3352_v31 = vpop.f32.mrf.mxu1 }
 0x24e   : > { %v3499_v58 = vsel %vm2958_vm2, %v2838_v52, %v3498_v8  ;;  %v3343_v21 = vadd.f32 %v3342_v18, %v3101_v9  ;;  %v3358_v32 = vadd.f32 %v4992_v30, %v4972_v11  ;;  %v3353_v34 = vadd.f32 %v3352_v31, %v3111_v12 }
 0x24f   : > { %v2856_v59 = vadd.f32 %v2855_v54, %v2854_v48  ;;  %v2865_v60 = vadd.f32 %v2864_v55, %v2863_v49  ;;  %v2873_v61 = vrot.slane %v2872_v56, 1  ;;  %v2881_v62 = vadd.f32 %v2880_v57, %v2879_v51  ;;  %v4978_v15 = vpop.f32.mrf.mxu0  ;;  %v4995_v42 = vpop.f32.mrf.mxu1 }
 0x250   : > { %v3500_v63 = vsel %vm2960_vm3, %v2847_v53, %v3499_v58  ;;  %v3368_v44 = vadd.f32 %v4995_v42, %v4975_v13 }
 0x251   : > { %v2874_v0 = vadd.f32 %v2873_v61, %v2872_v56  ;;  %v2882_v1 = vrot.slane %v2881_v62, 1  ;;  %v3501_v2 = vsel %vm2962_vm4, %v2856_v59, %v3500_v63  ;;  %v3131_v17 = vpop.f32.mrf.mxu0  ;;  %v3362_v43 = vpop.f32.mrf.mxu1 }
 0x252   : > { %v3502_v3 = vsel %vm2964_vm5, %v2865_v60, %v3501_v2  ;;  %v3363_v46 = vadd.f32 %v3362_v43, %v3121_v14 }
 0x253   : > { %v2883_v4 = vadd.f32 %v2882_v1, %v2881_v62  ;;  %v3503_v5 = vsel %vm2966_vm6, %v2874_v0, %v3502_v3  ;;  %v3932_v1 = vld [vmem:[%s6227_s8] ss:$0 sm:$0xff] }
 0x255   : > { %v3504_v6 = vsel %vm2968_vm7, %v2883_v4, %v3503_v5 }
 0x256   : > { %5017 = vmatmul.mubr.msk.f32.gmra.mxu0 %vm643_vm0, %v3504_v6 }
 0x258   : > { %v4998_v8 = vpop.f32.mrf.mxu1 }
 0x259   : > { %v3378_v55 = vadd.f32 %v4998_v8, %v4978_v15 }
 0x25a   : > { %v3372_v54 = vpop.f32.mrf.mxu1 }
 0x25b   : > { %v3373_v57 = vadd.f32 %v3372_v54, %v3131_v17 }
 0x289   : > { %v5009_v20 = vpop.f32.mrf.mxu0 }
 0x28a   : > { %v3627_v22 = vadd.f32 %v5009_v20, %v3348_v19 }
 0x28b   : > { %v3587_v24 = vpop.f32.mrf.mxu0 }
 0x28c   : > { %v3626_v25 = vadd.f32 %v3587_v24, %v3343_v21  ;;  %v3642_v26 = vadd.f32 %v3931_v23, %v3627_v22 }
 0x28e   : > { %v3641_v27 = vadd.f32 %v3931_v23, %v3626_v25  ;;  %v3650_v29 = vmax.f32 %v3642_v26, 0.0 }
 0x290   : > { %v3649_v28 = vmax.f32 %v3641_v27, 0.0 }
 0x292   : > { %5051 = vmatprep.mubr.f32.mxu1 %v3649_v28 }
 0x293   : > { %5052 = vmatmul.mubr.f32.vlgmr.msra.gmra.mxu1 %v3650_v29 }
 0x2b7   : > { %v5012_v33 = vpop.f32.mrf.mxu0 }
 0x2b8   : > { %v3629_v35 = vadd.f32 %v5012_v33, %v3358_v32 }
 0x2b9   : > { %v3597_v36 = vpop.f32.mrf.mxu0 }
 0x2ba   : > { %v3628_v37 = vadd.f32 %v3597_v36, %v3353_v34  ;;  %v3644_v38 = vadd.f32 %v3931_v23, %v3629_v35 }
 0x2bc   : > { %v3643_v39 = vadd.f32 %v3931_v23, %v3628_v37  ;;  %v3652_v41 = vmax.f32 %v3644_v38, 0.0 }
 0x2be   : > { %v3651_v40 = vmax.f32 %v3643_v39, 0.0 }
 0x2c0   : > { %5054 = vmatprep.mubr.f32.mxu1 %v3651_v40 }
 0x2c1   : > { %5055 = vmatmul.mubr.f32.gmra.mxu1 %v3652_v41 }
 0x2e8   : > { %v5015_v45 = vpop.f32.mrf.mxu0 }
 0x2e9   : > { %v3631_v47 = vadd.f32 %v5015_v45, %v3368_v44 }
 0x2ea   : > { %v3607_v48 = vpop.f32.mrf.mxu0 }
 0x2eb   : > { %v3630_v49 = vadd.f32 %v3607_v48, %v3363_v46  ;;  %v3646_v50 = vadd.f32 %v3931_v23, %v3631_v47 }
 0x2ed   : > { %v3645_v51 = vadd.f32 %v3931_v23, %v3630_v49  ;;  %v3654_v53 = vmax.f32 %v3646_v50, 0.0 }
 0x2ef   : > { %v3653_v52 = vmax.f32 %v3645_v51, 0.0 }
 0x2f1   : > { %5057 = vmatprep.mubr.f32.mxu1 %v3653_v52 }
 0x2f2   : > { %5058 = vmatmul.mubr.f32.gmra.mxu1 %v3654_v53 }
 0x316   : > { %v5018_v56 = vpop.f32.mrf.mxu0 }
 0x317   : > { %v3633_v58 = vadd.f32 %v5018_v56, %v3378_v55 }
 0x318   : > { %v3617_v59 = vpop.f32.mrf.mxu0 }
 0x319   : > { %v3632_v60 = vadd.f32 %v3617_v59, %v3373_v57  ;;  %v3648_v61 = vadd.f32 %v3931_v23, %v3633_v58 }
 0x31b   : > { %v3647_v62 = vadd.f32 %v3931_v23, %v3632_v60  ;;  %v3656_v0 = vmax.f32 %v3648_v61, 0.0 }
 0x31d   : > { %v3655_v63 = vmax.f32 %v3647_v62, 0.0 }
 0x31f   : > { %5060 = vmatprep.mubr.f32.mxu1 %v3655_v63 }
 0x320   : > { %5061 = vmatmul.mubr.f32.gmra.mxu1 %v3656_v0 }
 0x353   : > { %v5053_v2 = vpop.f32.mrf.mxu1 }
 0x354   : > { %v3752_v3 = vadd.f32 %v5053_v2, %v3932_v1 }
 0x355   : > { %v3746_v4 = vpop.f32.mrf.mxu1 }
 0x356   : > { %3786 = vst [vmem:[%s364_s24 + $0x8] sm:$0xff] %v3752_v3  ;;  %v3747_v5 = vadd.f32 %v3932_v1, %v3746_v4 }
 0x358   : > { %3785 = vst [vmem:[%s364_s24] sm:$0xff] %v3747_v5 }
 0x381   : > { %v5056_v6 = vpop.f32.mrf.mxu1 }
 0x382   : > { %v3762_v7 = vadd.f32 %v5056_v6, %v3932_v1 }
 0x383   : > { %v3756_v9 = vpop.f32.mrf.mxu1 }
 0x384   : > { %3788 = vst [vmem:[%s364_s24 + $0x18] sm:$0xff] %v3762_v7  ;;  %v3757_v10 = vadd.f32 %v3932_v1, %v3756_v9 }
 0x386   : > { %3787 = vst [vmem:[%s364_s24 + $0x10] sm:$0xff] %v3757_v10 }
 0x3b2   : > { %v5059_v11 = vpop.f32.mrf.mxu1 }
 0x3b3   : > { %v3772_v12 = vadd.f32 %v5059_v11, %v3932_v1 }
 0x3b4   : > { %v3766_v13 = vpop.f32.mrf.mxu1 }
 0x3b5   : > { %3790 = vst [vmem:[%s364_s24 + $0x28] sm:$0xff] %v3772_v12  ;;  %v3767_v14 = vadd.f32 %v3932_v1, %v3766_v13 }
 0x3b7   : > { %3789 = vst [vmem:[%s364_s24 + $0x20] sm:$0xff] %v3767_v14 }
 0x3e0   : > { %v5062_v15 = vpop.f32.mrf.mxu1 }
 0x3e1   : > { %v3782_v16 = vadd.f32 %v5062_v15, %v3932_v1 }
 0x3e2   : > { %v3776_v17 = vpop.f32.mrf.mxu1 }
 0x3e3   : > { %3792 = vst [vmem:[%s364_s24 + $0x38] sm:$0xff] %v3782_v16  ;;  %v3777_v18 = vadd.f32 %v3932_v1, %v3776_v17 }
 0x3e5   : > { %3791 = vst [vmem:[%s364_s24 + $0x30] sm:$0xff] %v3777_v18 }
 0x3e6   : > { %5117 = shalt.err (!%p5114_p3)
}
 0x3e7   : > { %s5118_s26 = scalar_lea.hbm %s6173_s16, 1024  ;;  %s5122_s25 = scalar_lea.hbm %s6228_s9, 2048 }
 0x3e8   : > { %p5119_p4 = scmp.ne.s32.totalorder %s6173_s16, %s5118_s26  ;;  %p5123_p9 = scmp.lt.s32.totalorder %s6173_s16, %s6228_s9 }
 0x3e9   : > { %p5124_p10 = scmp.lt.s32.totalorder %s5122_s25, %s5118_s26 }
 0x3ea   : > { %p5120_p7 = pnand %p5119_p4, %p5257_p5 }
 0x3eb   : > { %p5125_p11 = por %p5124_p10, %p5123_p9 }
 0x3ec   : > { %p5121_p8 = pneg %p5120_p7 }
 0x3ee   : > { %p5126_p12 = pnand %p5125_p11, %p5121_p8 }
 0x3f0   : > { %5129 = shalt.err (!%p5126_p12)
}
 0x3f1   : > { %s5167_s13 = smov 128   ;;  %s5168_s17 = smov 8  }
 0x3f2   : > { %5063 = dma.vmem_to_hbm [thread:$0]  (%p5257_p5), %s6175_s27, 1024, %s6173_s16, %s6179_s14, %s5167_s13, %s5167_s13, %s5168_s17  }
 0x3f3 PF: > { %p5069_p13 = scmp.ge.s32.totalorder %s5164_s12, 2  ;;  %s3822_s21 = sand.u32 1, %s5152_s30  }
 0x3f4   : > { %s3823_s22 = scalar_lea.sflag [#allocation3], %s3822_s21 }
 0x3f5   : > { %p5066_p0 = pnand %p5069_p13, %p5261_p6 }
 0x3f7   : > { %p5067_p1 = pneg %p5066_p0 }
 0x3f9   : > { %5147 = dma.done.wait (%p5067_p1), %s3823_s22, 1024  }
 0x3fa   : > { %5149 = vsyncadd (%p5067_p1), %s3823_s22, 4294966272  ;;  %p19_p2 = scmp.ge.s32.totalorder %s5244_s15, 4   ;;  %s6231_s30 = smov %s5156_s10 }
 0x3fb   : > { %s6232_s10 = smov %s5160_s11  ;;  %s6233_s11 = smov %s5255_s18 }
 0x3fc   : > { %s6234_s12 = smov %s5244_s15  ;;  %21 = sbr.rel (!%p19_p2) target bundleno = 3 (0x3), region = 97 }
 0x401   :  { %3828 = vsyncpa [#allocation3], 1 }
 0x402   :  { %3830 = vsyncpa [#allocation3 + $0x1], 1 }

</bundles_post_ra>
